<compile_context>
chip_gen: v6e
topology: v6e:2x2x1
jax: 0.10.0
libtpu: 0.0.40
codegen_flags: <defaults>
</compile_context>

<pallas_src>
import jax
import jax.numpy as jnp
from jax.experimental import pallas as pl
from jax.experimental.pallas import tpu as pltpu


def ffn_kernel(x_ref, w1_ref, b1_ref, w2_ref, b2_ref, o_ref, acc_ref):
    # x_ref : (TM, C) f32     w1_ref: (C, TH) bf16   b1_ref: (1, TH) f32
    # w2_ref: (TH, C) bf16    b2_ref: (1, C)  f32    o_ref : (TM, C) out_dtype
    # acc_ref: (TM, C) f32 scratch, persists across the hidden-chunk axis.
    k = pl.program_id(1)

    @pl.when(k == 0)
    def _():
        acc_ref[...] = jnp.zeros_like(acc_ref)

    # In-kernel bf16 cast of x (VPU, hidden under the MXU) — no wrapper pass.
    x = x_ref[...].astype(jnp.bfloat16)
    # First matmul chunk on the MXU with f32 accumulation; bias + ReLU on VPU.
    h = jnp.dot(x, w1_ref[...], preferred_element_type=jnp.float32)
    h = jnp.maximum(h + b1_ref[...], 0.0)
    # Second matmul chunk: bf16 back to the MXU, accumulate f32 partial sums.
    acc_ref[...] += jnp.dot(h.astype(jnp.bfloat16), w2_ref[...],
                            preferred_element_type=jnp.float32)

    @pl.when(k == pl.num_programs(1) - 1)
    def _():
        o_ref[...] = (acc_ref[...] + b2_ref[...]).astype(o_ref.dtype)


def _round_up(n, m):
    return ((n + m - 1) // m) * m


def _pick_th(H, preferred):
    # Hidden-chunk size: must divide H exactly (partial hidden chunks would
    # pollute the reduction) and be a multiple of 128 for lane tiling.
    for t in (preferred, 512, 384, 256, 128):
        if t is not None and 0 < t <= H and H % t == 0 and t % 128 == 0:
            return t
    return H  # fall back to a single full-width chunk


def _vmem_limit_bytes(tm, th, C, out_bytes):
    cap = 64 * 1024 * 1024  # conservative default (v7x per-TC physical VMEM)
    try:
        info = pltpu.get_tpu_info()
        cap = int(getattr(info, "vmem_capacity_bytes", cap) or cap)
    except Exception:
        pass
    needed = (
        2 * tm * C * 4            # x tiles, f32, double-buffered
        + 2 * tm * C * out_bytes  # output tiles, double-buffered
        + 2 * C * th * 2          # W1 chunks, bf16, double-buffered
        + 2 * th * C * 2          # W2 chunks, bf16, double-buffered
        + 2 * (th + C) * 4        # bias chunks
        + tm * C * 4              # f32 accumulator scratch
        + tm * th * 4             # f32 hidden-chunk intermediate
    )
    # + headroom for compiler-internal scratch; cap at 75% of physical VMEM.
    return int(min(needed + 8 * 1024 * 1024, 0.75 * cap))


def prepare_ffn_params(w1, b1, w2, b2):
    """Cast weights to bf16 ONCE (persist across calls); biases -> f32 rows."""
    return (w1.astype(jnp.bfloat16),
            b1.reshape(1, -1).astype(jnp.float32),
            w2.astype(jnp.bfloat16),
            b2.reshape(1, -1).astype(jnp.float32))


def feed_forward(x, params, *, tm=256, th=512, out_dtype=None):
    """x: (B, T, C) float32; params = prepare_ffn_params(w1, b1, w2, b2)."""
    w1, b1, w2, b2 = params
    B, T, C = x.shape
    H = w1.shape[1]
    M = B * T
    out_dtype = x.dtype if out_dtype is None else out_dtype
    out_bytes = jnp.dtype(out_dtype).itemsize

    # Row tile: multiple of 16 (bf16 sublane packing), clamped for tiny M.
    tm_eff = max(16, min(tm, _round_up(M, 16)))
    th_eff = _pick_th(H, th)

    grid_m = pl.cdiv(M, tm_eff)          # partial last block is masked by Pallas
    grid_h = H // th_eff                 # th_eff divides H by construction
    grid = (grid_m, grid_h)

    x2d = x.reshape(M, C)                # no padding, no post-slice

    flops = 4 * M * C * H                # two matmuls: 2*M*C*H each
    bytes_accessed = (M * C * 4                       # x (f32)
                      + grid_m * 2 * C * H * 2        # W1+W2 reread per row tile
                      + (H + C) * 4                   # biases
                      + M * C * out_bytes)            # output

    out2d = pl.pallas_call(
        ffn_kernel,
        out_shape=jax.ShapeDtypeStruct((M, C), out_dtype),
        grid_spec=pltpu.PrefetchScalarGridSpec(
            num_scalar_prefetch=0,
            grid=grid,
            in_specs=[
                pl.BlockSpec((tm_eff, C), lambda i, k: (i, 0)),   # x rows
                pl.BlockSpec((C, th_eff), lambda i, k: (0, k)),   # W1 column chunk
                pl.BlockSpec((1, th_eff), lambda i, k: (0, k)),   # b1 chunk
                pl.BlockSpec((th_eff, C), lambda i, k: (k, 0)),   # W2 row chunk
                pl.BlockSpec((1, C), lambda i, k: (0, 0)),        # b2
            ],
            out_specs=pl.BlockSpec((tm_eff, C), lambda i, k: (i, 0)),
            scratch_shapes=[pltpu.VMEM((tm_eff, C), jnp.float32)],
        ),
        compiler_params=pltpu.CompilerParams(
            dimension_semantics=("parallel", "arbitrary"),
            vmem_limit_bytes=_vmem_limit_bytes(tm_eff, th_eff, C, out_bytes),
        ),
        cost_estimate=pl.CostEstimate(
            flops=flops, transcendentals=0, bytes_accessed=bytes_accessed),
    )(x2d, w1, b1, w2, b2)

    return out2d.reshape(B, T, C)


def reference(x, w1, b1, w2, b2):
    h = jnp.maximum(x @ w1 + b1, 0.0)
    return h @ w2 + b2


if __name__ == "__main__":
    # Shapes consistent with the module: n_embd=384, 4x expansion MLP.
    # M = B*T = 400 -> 2 row tiles of 256 (last one partial: exercises the
    # pl.cdiv masked-writeback path), 3 hidden chunks of 512.
    n_embd = 384
    hidden = 4 * n_embd
    B, T = 4, 100

    key = jax.random.PRNGKey(0)
    kx, k1, kb1, k2, kb2 = jax.random.split(key, 5)

    x = jax.random.normal(kx, (B, T, n_embd), dtype=jnp.float32)

    # nn.Linear default init: U(-1/sqrt(fan_in), 1/sqrt(fan_in)).
    lim1 = 1.0 / jnp.sqrt(jnp.float32(n_embd))
    lim2 = 1.0 / jnp.sqrt(jnp.float32(hidden))
    w1 = jax.random.uniform(k1, (n_embd, hidden), jnp.float32, -lim1, lim1)
    b1 = jax.random.uniform(kb1, (hidden,), jnp.float32, -lim1, lim1)
    w2 = jax.random.uniform(k2, (hidden, n_embd), jnp.float32, -lim2, lim2)
    b2 = jax.random.uniform(kb2, (n_embd,), jnp.float32, -lim2, lim2)

    # bf16 weight cast happens exactly once here, not per forward call.
    params = prepare_ffn_params(w1, b1, w2, b2)

    out = feed_forward(x, params)
    out = jax.block_until_ready(out)

    ref = reference(x, w1, b1, w2, b2)
    assert out.shape == (B, T, n_embd)
    assert out.dtype == x.dtype
    # bf16 MXU operands with f32 accumulation: small quantization noise expected.
    assert jnp.allclose(out, ref, atol=2e-2, rtol=2e-2), "mismatch vs reference"

    print("KERNEL_OK")
</pallas_src>

<mosaic_0001>
module attributes {stable_mosaic.version = 11 : i64} {
  func.func @ffn_kernel(%arg0: i32, %arg1: i32, %arg2: memref<256x384xf32, #tpu.memory_space<vmem>>, %arg3: memref<384x512xbf16, #tpu.memory_space<vmem>>, %arg4: memref<1x512xf32, #tpu.memory_space<vmem>>, %arg5: memref<512x384xbf16, #tpu.memory_space<vmem>>, %arg6: memref<1x384xf32, #tpu.memory_space<vmem>>, %arg7: memref<256x384xf32, #tpu.memory_space<vmem>>, %arg8: memref<256x384xf32, #tpu.memory_space<vmem>>) attributes {dimension_semantics = [#tpu.dimension_semantics<parallel>, #tpu.dimension_semantics<arbitrary>], iteration_bounds = array<i64: 2, 3>, scalar_prefetch = 0 : i64, scratch_operands = 1 : i64, tpu.core_type = #tpu.core_type<tc>, window_params = [{transform_indices = @transform_0, window_bounds = array<i64: 256, 384>}, {transform_indices = @transform_1, window_bounds = array<i64: 384, 512>}, {transform_indices = @transform_2, window_bounds = array<i64: 1, 512>}, {transform_indices = @transform_3, window_bounds = array<i64: 512, 384>}, {pipeline_mode = #tpu.pipeline_mode<synchronous>, transform_indices = @transform_4, window_bounds = array<i64: 1, 384>}, {transform_indices = @transform_5, window_bounds = array<i64: 256, 384>}]} {
    %c0_i32 = arith.constant 0 : i32
    %0 = arith.cmpi eq, %arg1, %c0_i32 : i32
    %1 = arith.extui %0 : i1 to i32
    %c0_i32_0 = arith.constant 0 : i32
    %2 = arith.cmpi ne, %1, %c0_i32_0 : i32
    scf.if %2 {
      %cst_15 = arith.constant 0.000000e+00 : f32
      %21 = vector.broadcast %cst_15 : f32 to vector<256x384xf32>
      %c0_16 = arith.constant 0 : index
      %c0_17 = arith.constant 0 : index
      %22 = vector.load %arg8[%c0_16, %c0_17] : memref<256x384xf32, #tpu.memory_space<vmem>>, vector<256x384xf32>
      tpu.vector_store %arg8[%c0_16, %c0_17], %21 {strides = array<i32>} : memref<256x384xf32, #tpu.memory_space<vmem>>, vector<256x384xf32>,
    } else {
    }
    %c0 = arith.constant 0 : index
    %c0_1 = arith.constant 0 : index
    %3 = vector.load %arg2[%c0, %c0_1] : memref<256x384xf32, #tpu.memory_space<vmem>>, vector<256x384xf32>
    %4 = arith.truncf %3 : vector<256x384xf32> to vector<256x384xbf16>
    %c0_2 = arith.constant 0 : index
    %c0_3 = arith.constant 0 : index
    %5 = vector.load %arg3[%c0_2, %c0_3] : memref<384x512xbf16, #tpu.memory_space<vmem>>, vector<384x512xbf16>
    %cst = arith.constant dense<0.000000e+00> : vector<256x512xf32>
    %6 = tpu.matmul %4, %5, %cst {dimension_numbers = #tpu.dot_dimension_numbers<[1], [0], [0], [1], [0, 0, 1, 1], [], []>} : vector<256x384xbf16>, vector<384x512xbf16>, vector<256x512xf32> -> vector<256x512xf32>
    %c0_4 = arith.constant 0 : index
    %c0_5 = arith.constant 0 : index
    %7 = vector.load %arg4[%c0_4, %c0_5] : memref<1x512xf32, #tpu.memory_space<vmem>>, vector<1x512xf32>
    %8 = vector.broadcast %7 : vector<1x512xf32> to vector<256x512xf32>
    %9 = arith.addf %6, %8 : vector<256x512xf32>
    %cst_6 = arith.constant 0.000000e+00 : f32
    %10 = vector.broadcast %cst_6 : f32 to vector<256x512xf32>
    %11 = arith.maximumf %9, %10 : vector<256x512xf32>
    %c0_7 = arith.constant 0 : index
    %c0_8 = arith.constant 0 : index
    %12 = vector.load %arg8[%c0_7, %c0_8] : memref<256x384xf32, #tpu.memory_space<vmem>>, vector<256x384xf32>
    %13 = arith.truncf %11 : vector<256x512xf32> to vector<256x512xbf16>
    %c0_9 = arith.constant 0 : index
    %c0_10 = arith.constant 0 : index
    %14 = vector.load %arg5[%c0_9, %c0_10] : memref<512x384xbf16, #tpu.memory_space<vmem>>, vector<512x384xbf16>
    %cst_11 = arith.constant dense<0.000000e+00> : vector<256x384xf32>
    %15 = tpu.matmul %13, %14, %cst_11 {dimension_numbers = #tpu.dot_dimension_numbers<[1], [0], [0], [1], [0, 0, 1, 1], [], []>} : vector<256x512xbf16>, vector<512x384xbf16>, vector<256x384xf32> -> vector<256x384xf32>
    %16 = arith.addf %12, %15 : vector<256x384xf32>
    %c0_12 = arith.constant 0 : index
    %c0_13 = arith.constant 0 : index
    %17 = vector.load %arg8[%c0_12, %c0_13] : memref<256x384xf32, #tpu.memory_space<vmem>>, vector<256x384xf32>
    tpu.vector_store %arg8[%c0_12, %c0_13], %16 {strides = array<i32>} : memref<256x384xf32, #tpu.memory_space<vmem>>, vector<256x384xf32>,
    %c2_i32 = arith.constant 2 : i32
    %18 = arith.cmpi eq, %arg1, %c2_i32 : i32
    %19 = arith.extui %18 : i1 to i32
    %c0_i32_14 = arith.constant 0 : i32
    %20 = arith.cmpi ne, %19, %c0_i32_14 : i32
    scf.if %20 {
      %c0_15 = arith.constant 0 : index
      %c0_16 = arith.constant 0 : index
      %21 = vector.load %arg8[%c0_15, %c0_16] : memref<256x384xf32, #tpu.memory_space<vmem>>, vector<256x384xf32>
      %c0_17 = arith.constant 0 : index
      %c0_18 = arith.constant 0 : index
      %22 = vector.load %arg6[%c0_17, %c0_18] : memref<1x384xf32, #tpu.memory_space<vmem>>, vector<1x384xf32>
      %23 = vector.broadcast %22 : vector<1x384xf32> to vector<256x384xf32>
      %24 = arith.addf %21, %23 : vector<256x384xf32>
      %c0_19 = arith.constant 0 : index
      %c0_20 = arith.constant 0 : index
      %25 = vector.load %arg7[%c0_19, %c0_20] : memref<256x384xf32, #tpu.memory_space<vmem>>, vector<256x384xf32>
      tpu.vector_store %arg7[%c0_19, %c0_20], %24 {strides = array<i32>} : memref<256x384xf32, #tpu.memory_space<vmem>>, vector<256x384xf32>,
    } else {
    }
    return
  }
  func.func @transform_0(%arg0: i32, %arg1: i32) -> (i32, i32) {
    %c0_i32 = arith.constant 0 : i32
    %c0_i32_0 = arith.constant 0 : i32
    return %arg0, %c0_i32 : i32, i32
  }
  func.func @transform_1(%arg0: i32, %arg1: i32) -> (i32, i32) {
    %c0_i32 = arith.constant 0 : i32
    %c0_i32_0 = arith.constant 0 : i32
    return %c0_i32, %arg1 : i32, i32
  }
  func.func @transform_2(%arg0: i32, %arg1: i32) -> (i32, i32) {
    %c0_i32 = arith.constant 0 : i32
    %c0_i32_0 = arith.constant 0 : i32
    return %c0_i32, %arg1 : i32, i32
  }
  func.func @transform_3(%arg0: i32, %arg1: i32) -> (i32, i32) {
    %c0_i32 = arith.constant 0 : i32
    %c0_i32_0 = arith.constant 0 : i32
    return %arg1, %c0_i32 : i32, i32
  }
  func.func @transform_4(%arg0: i32, %arg1: i32) -> (i32, i32) {
    %c0_i32 = arith.constant 0 : i32
    %c0_i32_0 = arith.constant 0 : i32
    %c0_i32_1 = arith.constant 0 : i32
    return %c0_i32, %c0_i32_0 : i32, i32
  }
  func.func @transform_5(%arg0: i32, %arg1: i32) -> (i32, i32) {
    %c0_i32 = arith.constant 0 : i32
    %c0_i32_0 = arith.constant 0 : i32
    return %arg0, %c0_i32 : i32, i32
  }
}

</mosaic_0001>

<bundles_post_ra>
// kernel: tpu_custom_call.1
= control target key start
LH: loop header
LB: loop body
LE: loop exit
PB: predicated region body
PF: predicated region fallthrough
CT: control target
= control target key end

     0   :  { %s7824_s0 = inlined_call_operand.hbm [shape: f32[400,384], index: 0, kind: input, shape index: {}]   ;;  %s7825_s1 = inlined_call_operand.hbm [shape: bf16[384,1536], index: 1, kind: input, shape index: {}]   ;;  %s7826_s2 = inlined_call_operand.hbm [shape: f32[1,1536], index: 2, kind: input, shape index: {}]   ;;  %s7827_s3 = inlined_call_operand.hbm [shape: bf16[1536,384], index: 3, kind: input, shape index: {}]   ;;  %s7828_s4 = inlined_call_operand.hbm [shape: f32[1,384], index: 4, kind: input, shape index: {}]   ;;  %s7829_s5 = inlined_call_operand.hbm [shape: f32[400,384], index: 5, kind: output, shape index: {}]  }
   0x1   :  { %7875 = sst [smem:[#allocation49_spill]] %s7824_s0 }
   0x2   :  { %7876 = sst [smem:[#allocation50_spill]] %s7825_s1 }
   0x3   :  { %7877 = sst [smem:[#allocation51_spill]] %s7828_s4 }
   0x4   :  { %7878 = sst [smem:[#allocation52_spill]] %s7829_s5 }
   0x5   :  { %10 = vsyncpa [#allocation4], 0 }
   0x6   :  { %12 = vsyncpa [#allocation4 + $0x1], 0 }
   0x7   :  { %13 = vsyncpa [#allocation7], 0 }
   0x8   :  { %15 = vsyncpa [#allocation7 + $0x1], 0 }
   0x9   :  { %16 = vsyncpa [#allocation10], 0 }
   0xa   :  { %18 = vsyncpa [#allocation10 + $0x1], 0 }
   0xb   :  { %19 = vsyncpa [#allocation5], 0 }
   0xc   :  { %21 = vsyncpa [#allocation5 + $0x1], 0  ;;  %s5521_s18 = smov 0   ;;  %s5523_s19 = smov 0  }
   0xd   :  { %s5525_s20 = smov 0   ;;  %s5527_s21 = smov 0  }
   0xe   :  { %s5529_s22 = smov 0   ;;  %s5531_s23 = smov 0  }
   0xf   :  { %s5533_s24 = smov 0   ;;  %s5535_s25 = smov 0  }
  0x10   :  { %s5537_s26 = smov 0   ;;  %s5539_s27 = smov 0  }
  0x11   :  { %s5541_s28 = smov 0  }
  0x12 LB: > { %7879 = sst [smem:[#allocation18_spill]] %s5444_s21  ;;  %s5577_s29 = sadd.s32 4294967295, %s5472_s28   ;;  %s5472_s28 = sphi %s5541_s28, %s27_s28   ;;  %s5468_s27 = sphi %s5539_s27, %s8000_s27   ;;  %s5464_s26 = sphi %s5537_s26, %s8007_s26   ;;  %s5460_s25 = sphi %s5535_s25, %s7998_s25   ;;  %s5456_s24 = sphi %s5533_s24, %s8006_s24   ;;  %s5452_s23 = sphi %s5531_s23, %s7997_s23   ;;  %s5448_s22 = sphi %s5529_s22, %s8005_s22   ;;  %s5444_s21 = sphi %s5527_s21, %s8004_s21   ;;  %s5440_s20 = sphi %s5525_s20, %s8003_s20   ;;  %s5436_s19 = sphi %s5523_s19, %s8002_s19   ;;  %s5432_s18 = sphi %s5521_s18, %s8001_s18  }
  0x13   : > { %7880 = sst [smem:[#allocation19_spill]] %s5452_s23  ;;  %s4340_s30 = sadd.s32 4294967294, %s5472_s28  }
  0x14   : > { %7881 = sst [smem:[#allocation20_spill]] %s5456_s24  ;;  %s36_s6 = sadd.s32 1, %s5464_s26 }
  0x15   : > { %7882 = sst [smem:[#allocation21_spill]] %s5460_s25  ;;  %s39_s7 = sadd.s32 1, %s5468_s27 }
  0x16   : > { %7883 = sst [smem:[#allocation22_spill]] %s5468_s27  ;;  %p37_p0 = scmp.ge.s32.totalorder %s36_s6, 3 }
  0x17   : > { %s46_s8 = sadd.s32 1, %s5452_s23  ;;  %p7831_p1 = scmp.ne.s32.totalorder %s5452_s23, %s5448_s22 }
  0x18   : > { %p54_p2 = scmp.eq.s32.totalorder %s5472_s28, 0  ;;  %s8009_s6 = smov (%p37_p0, %s36_s6), 0 }
  0x19   : > { %7884 = sst [smem:[#allocation23_spill]] %s8009_s6  ;;  %s8011_s7 = smov (!%p37_p0, %s39_s7), %s5468_s27 }
  0x1a   : > { %p5594_p3 = por %p54_p2, %p7831_p1  ;;  %p7830_p4 = scmp.ne.s32.totalorder %s5448_s22, %s5444_s21 }
  0x1b   : > { %p41_p5 = scmp.ge.s32.totalorder %s8011_s7, 2  ;;  %p60_p6 = scmp.eq.s32.totalorder %s5577_s29, 0 }
  0x1c   : > { %s7885_s9 = scalar_select %p5594_p3, 1, 0 }
  0x1d   : > { %s69_s10 = ssub.s32 %s5464_s26, %s8009_s6  ;;  %s72_s11 = sadd.s32 1, %s5440_s20 }
  0x1e   : > { %s8013_s7 = smov (%p41_p5, %s8011_s7), 0  ;;  %p5611_p7 = por %p60_p6, %p7830_p4 }
  0x1f   : > { %7886 = sst [smem:[#allocation24_spill]] %s8013_s7  ;;  %p70_p8 = scmp.eq.s32.totalorder %s69_s10, 0 }
  0x20   : > { %s7887_s12 = scalar_select %p5611_p7, 1, 0 }
  0x21   : > { %s43_s13 = ssub.s32 %s5468_s27, %s8013_s7  ;;  %p79_p9 = scmp.ne.s32.totalorder %s5440_s20, %s5436_s19 }
  0x22   : > { %p44_p10 = scmp.eq.s32.totalorder %s43_s13, 0  ;;  %p85_p11 = scmp.ne.s32.totalorder %s5436_s19, %s5432_s18 }
  0x23   : > { %s5622_s14 = scalar_select %p70_p8, %s5440_s20, %s72_s11  }
  0x24   : > { %s5625_s15 = scalar_select %p44_p10, %s5452_s23, %s46_s8  }
  0x25   : > { %7888 = sst [smem:[#allocation25_spill]] %s5622_s14  ;;  %p5629_p12 = por %p79_p9, %p54_p2 }
  0x26   : > { %7889 = sst [smem:[#allocation26_spill]] %s5625_s15  ;;  %p5635_p13 = por %p85_p11, %p60_p6 }
  0x27   : > { %p182_p0 = scmp.eq.s32.totalorder %s5577_s29, 5  ;;  %p188_p5 = scmp.eq.s32.totalorder %s4340_s30, 5 }
  0x28   : > { %s7891_s17 = scalar_select %p5635_p13, 1, 0 }
  0x29   : > { %p4341_p4 = scmp.ge.s32.totalorder %s5472_s28, 1  ;;  %p195_p1 = scmp.lt.s32.totalorder %s5472_s28, 7 }
  0x2a   : > { %p7892_p7 = scmp.ne.s32.totalorder %s5452_s23, %s5448_s22  ;;  %p7895_p8 = scmp.ne.s32.totalorder %s5448_s22, %s5444_s21 }
  0x2b   : > { %p5656_p2 = pnand %p4341_p4, %p195_p1  ;;  %s5474_s30 = smov [#allocation11]  }
  0x2c   : > { %p5645_p3 = por %p182_p0, %p7892_p7  ;;  %p5652_p10 = por %p188_p5, %p7895_p8 }
  0x2d   : > { %p4827_p9 = pneg %p5656_p2  ;;  %s208_s11 = sshll.u32 %s5474_s30, 4  ;;  %s209_s11 = int_to_ptr.vmem [resolvable:$true] %s208_s11 }
  0x2e   : > { %s7893_s18 = scalar_select %p5645_p3, 1, 0 }
  0x2f   : > { %s7896_s8 = scalar_select %p5652_p10, 1, 0 }
  0x30   : > { %7894 = sst [smem:[#allocation27_spill]] %s7893_s18  ;;  %p4828_p7 = pnand %p4827_p9, %p60_p6 }
  0x31   : > { %7897 = sst [smem:[#allocation28_spill]] %s7896_s8  ;;  %s5221_s13 = scalar_lea.vmem %s209_s11, 48 }
  0x32   : > { %p5212_p11 = pneg %p4828_p7  ;;  %p5222_p0 = scmp.ne.s32.totalorder %s209_s11, %s5221_s13 }
  0x33   : > { %s5228_s7 = scalar_lea.vmem %s209_s11, 64  ;;  %p5229_p8 = scmp.lt.s32.totalorder %s209_s11, %s209_s11 }
  0x34   : > { %p5224_p3 = pnand %p5222_p0, %p5212_p11  ;;  %p5230_p10 = scmp.lt.s32.totalorder %s5228_s7, %s5221_s13 }
  0x36   : > { %p5225_p5 = pneg %p5224_p3  ;;  %p5231_p1 = por %p5230_p10, %p5229_p8 }
  0x38   : > { %p5232_p4 = pnand %p5231_p1, %p5225_p5 }
  0x3a   : > { %5235 = shalt.err (!%p5232_p4)
}
  0x3b   : > { %s7899_s4 = sld [smem:[#allocation51_spill]]  ;;  %p4343_p13 = scmp.ge.s32.totalorder %s5472_s28, 6 }
  0x3c   : > { %p7900_p9 = scmp.ne.s32.totalorder (!%p4343_p13), %s7885_s9, 0 }
  0x3d   : > { %215 = sbr.rel (%p4343_p13) target bundleno = 151 (0x97), region = 20 }
  0x41   : > { %4830 = dma.hbm_to_vmem [thread:$0]  (!%p4828_p7), %s7899_s4, 48, %s209_s11, [#allocation10]  }
  0x42   : > { %218 = sbr.rel (!%p7900_p9) target bundleno = 105 (0x69), region = 24  ;;  %s219_s30 = sand.u32 (%p7900_p9), 1, %s5452_s23  }
  0x43   : > { %s4344_s14 = sshll.u32 (%p7900_p9), %s5468_s27, 5  ;;  %s4807_s8 = smul.u32 (%p7900_p9), 768, %s219_s30 }
  0x44   : > { %s225_s21 = ssub.s32 (%p7900_p9), 50, %s4344_s14  ;;  %s5675_s6 = scalar_lea.sflag (%p7900_p9), [#allocation4], %s219_s30 }
  0x45   : > { %p226_p3 = scmp.lt.s32.totalorder (%p7900_p9), %s225_s21, 32  ;;  %s223_s15 = scalar_lea.vmem (%p7900_p9), [#allocation3], %s4807_s8 }
  0x47   : > { %s8015_s21 = smov (!%p226_p3, %s225_s21), 32 }
  0x48   : > { %s5672_s7 = smul.u32 384, %s8015_s21 }
  0x4a   : > { %s231_s13 = ssub.s32 12288, %s5672_s7 }
  0x4b   : > { %232 = vsyncadd %s5675_s6, %s231_s13  ;;  %p4347_p13 = scmp.ne.s32.totalorder %s5672_s7, 0  ;;  %s4808_s9 = smul.u32 12288, %s5468_s27 }
  0x4c   : > { %s238_s11 = sshll.u32 %s223_s15, 4  ;;  %s7901_s0 = sld [smem:[#allocation49_spill]]  ;;  %s5685_s11 = int_to_ptr.vmem [resolvable:$true] %s238_s11 }
  0x52   : > { %s5683_s23 = scalar_lea.hbm %s7901_s0, %s4808_s9  ;;  %s5240_s13 = scalar_lea.hbm %s7901_s0, 19200 }
  0x53   : > { %s5236_s21 = scalar_lea.hbm %s5683_s23, %s5672_s7 }
  0x54   : > { %p5237_p10 = scmp.ne.s32.totalorder %s5683_s23, %s5236_s21  ;;  %p5242_p0 = scmp.lt.s32.totalorder %s5240_s13, %s5236_s21 }
  0x56   : > { %p5238_p7 = pnand %p5237_p10, %p4347_p13 }
  0x58   : > { %p5239_p11 = pneg %p5238_p7 }
  0x5a   : > { %p5244_p5 = pnand %p5242_p0, %p5239_p11 }
  0x5c   : > { %5247 = shalt.err (!%p5244_p5)
}
  0x5d   : > { %s5248_s4 = scalar_lea.vmem %s5685_s11, %s5672_s7  ;;  %s5475_s15 = smov [#allocation3]  }
  0x5e   : > { %p5249_p8 = scmp.ne.s32.totalorder %s5685_s11, %s5248_s4  ;;  %s5252_s9 = sshll.u32 %s5475_s15, 4  ;;  %s5253_s9 = int_to_ptr.vmem [resolvable:$false] %s5252_s9 }
  0x5f   : > { %s5254_s14 = scalar_lea.vmem %s5253_s9, 24576  ;;  %p5255_p9 = scmp.lt.s32.totalorder %s5685_s11, %s5253_s9 }
  0x60   : > { %p5250_p1 = pnand %p5249_p8, %p4347_p13  ;;  %p5256_p3 = scmp.lt.s32.totalorder %s5254_s14, %s5248_s4 }
  0x62   : > { %p5251_p4 = pneg %p5250_p1  ;;  %p5257_p10 = por %p5256_p3, %p5255_p9 }
  0x64   : > { %p5258_p7 = pnand %p5257_p10, %p5251_p4 }
  0x66   : > { %5261 = shalt.err (!%p5258_p7)
}
  0x67   : > { %s5476_s21 = smov 384   ;;  %s5477_s8 = smov 24  }
  0x68   : > { %244 = dma.hbm_to_vmem [thread:$0]  (%p4347_p13), %s5683_s23, %s5672_s7, %s5685_s11, %s5675_s6, %s5476_s21, %s5476_s21, %s5477_s8  }
  0x69 PF: > { %s7840_s30 = sand.u32 1, %s5472_s28   ;;  %s250_s13 = sand.u32 1, %s5440_s20  }
  0x6a   : > { %s5711_s4 = smul.u32 768, %s250_s13  ;;  %s4565_s15 = sshll.u32 %s5464_s26, 8 }
  0x6b   : > { %s7902_s1 = sld [smem:[#allocation50_spill]]  ;;  %s5720_s7 = scalar_lea.sflag [#allocation7], %s7840_s30 }
  0x6c   : > { %s252_s27 = scalar_lea.vmem [#allocation6], %s5711_s4  ;;  %s5478_s11 = smov [#allocation6]  }
  0x6d   : > { %s259_s23 = sshll.u32 %s252_s27, 4  ;;  %s5278_s21 = sshll.u32 %s5478_s11, 4  ;;  %s260_s23 = int_to_ptr.vmem [resolvable:$true] %s259_s23  ;;  %s5279_s21 = int_to_ptr.vmem [resolvable:$false] %s5278_s21 }
  0x6e   : > { %s5274_s6 = scalar_lea.vmem %s260_s23, 12288  ;;  %s5280_s8 = scalar_lea.vmem %s5279_s21, 24576 }
  0x6f   : > { %p5275_p13 = scmp.ne.s32.totalorder %s260_s23, %s5274_s6  ;;  %p5281_p5 = scmp.lt.s32.totalorder %s260_s23, %s5279_s21 }
  0x70   : > { %p5282_p8 = scmp.lt.s32.totalorder %s5280_s8, %s5274_s6 }
  0x71   : > { %s258_s0 = scalar_lea.hbm %s7902_s1, %s4565_s15  ;;  %p5276_p11 = pnand %p5275_p13, %p5629_p12 }
  0x72   : > { %p5283_p1 = por %p5282_p8, %p5281_p5 }
  0x73   : > { %p5277_p0 = pneg %p5276_p11 }
  0x75   : > { %p5284_p4 = pnand %p5283_p1, %p5277_p0 }
  0x77   : > { %5287 = shalt.err (!%p5284_p4)
}
  0x78   : > { %s5479_s15 = smov 768   ;;  %s5480_s27 = smov 256  }
  0x79   : > { %s5481_s9 = smov 16   ;;  %s4353_s14 = sshll.u32 %s250_s13, 2 }
  0x7a   : > { %4817 = dma.hbm_to_vmem [thread:$0]  (%p5629_p12), %s258_s0, 12288, %s260_s23, %s5720_s7, %s5479_s15, %s5480_s27, %s5481_s9  }
  0x7b   : > { %s4566_s11 = sshll.u32 %s5464_s26, 6  ;;  %s273_s21 = scalar_lea.vmem [#allocation8], %s4353_s14 }
  0x7c   : > { %s279_s6 = scalar_lea.hbm %s7826_s2, %s4566_s11  ;;  %s281_s8 = sshll.u32 %s273_s21, 4  ;;  %s282_s8 = int_to_ptr.vmem [resolvable:$true] %s281_s8 }
  0x7d   : > { %s5300_s5 = scalar_lea.vmem %s282_s8, 64  ;;  %s5482_s25 = smov [#allocation8]  }
  0x7e   : > { %p5301_p9 = scmp.ne.s32.totalorder %s282_s8, %s5300_s5  ;;  %s5304_s18 = sshll.u32 %s5482_s25, 4  ;;  %s5305_s18 = int_to_ptr.vmem [resolvable:$false] %s5304_s18 }
  0x7f   : > { %s5306_s24 = scalar_lea.vmem %s5305_s18, 128  ;;  %p5307_p7 = scmp.lt.s32.totalorder %s282_s8, %s5305_s18 }
  0x80   : > { %p5302_p3 = pnand %p5301_p9, %p5629_p12  ;;  %p5308_p13 = scmp.lt.s32.totalorder %s5306_s24, %s5300_s5 }
  0x82   : > { %p5303_p10 = pneg %p5302_p3  ;;  %p5309_p11 = por %p5308_p13, %p5307_p7 }
  0x84   : > { %p5310_p0 = pnand %p5309_p11, %p5303_p10 }
  0x86   : > { %5313 = shalt.err (!%p5310_p0)
}
  0x87   : > { %4818 = dma.hbm_to_vmem [thread:$0]  (%p5629_p12), %s279_s6, 64, %s282_s8, %s5720_s7  }
  0x88   : > { %s4811_s0 = smul.u32 12288, %s5464_s26  ;;  %s292_s1 = scalar_lea.vmem [#allocation9], %s5711_s4 }
  0x89   : > { %s300_s30 = sshll.u32 %s292_s1, 4  ;;  %s7903_s5 = sand.u32 1, %s5472_s28   ;;  %s301_s30 = int_to_ptr.vmem [resolvable:$true] %s300_s30 }
  0x8a   : > { %s299_s18 = scalar_lea.hbm %s7827_s3, %s4811_s0  ;;  %s289_s24 = scalar_lea.sflag [#allocation10], %s7903_s5 }
  0x8b   : > { %s5326_s23 = scalar_lea.vmem %s301_s30, 12288  ;;  %s5483_s15 = smov [#allocation9]  }
  0x8c   : > { %p5327_p5 = scmp.ne.s32.totalorder %s301_s30, %s5326_s23  ;;  %s5330_s27 = sshll.u32 %s5483_s15, 4  ;;  %s5331_s27 = int_to_ptr.vmem [resolvable:$false] %s5330_s27 }
  0x8d   : > { %s5332_s9 = scalar_lea.vmem %s5331_s27, 24576  ;;  %p5333_p4 = scmp.lt.s32.totalorder %s301_s30, %s5331_s27 }
  0x8e   : > { %p5328_p8 = pnand %p5327_p5, %p5629_p12  ;;  %p5334_p9 = scmp.lt.s32.totalorder %s5332_s9, %s5326_s23 }
  0x90   : > { %p5329_p1 = pneg %p5328_p8  ;;  %p5335_p3 = por %p5334_p9, %p5333_p4 }
  0x92   : > { %p5336_p10 = pnand %p5335_p3, %p5329_p1 }
  0x94   : > { %5339 = shalt.err (!%p5336_p10)
}
  0x95   : > { %s5484_s4 = smov 192   ;;  %s5485_s7 = smov 12  }
  0x96   : > { %4819 = dma.hbm_to_vmem [thread:$0]  (%p5629_p12), %s299_s18, 12288, %s301_s30, %s289_s24, %s5484_s4, %s5484_s4, %s5485_s7  }
  0x97 PF: > { %312 = sbr.rel (%p5656_p2) target bundleno = 1173 (0x495), region = 40 }
  0x9c   : > { %s5752_s14 = sand.u32 1, %s5448_s22   ;;  %p7904_p7 = scmp.ne.s32.totalorder %s7887_s12, 0 }
  0x9d   : > { %s4812_s11 = smul.u32 768, %s5752_s14  ;;  %s315_s6 = scalar_lea.sflag [#allocation4], %s5752_s14 }
  0x9f   : > { %s5756_s21 = scalar_lea.vmem [#allocation3], %s4812_s11 }
  0xa0   : > { %5411 = dma.done.wait (%p7904_p7), %s315_s6, 12288  }
  0xa1   : > { %5413 = vsyncadd (%p7904_p7), %s315_s6, 4294955008  ;;  %s323_s16 = sand.u32 1, %s5577_s29   ;;  %s325_s10 = sand.u32 1, %s5436_s19  }
  0xa2   : > { %s4813_s8 = smul.u32 768, %s325_s10  ;;  %s324_s0 = scalar_lea.sflag [#allocation7], %s323_s16 }
  0xa3   : > { %p7905_p12 = scmp.ne.s32.totalorder %s7891_s17, 0 }
  0xa4   : > { %s5764_s1 = scalar_lea.vmem [#allocation6], %s4813_s8 }
  0xa5   : > { %5415 = dma.done.wait (%p7905_p12), %s324_s0, 12352  }
  0xa6   : > { %5417 = vsyncadd (%p7905_p12), %s324_s0, 4294954944  ;;  %s5770_s30 = sshll.u32 %s325_s10, 2  ;;  %s342_s25 = scalar_lea.sflag [#allocation10], %s323_s16 }
  0xa7   : > { %s336_s12 = scalar_lea.vmem [#allocation8], %s5770_s30  ;;  %s5773_s13 = scalar_lea.vmem [#allocation9], %s4813_s8 }
  0xa8   : > { %5419 = dma.done.wait (%p7905_p12), %s342_s25, 12288  }
  0xa9   : > { %5421 = vsyncadd (%p7905_p12), %s342_s25, 4294955008 }
  0xaa   : > { %5423 = dma.done.wait (%p60_p6), [#allocation10], 48  }
  0xab   : > { %5425 = vsyncadd (%p60_p6), [#allocation10], 4294967248  ;;  %s5783_s18 = scalar_lea.vmem [#allocation12], %s4812_s11  ;;  %s7906_s5 = sld [smem:[#allocation20_spill]] }
  0xb1   : > { %p4362_p2 = scmp.ne.s32.totalorder %s7906_s5, 0 }
  0xb3   : > { %410 = sbr.rel (%p4362_p2) target bundleno = 233 (0xe9), region = 64 }
  0xb8   : > { %v5486_v0 = vmov 0.0  }
  0xb9   : > { %411 = vst [vmem:[#allocation2 + $0x2b0] sm:$0xff] %v5486_v0  ;;  %412 = vst [vmem:[#allocation2 + $0xd0] sm:$0xff] %v5486_v0 }
  0xba   : > { %413 = vst [vmem:[#allocation2 + $0x10] sm:$0xff] %v5486_v0  ;;  %414 = vst [vmem:[#allocation2 + $0x48] sm:$0xff] %v5486_v0 }
  0xbb   : > { %415 = vst [vmem:[#allocation2 + $0x30] sm:$0xff] %v5486_v0  ;;  %416 = vst [vmem:[#allocation2 + $0xf0] sm:$0xff] %v5486_v0 }
  0xbc   : > { %417 = vst [vmem:[#allocation2 + $0xf8] sm:$0xff] %v5486_v0  ;;  %418 = vst [vmem:[#allocation2 + $0x78] sm:$0xff] %v5486_v0 }
  0xbd   : > { %419 = vst [vmem:[#allocation2 + $0x128] sm:$0xff] %v5486_v0  ;;  %420 = vst [vmem:[#allocation2 + $0xe0] sm:$0xff] %v5486_v0 }
  0xbe   : > { %421 = vst [vmem:[#allocation2 + $0x2f8] sm:$0xff] %v5486_v0  ;;  %422 = vst [vmem:[#allocation2 + $0x2b8] sm:$0xff] %v5486_v0 }
  0xbf   : > { %423 = vst [vmem:[#allocation2 + $0x2a0] sm:$0xff] %v5486_v0  ;;  %424 = vst [vmem:[#allocation2 + $0x168] sm:$0xff] %v5486_v0 }
  0xc0   : > { %425 = vst [vmem:[#allocation2 + $0x178] sm:$0xff] %v5486_v0  ;;  %426 = vst [vmem:[#allocation2 + $0x40] sm:$0xff] %v5486_v0 }
  0xc1   : > { %427 = vst [vmem:[#allocation2] sm:$0xff] %v5486_v0  ;;  %428 = vst [vmem:[#allocation2 + $0x248] sm:$0xff] %v5486_v0 }
  0xc2   : > { %429 = vst [vmem:[#allocation2 + $0xe8] sm:$0xff] %v5486_v0  ;;  %430 = vst [vmem:[#allocation2 + $0x68] sm:$0xff] %v5486_v0 }
  0xc3   : > { %431 = vst [vmem:[#allocation2 + $0x228] sm:$0xff] %v5486_v0  ;;  %432 = vst [vmem:[#allocation2 + $0xa8] sm:$0xff] %v5486_v0 }
  0xc4   : > { %433 = vst [vmem:[#allocation2 + $0x20] sm:$0xff] %v5486_v0  ;;  %434 = vst [vmem:[#allocation2 + $0x1b0] sm:$0xff] %v5486_v0 }
  0xc5   : > { %435 = vst [vmem:[#allocation2 + $0x220] sm:$0xff] %v5486_v0  ;;  %436 = vst [vmem:[#allocation2 + $0x258] sm:$0xff] %v5486_v0 }
  0xc6   : > { %437 = vst [vmem:[#allocation2 + $0x238] sm:$0xff] %v5486_v0  ;;  %438 = vst [vmem:[#allocation2 + $0x130] sm:$0xff] %v5486_v0 }
  0xc7   : > { %439 = vst [vmem:[#allocation2 + $0x158] sm:$0xff] %v5486_v0  ;;  %440 = vst [vmem:[#allocation2 + $0x98] sm:$0xff] %v5486_v0 }
  0xc8   : > { %441 = vst [vmem:[#allocation2 + $0x2e0] sm:$0xff] %v5486_v0  ;;  %442 = vst [vmem:[#allocation2 + $0x1a8] sm:$0xff] %v5486_v0 }
  0xc9   : > { %443 = vst [vmem:[#allocation2 + $0x1b8] sm:$0xff] %v5486_v0  ;;  %444 = vst [vmem:[#allocation2 + $0x80] sm:$0xff] %v5486_v0 }
  0xca   : > { %445 = vst [vmem:[#allocation2 + $0x188] sm:$0xff] %v5486_v0  ;;  %446 = vst [vmem:[#allocation2 + $0x208] sm:$0xff] %v5486_v0 }
  0xcb   : > { %447 = vst [vmem:[#allocation2 + $0x38] sm:$0xff] %v5486_v0  ;;  %448 = vst [vmem:[#allocation2 + $0x190] sm:$0xff] %v5486_v0 }
  0xcc   : > { %449 = vst [vmem:[#allocation2 + $0x218] sm:$0xff] %v5486_v0  ;;  %450 = vst [vmem:[#allocation2 + $0x250] sm:$0xff] %v5486_v0 }
  0xcd   : > { %451 = vst [vmem:[#allocation2 + $0x1c8] sm:$0xff] %v5486_v0  ;;  %452 = vst [vmem:[#allocation2 + $0x280] sm:$0xff] %v5486_v0 }
  0xce   : > { %453 = vst [vmem:[#allocation2 + $0x100] sm:$0xff] %v5486_v0  ;;  %454 = vst [vmem:[#allocation2 + $0xb8] sm:$0xff] %v5486_v0 }
  0xcf   : > { %455 = vst [vmem:[#allocation2 + $0x288] sm:$0xff] %v5486_v0  ;;  %456 = vst [vmem:[#allocation2 + $0x60] sm:$0xff] %v5486_v0 }
  0xd0   : > { %457 = vst [vmem:[#allocation2 + $0x210] sm:$0xff] %v5486_v0  ;;  %458 = vst [vmem:[#allocation2 + $0x50] sm:$0xff] %v5486_v0 }
  0xd1   : > { %459 = vst [vmem:[#allocation2 + $0x1e8] sm:$0xff] %v5486_v0  ;;  %460 = vst [vmem:[#allocation2 + $0x2d0] sm:$0xff] %v5486_v0 }
  0xd2   : > { %461 = vst [vmem:[#allocation2 + $0x1f0] sm:$0xff] %v5486_v0  ;;  %462 = vst [vmem:[#allocation2 + $0x28] sm:$0xff] %v5486_v0 }
  0xd3   : > { %463 = vst [vmem:[#allocation2 + $0x138] sm:$0xff] %v5486_v0  ;;  %464 = vst [vmem:[#allocation2 + $0xc8] sm:$0xff] %v5486_v0 }
  0xd4   : > { %465 = vst [vmem:[#allocation2 + $0x58] sm:$0xff] %v5486_v0  ;;  %466 = vst [vmem:[#allocation2 + $0x1c0] sm:$0xff] %v5486_v0 }
  0xd5   : > { %467 = vst [vmem:[#allocation2 + $0x298] sm:$0xff] %v5486_v0  ;;  %468 = vst [vmem:[#allocation2 + $0x70] sm:$0xff] %v5486_v0 }
  0xd6   : > { %469 = vst [vmem:[#allocation2 + $0x18] sm:$0xff] %v5486_v0  ;;  %470 = vst [vmem:[#allocation2 + $0x120] sm:$0xff] %v5486_v0 }
  0xd7   : > { %471 = vst [vmem:[#allocation2 + $0x240] sm:$0xff] %v5486_v0  ;;  %472 = vst [vmem:[#allocation2 + $0x180] sm:$0xff] %v5486_v0 }
  0xd8   : > { %473 = vst [vmem:[#allocation2 + $0x1f8] sm:$0xff] %v5486_v0  ;;  %474 = vst [vmem:[#allocation2 + $0x1a0] sm:$0xff] %v5486_v0 }
  0xd9   : > { %475 = vst [vmem:[#allocation2 + $0xa0] sm:$0xff] %v5486_v0  ;;  %476 = vst [vmem:[#allocation2 + $0x278] sm:$0xff] %v5486_v0 }
  0xda   : > { %477 = vst [vmem:[#allocation2 + $0x8] sm:$0xff] %v5486_v0  ;;  %478 = vst [vmem:[#allocation2 + $0x2c0] sm:$0xff] %v5486_v0 }
  0xdb   : > { %479 = vst [vmem:[#allocation2 + $0x270] sm:$0xff] %v5486_v0  ;;  %480 = vst [vmem:[#allocation2 + $0x290] sm:$0xff] %v5486_v0 }
  0xdc   : > { %481 = vst [vmem:[#allocation2 + $0x2a8] sm:$0xff] %v5486_v0  ;;  %482 = vst [vmem:[#allocation2 + $0x2f0] sm:$0xff] %v5486_v0 }
  0xdd   : > { %483 = vst [vmem:[#allocation2 + $0x1e0] sm:$0xff] %v5486_v0  ;;  %484 = vst [vmem:[#allocation2 + $0x150] sm:$0xff] %v5486_v0 }
  0xde   : > { %485 = vst [vmem:[#allocation2 + $0x2c8] sm:$0xff] %v5486_v0  ;;  %486 = vst [vmem:[#allocation2 + $0x1d0] sm:$0xff] %v5486_v0 }
  0xdf   : > { %487 = vst [vmem:[#allocation2 + $0x140] sm:$0xff] %v5486_v0  ;;  %488 = vst [vmem:[#allocation2 + $0x230] sm:$0xff] %v5486_v0 }
  0xe0   : > { %489 = vst [vmem:[#allocation2 + $0x160] sm:$0xff] %v5486_v0  ;;  %490 = vst [vmem:[#allocation2 + $0x2d8] sm:$0xff] %v5486_v0 }
  0xe1   : > { %491 = vst [vmem:[#allocation2 + $0xc0] sm:$0xff] %v5486_v0  ;;  %492 = vst [vmem:[#allocation2 + $0x170] sm:$0xff] %v5486_v0 }
  0xe2   : > { %493 = vst [vmem:[#allocation2 + $0x90] sm:$0xff] %v5486_v0  ;;  %494 = vst [vmem:[#allocation2 + $0xb0] sm:$0xff] %v5486_v0 }
  0xe3   : > { %495 = vst [vmem:[#allocation2 + $0x200] sm:$0xff] %v5486_v0  ;;  %496 = vst [vmem:[#allocation2 + $0xd8] sm:$0xff] %v5486_v0 }
  0xe4   : > { %497 = vst [vmem:[#allocation2 + $0x1d8] sm:$0xff] %v5486_v0  ;;  %498 = vst [vmem:[#allocation2 + $0x2e8] sm:$0xff] %v5486_v0 }
  0xe5   : > { %499 = vst [vmem:[#allocation2 + $0x260] sm:$0xff] %v5486_v0  ;;  %500 = vst [vmem:[#allocation2 + $0x268] sm:$0xff] %v5486_v0 }
  0xe6   : > { %501 = vst [vmem:[#allocation2 + $0x88] sm:$0xff] %v5486_v0  ;;  %502 = vst [vmem:[#allocation2 + $0x110] sm:$0xff] %v5486_v0 }
  0xe7   : > { %503 = vst [vmem:[#allocation2 + $0x108] sm:$0xff] %v5486_v0  ;;  %504 = vst [vmem:[#allocation2 + $0x198] sm:$0xff] %v5486_v0 }
  0xe8   : > { %505 = vst [vmem:[#allocation2 + $0x148] sm:$0xff] %v5486_v0  ;;  %506 = vst [vmem:[#allocation2 + $0x118] sm:$0xff] %v5486_v0 }
  0xe9 PF: > { %v4938_v1 = vld [vmem:[%s5764_s1 + $0xe4] ss:$16 sps:$4 sm:$0xff]   ;;  %v5487_v3 = vmov 0   ;;  %v4942_v4 = vld [vmem:[%s5764_s1 + $0xe0] ss:$16 sps:$4 sm:$0xff]   ;;  %v512_v35 = vld [vmem:[%s5756_s21 + $0x28] sm:$0xff] }
  0xea   : > { %v4940_v2 = vld [vmem:[%s5764_s1 + $0x2e4] ss:$16 sps:$4 sm:$0xff]   ;;  %1474 = vmatprep.mubr.bf16.mxu1 %v5487_v3  ;;  %1249 = vmatprep.subr.bf16.mxu0 %v4938_v1  ;;  %v4943_v5 = vld [vmem:[%s5764_s1 + $0x2e0] ss:$16 sps:$4 sm:$0xff]   ;;  %v5010_v42 = vld [vmem:[%s5764_s1 + $0xe8] ss:$16 sps:$4 sm:$0xff]  }
  0xeb   : > { %1442 = vmatprep.subr.bf16.mxu1 %v4940_v2  ;;  %v4944_v6 = vld [vmem:[%s5764_s1 + $0xc4] ss:$16 sps:$4 sm:$0xff]   ;;  %1250 = vmatpush1.bf16.msra.mxu0 %v4942_v4  ;;  %v4948_v8 = vld [vmem:[%s5764_s1 + $0xc0] ss:$16 sps:$4 sm:$0xff]   ;;  %v5012_v43 = vld [vmem:[%s5764_s1 + $0xec] ss:$16 sps:$4 sm:$0xff]  }
  0xec   : > { %1443 = vmatpush1.bf16.msra.mxu1 %v4943_v5  ;;  %v4946_v7 = vld [vmem:[%s5764_s1 + $0x2c4] ss:$16 sps:$4 sm:$0xff]   ;;  %1251 = vmatprep.subr.bf16.mxu0 %v4944_v6  ;;  %v4949_v9 = vld [vmem:[%s5764_s1 + $0x2c0] ss:$16 sps:$4 sm:$0xff]   ;;  %v518_v44 = vld [vmem:[%s5756_s21 + $0x58] sm:$0xff]  ;;  %s7983_s29 = sld [smem:[#allocation20_spill]] }
  0xed   : > { %1444 = vmatprep.subr.bf16.mxu1 %v4946_v7  ;;  %v4950_v10 = vld [vmem:[%s5764_s1 + $0xa4] ss:$16 sps:$4 sm:$0xff]   ;;  %v4954_v12 = vld [vmem:[%s5764_s1 + $0xa0] ss:$16 sps:$4 sm:$0xff]   ;;  %v508_v45 = vld [vmem:[%s5756_s21 + $0x8] sm:$0xff] }
  0xee   : > { %v4952_v11 = vld [vmem:[%s5764_s1 + $0x2a4] ss:$16 sps:$4 sm:$0xff]   ;;  %v4955_v13 = vld [vmem:[%s5764_s1 + $0x2a0] ss:$16 sps:$4 sm:$0xff]   ;;  %v5018_v51 = vld [vmem:[%s5764_s1 + $0xcc] ss:$16 sps:$4 sm:$0xff]  }
  0xef   : > { %1252 = vmatpush1.bf16.msra.mxu0 %v4948_v8  ;;  %v4956_v14 = vld [vmem:[%s5764_s1 + $0x84] ss:$16 sps:$4 sm:$0xff]   ;;  %v4960_v16 = vld [vmem:[%s5764_s1 + $0x80] ss:$16 sps:$4 sm:$0xff]   ;;  %v5016_v53 = vld [vmem:[%s5764_s1 + $0xc8] ss:$16 sps:$4 sm:$0xff]  }
  0xf0   : > { %1445 = vmatpush1.bf16.msra.mxu1 %v4949_v9  ;;  %1253 = vmatprep.subr.bf16.mxu0 %v4950_v10  ;;  %v4958_v15 = vld [vmem:[%s5764_s1 + $0x284] ss:$16 sps:$4 sm:$0xff]   ;;  %v4961_v17 = vld [vmem:[%s5764_s1 + $0x280] ss:$16 sps:$4 sm:$0xff]   ;;  %v5021_v54 = vld [vmem:[%s5764_s1 + $0xac] ss:$16 sps:$4 sm:$0xff]  }
  0xf1   : > { %1446 = vmatprep.subr.bf16.mxu1 %v4952_v11  ;;  %v4962_v18 = vld [vmem:[%s5764_s1 + $0x64] ss:$16 sps:$4 sm:$0xff]   ;;  %v4966_v20 = vld [vmem:[%s5764_s1 + $0x60] ss:$16 sps:$4 sm:$0xff]   ;;  %v524_v57 = vld [vmem:[%s5756_s21 + $0x88] sm:$0xff] }
  0xf2   : > { %v4964_v19 = vld [vmem:[%s5764_s1 + $0x264] ss:$16 sps:$4 sm:$0xff]   ;;  %v4967_v21 = vld [vmem:[%s5764_s1 + $0x260] ss:$16 sps:$4 sm:$0xff]   ;;  %v5019_v59 = vld [vmem:[%s5764_s1 + $0xa8] ss:$16 sps:$4 sm:$0xff]  }
  0xf3   : > { %1254 = vmatpush1.bf16.msra.mxu0 %v4954_v12  ;;  %v4968_v22 = vld [vmem:[%s5764_s1 + $0x44] ss:$16 sps:$4 sm:$0xff]   ;;  %v4972_v24 = vld [vmem:[%s5764_s1 + $0x40] ss:$16 sps:$4 sm:$0xff]   ;;  %v5027_v62 = vld [vmem:[%s5764_s1 + $0x8c] ss:$16 sps:$4 sm:$0xff]  }
  0xf4   : > { %1447 = vmatpush1.bf16.msra.mxu1 %v4955_v13  ;;  %1255 = vmatprep.subr.bf16.mxu0 %v4956_v14  ;;  %v4970_v23 = vld [vmem:[%s5764_s1 + $0x244] ss:$16 sps:$4 sm:$0xff]   ;;  %v4973_v25 = vld [vmem:[%s5764_s1 + $0x240] ss:$16 sps:$4 sm:$0xff]   ;;  %v5025_v0 = vld [vmem:[%s5764_s1 + $0x88] ss:$16 sps:$4 sm:$0xff]  }
  0xf5   : > { %1448 = vmatprep.subr.bf16.mxu1 %v4958_v15  ;;  %v4974_v26 = vld [vmem:[%s5764_s1 + $0x24] ss:$16 sps:$4 sm:$0xff]   ;;  %v4978_v28 = vld [vmem:[%s5764_s1 + $0x20] ss:$16 sps:$4 sm:$0xff]   ;;  %v5030_v1 = vld [vmem:[%s5764_s1 + $0x6c] ss:$16 sps:$4 sm:$0xff]  }
  0xf6   : > { %v4976_v27 = vld [vmem:[%s5764_s1 + $0x224] ss:$16 sps:$4 sm:$0xff]   ;;  %v4979_v29 = vld [vmem:[%s5764_s1 + $0x220] ss:$16 sps:$4 sm:$0xff]   ;;  %v530_v5 = vld [vmem:[%s5756_s21 + $0xb8] sm:$0xff]  ;;  %p4555_p6 = scmp.ne.s32.totalorder %s7983_s29, 2 }
  0xf7   : > { %1256 = vmatpush1.bf16.msra.mxu0 %v4960_v16  ;;  %v4980_v30 = vld [vmem:[%s5764_s1 + $0x4] ss:$16 sps:$4 sm:$0xff]   ;;  %v4984_v32 = vld [vmem:[%s5764_s1] ss:$16 sps:$4 sm:$0xff]   ;;  %v5028_v7 = vld [vmem:[%s5764_s1 + $0x68] ss:$16 sps:$4 sm:$0xff]  }
  0xf8   : > { %1449 = vmatpush1.bf16.msra.mxu1 %v4961_v17  ;;  %1257 = vmatprep.subr.bf16.mxu0 %v4962_v18  ;;  %v4982_v31 = vld [vmem:[%s5764_s1 + $0x204] ss:$16 sps:$4 sm:$0xff]   ;;  %v4985_v33 = vld [vmem:[%s5764_s1 + $0x200] ss:$16 sps:$4 sm:$0xff]   ;;  %v5036_v10 = vld [vmem:[%s5764_s1 + $0x4c] ss:$16 sps:$4 sm:$0xff]  }
  0xf9   : > { %1450 = vmatprep.subr.bf16.mxu1 %v4964_v19  ;;  %v509_v34 = vld [vmem:[%s5756_s21 + $0x10] sm:$0xff]  ;;  %v515_v41 = vld [vmem:[%s5756_s21 + $0x40] sm:$0xff]  ;;  %v5034_v12 = vld [vmem:[%s5764_s1 + $0x48] ss:$16 sps:$4 sm:$0xff]  }
  0xfa   : > { %v4986_v36 = vld [vmem:[%s5764_s1 + $0x1e4] ss:$16 sps:$4 sm:$0xff]   ;;  %v5918_v37 = vpack.c.bf16 %v512_v35, %v509_v34  ;;  %v4988_v38 = vld [vmem:[%s5764_s1 + $0x1e0] ss:$16 sps:$4 sm:$0xff]   ;;  %v5934_v49 = vpack.c.bf16 %v518_v44, %v515_v41  ;;  %v510_v15 = vld [vmem:[%s5756_s21 + $0x18] sm:$0xff] }
  0xfb   : > { %1258 = vmatpush1.bf16.msra.mxu0 %v4966_v20  ;;  %v4989_v39 = vld [vmem:[%s5764_s1 + $0x1c4] ss:$16 sps:$4 sm:$0xff]   ;;  %v4991_v40 = vld [vmem:[%s5764_s1 + $0x1c0] ss:$16 sps:$4 sm:$0xff]   ;;  %v5039_v16 = vld [vmem:[%s5764_s1 + $0x2c] ss:$16 sps:$4 sm:$0xff]  }
  0xfc   : > { %1451 = vmatpush1.bf16.msra.mxu1 %v4967_v21  ;;  %1259 = vmatprep.subr.bf16.mxu0 %v4968_v22  ;;  %v511_v46 = vld [vmem:[%s5756_s21 + $0x20] sm:$0xff]  ;;  %v521_v56 = vld [vmem:[%s5756_s21 + $0x70] sm:$0xff]  ;;  %v536_v18 = vld [vmem:[%s5756_s21 + $0xe8] sm:$0xff] }
  0xfd   : > { %1452 = vmatprep.subr.bf16.mxu1 %v4970_v23  ;;  %v4992_v47 = vld [vmem:[%s5764_s1 + $0x1a4] ss:$16 sps:$4 sm:$0xff]   ;;  %v5932_v48 = vpack.c.bf16 %v511_v46, %v508_v45  ;;  %v4994_v50 = vld [vmem:[%s5764_s1 + $0x1a0] ss:$16 sps:$4 sm:$0xff]   ;;  %v5949_v60 = vpack.c.bf16 %v524_v57, %v521_v56  ;;  %v5015_v19 = vld [vmem:[%s5764_s1 + $0x2ec] ss:$16 sps:$4 sm:$0xff]  }
  0xfe   : > { %v4995_v52 = vld [vmem:[%s5764_s1 + $0x184] ss:$16 sps:$4 sm:$0xff]   ;;  %v4997_v55 = vld [vmem:[%s5764_s1 + $0x180] ss:$16 sps:$4 sm:$0xff]   ;;  %v514_v20 = vld [vmem:[%s5756_s21 + $0x38] sm:$0xff] }
  0xff   : > { %1260 = vmatpush1.bf16.msra.mxu0 %v4972_v24  ;;  %1281 = vmatprep.mubr.bf16.mxu0 %v5932_v48  ;;  %v4998_v58 = vld [vmem:[%s5764_s1 + $0x164] ss:$16 sps:$4 sm:$0xff]   ;;  %v5000_v61 = vld [vmem:[%s5764_s1 + $0x160] ss:$16 sps:$4 sm:$0xff]   ;;  %v5037_v22 = vld [vmem:[%s5764_s1 + $0x28] ss:$16 sps:$4 sm:$0xff]  }
 0x100   : > { %1453 = vmatpush1.bf16.msra.mxu1 %v4973_v25  ;;  %1261 = vmatprep.subr.bf16.mxu0 %v4974_v26  ;;  %v5001_v63 = vld [vmem:[%s5764_s1 + $0x144] ss:$16 sps:$4 sm:$0xff]   ;;  %v5003_v2 = vld [vmem:[%s5764_s1 + $0x140] ss:$16 sps:$4 sm:$0xff]   ;;  %v5013_v25 = vld [vmem:[%s5764_s1 + $0x2e8] ss:$16 sps:$4 sm:$0xff]  }
 0x101   : > { %1454 = vmatprep.subr.bf16.mxu1 %v4976_v27  ;;  %v527_v4 = vld [vmem:[%s5756_s21 + $0xa0] sm:$0xff]  ;;  %v533_v17 = vld [vmem:[%s5756_s21 + $0xd0] sm:$0xff]  ;;  %v5045_v27 = vld [vmem:[%s5764_s1 + $0xc] ss:$16 sps:$4 sm:$0xff]  }
 0x102   : > { %v5004_v6 = vld [vmem:[%s5764_s1 + $0x124] ss:$16 sps:$4 sm:$0xff]   ;;  %v5963_v8 = vpack.c.bf16 %v530_v5, %v527_v4  ;;  %v5006_v9 = vld [vmem:[%s5764_s1 + $0x120] ss:$16 sps:$4 sm:$0xff]   ;;  %v5983_v24 = vpack.c.bf16 %v536_v18, %v533_v17  ;;  %v542_v34 = vld [vmem:[%s5756_s21 + $0x118] sm:$0xff] }
 0x103   : > { %1262 = vmatpush1.bf16.msra.mxu0 %v4978_v28  ;;  %v5007_v11 = vld [vmem:[%s5764_s1 + $0x104] ss:$16 sps:$4 sm:$0xff]   ;;  %v5009_v13 = vld [vmem:[%s5764_s1 + $0x100] ss:$16 sps:$4 sm:$0xff]   ;;  %v5024_v28 = vld [vmem:[%s5764_s1 + $0x2cc] ss:$16 sps:$4 sm:$0xff]  }
 0x104   : > { %1455 = vmatpush1.bf16.msra.mxu1 %v4979_v29  ;;  %1263 = vmatprep.subr.bf16.mxu0 %v4980_v30  ;;  %v507_v14 = vld [vmem:[%s5756_s21] sm:$0xff]  ;;  %v517_v21 = vld [vmem:[%s5756_s21 + $0x50] sm:$0xff]  ;;  %v5043_v30 = vld [vmem:[%s5764_s1 + $0x8] ss:$16 sps:$4 sm:$0xff]  }
 0x105   : > { %1456 = vmatprep.subr.bf16.mxu1 %v4982_v31  ;;  %v5981_v23 = vpack.c.bf16 %v510_v15, %v507_v14  ;;  %v5986_v26 = vpack.c.bf16 %v517_v21, %v514_v20  ;;  %v513_v29 = vld [vmem:[%s5756_s21 + $0x30] sm:$0xff]  ;;  %v516_v31 = vld [vmem:[%s5756_s21 + $0x48] sm:$0xff]  ;;  %v519_v46 = vld [vmem:[%s5756_s21 + $0x60] sm:$0xff] }
 0x106   : > { %v5022_v35 = vld [vmem:[%s5764_s1 + $0x2c8] ss:$16 sps:$4 sm:$0xff]   ;;  %v6005_v41 = vpack.c.bf16 %v516_v31, %v513_v29  ;;  %v5054_v45 = vld [vmem:[%s5764_s1 + $0x1cc] ss:$16 sps:$4 sm:$0xff]   ;;  %v529_v56 = vld [vmem:[%s5756_s21 + $0xb0] sm:$0xff] }
 0x107   : > { %1264 = vmatpush1.bf16.msra.mxu0 %v4984_v32  ;;  %v5048_v32 = vld [vmem:[%s5764_s1 + $0x1ec] ss:$16 sps:$4 sm:$0xff]   ;;  %v5031_v44 = vld [vmem:[%s5764_s1 + $0x2a8] ss:$16 sps:$4 sm:$0xff]   ;;  %v525_v4 = vld [vmem:[%s5756_s21 + $0x90] sm:$0xff] }
 0x108   : > { %1457 = vmatpush1.bf16.msra.mxu1 %v4985_v33  ;;  %1265 = vmatprep.subr.bf16.mxu0 %v4986_v36  ;;  %v539_v33 = vld [vmem:[%s5756_s21 + $0x100] sm:$0xff]  ;;  %v520_v36 = vld [vmem:[%s5756_s21 + $0x68] sm:$0xff]  ;;  %v541_v31 = vld [vmem:[%s5756_s21 + $0x110] sm:$0xff] }
 0x109   : > { %1635 = vmatprep.subr.bf16.mxu1 %v5012_v43  ;;  %v5040_v57 = vld [vmem:[%s5764_s1 + $0x288] ss:$16 sps:$4 sm:$0xff]   ;;  %v5066_v5 = vld [vmem:[%s5764_s1 + $0x24c] ss:$16 sps:$4 sm:$0xff]  }
 0x10a   : > { %v5061_v14 = vld [vmem:[%s5764_s1 + $0x168] ss:$16 sps:$4 sm:$0xff]   ;;  %v5069_v18 = vld [vmem:[%s5764_s1 + $0x14c] ss:$16 sps:$4 sm:$0xff]  }
 0x10b   : > { %1475 = vmatmul.mubr.bf16.vlgmr.msra.gmra.mxu1 %v5918_v37  ;;  %1266 = vmatpush2.bf16.msra.mxu0 %v4988_v38  ;;  %v523_v38 = vld [vmem:[%s5756_s21 + $0x80] sm:$0xff]  ;;  %v5076_v20 = vld [vmem:[%s5764_s1 + $0x228] ss:$16 sps:$4 sm:$0xff]   ;;  %v5078_v21 = vld [vmem:[%s5764_s1 + $0x22c] ss:$16 sps:$4 sm:$0xff]  }
 0x10c   : > { %1484 = vmatprep.mubr.bf16.mxu1 %v5487_v3  ;;  %1267 = vmatprep.subr.bf16.mxu0 %v4989_v39  ;;  %v5033_v39 = vld [vmem:[%s5764_s1 + $0x2ac] ss:$16 sps:$4 sm:$0xff]   ;;  %v6009_v43 = vpack.c.bf16 %v523_v38, %v520_v36 }
 0x10d   : > { %1636 = vmatpush1.bf16.msra.mxu1 %v5010_v42  ;;  %v6007_v42 = vpack.c.bf16 %v542_v34, %v539_v33  ;;  %v560_v29 = vld [vmem:[%s5756_s21 + $0x1a8] sm:$0xff] }
 0x10e   : > { %1637 = vmatprep.subr.bf16.mxu1 %v5018_v51  ;;  %v5052_v51 = vld [vmem:[%s5764_s1 + $0x1c8] ss:$16 sps:$4 sm:$0xff]   ;;  %v5081_v34 = vld [vmem:[%s5764_s1 + $0x20c] ss:$16 sps:$4 sm:$0xff]  }
 0x10f   : > { %1268 = vmatpush2.bf16.msra.mxu0 %v4991_v40  ;;  %v5046_v40 = vld [vmem:[%s5764_s1 + $0x1e8] ss:$16 sps:$4 sm:$0xff]  }
 0x110   : > { %1269 = vmatprep.subr.bf16.mxu0 %v4992_v47  ;;  %v522_v47 = vld [vmem:[%s5756_s21 + $0x78] sm:$0xff] }
 0x111   : > { %1638 = vmatpush1.bf16.msra.mxu1 %v5016_v53  ;;  %v5057_v53 = vld [vmem:[%s5764_s1 + $0x1ac] ss:$16 sps:$4 sm:$0xff]   ;;  %v5079_v33 = vld [vmem:[%s5764_s1 + $0x208] ss:$16 sps:$4 sm:$0xff]  }
 0x112   : > { %1639 = vmatprep.subr.bf16.mxu1 %v5021_v54  ;;  %v548_v54 = vld [vmem:[%s5756_s21 + $0x148] sm:$0xff] }
 0x113   : > { %1485 = vmatmul.mubr.bf16.gmra.mxu1 %v5934_v49  ;;  %1270 = vmatpush2.bf16.msra.mxu0 %v4994_v50  ;;  %v5042_v50 = vld [vmem:[%s5764_s1 + $0x28c] ss:$16 sps:$4 sm:$0xff]  }
 0x114   : > { %1494 = vmatprep.mubr.bf16.mxu1 %v5487_v3  ;;  %1271 = vmatprep.subr.bf16.mxu0 %v4995_v52  ;;  %v545_v52 = vld [vmem:[%s5756_s21 + $0x130] sm:$0xff] }
 0x115   : > { %1640 = vmatpush1.bf16.msra.mxu1 %v5019_v59  ;;  %v5055_v59 = vld [vmem:[%s5764_s1 + $0x1a8] ss:$16 sps:$4 sm:$0xff]  }
 0x116   : > { %1641 = vmatprep.subr.bf16.mxu1 %v5027_v62  ;;  %v6031_v62 = vpack.c.bf16 %v548_v54, %v545_v52  ;;  %v547_v52 = vld [vmem:[%s5756_s21 + $0x140] sm:$0xff] }
 0x117   : > { %1272 = vmatpush2.bf16.msra.mxu0 %v4997_v55  ;;  %v526_v55 = vld [vmem:[%s5756_s21 + $0x98] sm:$0xff] }
 0x118   : > { %1273 = vmatprep.subr.bf16.mxu0 %v4998_v58  ;;  %v5051_v58 = vld [vmem:[%s5764_s1 + $0x26c] ss:$16 sps:$4 sm:$0xff]  }
 0x119   : > { %1642 = vmatpush1.bf16.msra.mxu1 %v5025_v0  ;;  %v5049_v0 = vld [vmem:[%s5764_s1 + $0x268] ss:$16 sps:$4 sm:$0xff]  }
 0x11a   : > { %1643 = vmatprep.subr.bf16.mxu1 %v5030_v1  ;;  %v5058_v1 = vld [vmem:[%s5764_s1 + $0x188] ss:$16 sps:$4 sm:$0xff]  }
 0x11b   : > { %1495 = vmatmul.mubr.bf16.gmra.mxu1 %v5949_v60  ;;  %1274 = vmatpush2.bf16.msra.mxu0 %v5000_v61  ;;  %v6029_v61 = vpack.c.bf16 %v522_v47, %v519_v46  ;;  %v563_v46 = vld [vmem:[%s5756_s21 + $0x1c0] sm:$0xff]  ;;  %v566_v47 = vld [vmem:[%s5756_s21 + $0x1d8] sm:$0xff] }
 0x11c   : > { %1504 = vmatprep.mubr.bf16.mxu1 %v5487_v3  ;;  %1275 = vmatprep.subr.bf16.mxu0 %v5001_v63  ;;  %v6033_v63 = vpack.c.bf16 %v529_v56, %v526_v55  ;;  %v6097_v54 = vpack.c.bf16 %v566_v47, %v563_v46  ;;  %v543_v56 = vld [vmem:[%s5756_s21 + $0x120] sm:$0xff] }
 0x11d   : > { %1644 = vmatpush1.bf16.msra.mxu1 %v5028_v7  ;;  %v551_v7 = vld [vmem:[%s5756_s21 + $0x160] sm:$0xff] }
 0x11e   : > { %1645 = vmatprep.subr.bf16.mxu1 %v5036_v10  ;;  %v554_v10 = vld [vmem:[%s5756_s21 + $0x178] sm:$0xff]  ;;  %v567_v47 = vld [vmem:[%s5756_s21 + $0x1e0] sm:$0xff] }
 0x11f   : > { %1276 = vmatpush2.bf16.msra.mxu0 %v5003_v2  ;;  %v5060_v2 = vld [vmem:[%s5764_s1 + $0x18c] ss:$16 sps:$4 sm:$0xff]  }
 0x120   : > { %1277 = vmatprep.subr.bf16.mxu0 %v5004_v6  ;;  %v528_v6 = vld [vmem:[%s5756_s21 + $0xa8] sm:$0xff] }
 0x121   : > { %1646 = vmatpush1.bf16.msra.mxu1 %v5034_v12  ;;  %v535_v12 = vld [vmem:[%s5756_s21 + $0xe0] sm:$0xff]  ;;  %v6052_v15 = vpack.c.bf16 %v528_v6, %v525_v4  ;;  %v549_v6 = vld [vmem:[%s5756_s21 + $0x150] sm:$0xff] }
 0x122   : > { %1647 = vmatprep.subr.bf16.mxu1 %v5039_v16  ;;  %v6054_v16 = vpack.c.bf16 %v554_v10, %v551_v7  ;;  %v552_v7 = vld [vmem:[%s5756_s21 + $0x168] sm:$0xff]  ;;  %v578_v10 = vld [vmem:[%s5756_s21 + $0x238] sm:$0xff] }
 0x123   : > { %1505 = vmatmul.mubr.bf16.gmra.mxu1 %v5963_v8  ;;  %1278 = vmatpush2.bf16.msra.mxu0 %v5006_v9  ;;  %v5063_v9 = vld [vmem:[%s5764_s1 + $0x16c] ss:$16 sps:$4 sm:$0xff]  }
 0x124   : > { %1514 = vmatprep.mubr.bf16.mxu1 %v5487_v3  ;;  %1279 = vmatprep.subr.bf16.mxu0 %v5007_v11  ;;  %v532_v11 = vld [vmem:[%s5756_s21 + $0xc8] sm:$0xff] }
 0x125   : > { %1648 = vmatpush1.bf16.msra.mxu1 %v5037_v22  ;;  %v6056_v17 = vpack.c.bf16 %v535_v12, %v532_v11  ;;  %v531_v22 = vld [vmem:[%s5756_s21 + $0xc0] sm:$0xff]  ;;  %v556_v11 = vld [vmem:[%s5756_s21 + $0x188] sm:$0xff] }
 0x126   : > { %1649 = vmatprep.subr.bf16.mxu1 %v5045_v27  ;;  %v5072_v27 = vld [vmem:[%s5764_s1 + $0x12c] ss:$16 sps:$4 sm:$0xff]   ;;  %v559_v12 = vld [vmem:[%s5756_s21 + $0x1a0] sm:$0xff] }
 0x127   : > { %1280 = vmatpush2.bf16.msra.mxu0 %v5009_v13  ;;  %v5064_v13 = vld [vmem:[%s5764_s1 + $0x248] ss:$16 sps:$4 sm:$0xff]  }
 0x128   : > { %1828 = vmatprep.subr.bf16.mxu0 %v5015_v19  ;;  %v5067_v19 = vld [vmem:[%s5764_s1 + $0x148] ss:$16 sps:$4 sm:$0xff]  }
 0x129   : > { %1650 = vmatpush1.bf16.msra.mxu1 %v5043_v30  ;;  %v538_v30 = vld [vmem:[%s5756_s21 + $0xf8] sm:$0xff] }
 0x12a   : > { %1282 = vmatmul.mubr.bf16.vlgmr.msra.gmra.mxu0 %v5981_v23  ;;  %1651 = vmatprep.subr.bf16.mxu1 %v5048_v32  ;;  %v5070_v32 = vld [vmem:[%s5764_s1 + $0x128] ss:$16 sps:$4 sm:$0xff]   ;;  %v6080_v38 = vpack.c.bf16 %v541_v31, %v538_v30  ;;  %v561_v31 = vld [vmem:[%s5756_s21 + $0x1b0] sm:$0xff] }
 0x12b   : > { %1515 = vmatmul.mubr.bf16.gmra.mxu1 %v5983_v24  ;;  %1829 = vmatpush1.bf16.msra.mxu0 %v5013_v25  ;;  %v534_v25 = vld [vmem:[%s5756_s21 + $0xd8] sm:$0xff] }
 0x12c   : > { %1291 = vmatprep.mubr.bf16.mxu0 %v5986_v26  ;;  %1524 = vmatprep.mubr.bf16.mxu1 %v5487_v3 }
 0x12d   : > { %1830 = vmatprep.subr.bf16.mxu0 %v5024_v28  ;;  %1652 = vmatpush2.bf16.msra.mxu1 %v5046_v40  ;;  %v557_v28 = vld [vmem:[%s5756_s21 + $0x190] sm:$0xff]  ;;  %v5075_v40 = vld [vmem:[%s5764_s1 + $0x10c] ss:$16 sps:$4 sm:$0xff]  }
 0x12e   : > { %1653 = vmatprep.subr.bf16.mxu1 %v5054_v45  ;;  %v6078_v36 = vpack.c.bf16 %v560_v29, %v557_v28  ;;  %v540_v45 = vld [vmem:[%s5756_s21 + $0x108] sm:$0xff] }
 0x12f   : > { %1831 = vmatpush1.bf16.msra.mxu0 %v5022_v35  ;;  %v6076_v35 = vpack.c.bf16 %v534_v25, %v531_v22  ;;  %v584_v22 = vld [vmem:[%s5756_s21 + $0x268] sm:$0xff]  ;;  %v562_v25 = vld [vmem:[%s5756_s21 + $0x1b8] sm:$0xff] }
 0x130   : > { %1832 = vmatprep.subr.bf16.mxu0 %v5033_v39  ;;  %v5073_v39 = vld [vmem:[%s5764_s1 + $0x108] ss:$16 sps:$4 sm:$0xff]  }
 0x131   : > { %1654 = vmatpush2.bf16.msra.mxu1 %v5052_v51  ;;  %v544_v51 = vld [vmem:[%s5756_s21 + $0x128] sm:$0xff] }
 0x132   : > { %1292 = vmatmul.mubr.bf16.gmra.mxu0 %v6005_v41  ;;  %1655 = vmatprep.subr.bf16.mxu1 %v5057_v53  ;;  %v6099_v55 = vpack.c.bf16 %v547_v52, %v544_v51  ;;  %v593_v51 = vld [vmem:[%s5756_s21 + $0x2b0] sm:$0xff]  ;;  %v596_v52 = vld [vmem:[%s5756_s21 + $0x2c8] sm:$0xff] }
 0x133   : > { %1525 = vmatmul.mubr.bf16.gmra.mxu1 %v6007_v42  ;;  %1301 = vmatprep.mubr.bf16.mxu0 %v6009_v43 }
 0x134   : > { %1534 = vmatprep.mubr.bf16.mxu1 %v5487_v3  ;;  %1833 = vmatpush1.bf16.msra.mxu0 %v5031_v44  ;;  %v537_v44 = vld [vmem:[%s5756_s21 + $0xf0] sm:$0xff] }
 0x135   : > { %1834 = vmatprep.subr.bf16.mxu0 %v5042_v50  ;;  %1656 = vmatpush2.bf16.msra.mxu1 %v5055_v59  ;;  %v5084_v50 = vld [vmem:[%s5773_s13 + $0xac] ss:$12 sps:$4 sm:$0xff]   ;;  %v6095_v53 = vpack.c.bf16 %v540_v45, %v537_v44  ;;  %v572_v59 = vld [vmem:[%s5756_s21 + $0x208] sm:$0xff] }
 0x136   : > { %1657 = vmatprep.subr.bf16.mxu1 %v5060_v2 }
 0x138   : > { %1835 = vmatpush1.bf16.msra.mxu0 %v5040_v57  ;;  %v546_v57 = vld [vmem:[%s5756_s21 + $0x138] sm:$0xff] }
 0x139   : > { %1836 = vmatprep.subr.bf16.mxu0 %v5051_v58  ;;  %1658 = vmatpush2.bf16.msra.mxu1 %v5058_v1  ;;  %v569_v58 = vld [vmem:[%s5756_s21 + $0x1f0] sm:$0xff]  ;;  %v6111_v2 = vpack.c.bf16 %v546_v57, %v543_v56  ;;  %v574_v56 = vld [vmem:[%s5756_s21 + $0x218] sm:$0xff] }
 0x13a   : > { %1302 = vmatmul.mubr.bf16.gmra.mxu0 %v6029_v61  ;;  %1659 = vmatprep.subr.bf16.mxu1 %v5063_v9  ;;  %v553_v1 = vld [vmem:[%s5756_s21 + $0x170] sm:$0xff]  ;;  %v6113_v4 = vpack.c.bf16 %v572_v59, %v569_v58  ;;  %v575_v9 = vld [vmem:[%s5756_s21 + $0x220] sm:$0xff]  ;;  %v6177_v59 = vpack.c.bf16 %v596_v52, %v593_v51 }
 0x13b   : > { %1535 = vmatmul.mubr.bf16.gmra.mxu1 %v6031_v62  ;;  %1311 = vmatprep.mubr.bf16.mxu0 %v6033_v63  ;;  %v577_v57 = vld [vmem:[%s5756_s21 + $0x230] sm:$0xff]  ;;  %v5085_v51 = vld [vmem:[%s5773_s13 + $0x90] ss:$12 sps:$4 sm:$0xff]  }
 0x13c   : > { %1544 = vmatprep.mubr.bf16.mxu1 %v5487_v3  ;;  %1837 = vmatpush1.bf16.msra.mxu0 %v5049_v0  ;;  %v550_v0 = vld [vmem:[%s5756_s21 + $0x158] sm:$0xff]  ;;  %v5090_v52 = vld [vmem:[%s5773_s13 + $0x7c] ss:$12 sps:$4 sm:$0xff]  }
 0x13d   : > { %1838 = vmatprep.subr.bf16.mxu0 %v5066_v5  ;;  %1660 = vmatpush2.bf16.msra.mxu1 %v5061_v14  ;;  %v6115_v5 = vpack.c.bf16 %v553_v1, %v550_v0  ;;  %v6129_v14 = vpack.c.bf16 %v578_v10, %v575_v9  ;;  %v6179_v0 = vpack.c.bf16 %v577_v57, %v574_v56  ;;  %v573_v1 = vld [vmem:[%s5756_s21 + $0x210] sm:$0xff]  ;;  %v602_v9 = vld [vmem:[%s5756_s21 + $0x2f8] sm:$0xff]  ;;  %v580_v10 = vld [vmem:[%s5756_s21 + $0x248] sm:$0xff] }
 0x13e   : > { %1661 = vmatprep.subr.bf16.mxu1 %v5069_v18  ;;  %v6131_v18 = vpack.c.bf16 %v559_v12, %v556_v11  ;;  %v583_v11 = vld [vmem:[%s5756_s21 + $0x260] sm:$0xff]  ;;  %v5093_v57 = vld [vmem:[%s5773_s13 + $0x64] ss:$12 sps:$4 sm:$0xff]  }
 0x13f   : > { %v5120_v12 = vld [vmem:[%s5773_s13 + $0x22c] ss:$12 sps:$4 sm:$0xff]  }
 0x140   : > { %1839 = vmatpush1.bf16.msra.mxu0 %v5064_v13  ;;  %v6127_v13 = vpack.c.bf16 %v552_v7, %v549_v6  ;;  %v576_v6 = vld [vmem:[%s5756_s21 + $0x228] sm:$0xff]  ;;  %v599_v7 = vld [vmem:[%s5756_s21 + $0x2e0] sm:$0xff] }
 0x141   : > { %1840 = vmatprep.subr.bf16.mxu0 %v5078_v21  ;;  %1662 = vmatpush2.bf16.msra.mxu1 %v5067_v19  ;;  %v555_v19 = vld [vmem:[%s5756_s21 + $0x180] sm:$0xff]  ;;  %v581_v21 = vld [vmem:[%s5756_s21 + $0x250] sm:$0xff] }
 0x142   : > { %1312 = vmatmul.mubr.bf16.gmra.mxu0 %v6052_v15  ;;  %1663 = vmatprep.subr.bf16.mxu1 %v5072_v27  ;;  %v565_v27 = vld [vmem:[%s5756_s21 + $0x1d0] sm:$0xff]  ;;  %v6145_v29 = vpack.c.bf16 %v584_v22, %v581_v21  ;;  %v6196_v21 = vpack.c.bf16 %v583_v11, %v580_v10  ;;  %v579_v22 = vld [vmem:[%s5756_s21 + $0x240] sm:$0xff] }
 0x143   : > { %1545 = vmatmul.mubr.bf16.gmra.mxu1 %v6054_v16  ;;  %1321 = vmatprep.mubr.bf16.mxu0 %v6056_v17  ;;  %v6147_v30 = vpack.c.bf16 %v565_v27, %v562_v25  ;;  %v582_v25 = vld [vmem:[%s5756_s21 + $0x258] sm:$0xff]  ;;  %v5091_v10 = vld [vmem:[%s5773_s13 + $0x60] ss:$12 sps:$4 sm:$0xff]  }
 0x144   : > { %1554 = vmatprep.mubr.bf16.mxu1 %v5487_v3  ;;  %1841 = vmatpush1.bf16.msra.mxu0 %v5076_v20  ;;  %v558_v20 = vld [vmem:[%s5756_s21 + $0x198] sm:$0xff]  ;;  %v5096_v11 = vld [vmem:[%s5773_s13 + $0x4c] ss:$12 sps:$4 sm:$0xff]  }
 0x145   : > { %1842 = vmatprep.subr.bf16.mxu0 %v5081_v34  ;;  %1664 = vmatpush2.bf16.msra.mxu1 %v5070_v32  ;;  %v6143_v28 = vpack.c.bf16 %v558_v20, %v555_v19  ;;  %v564_v32 = vld [vmem:[%s5756_s21 + $0x1c8] sm:$0xff]  ;;  %v590_v34 = vld [vmem:[%s5756_s21 + $0x298] sm:$0xff]  ;;  %v6192_v19 = vpack.c.bf16 %v576_v6, %v573_v1  ;;  %v6194_v20 = vpack.c.bf16 %v602_v9, %v599_v7  ;;  %v591_v1 = vld [vmem:[%s5756_s21 + $0x2a0] sm:$0xff] }
 0x146   : > { %1665 = vmatprep.subr.bf16.mxu1 %v5075_v40  ;;  %v571_v40 = vld [vmem:[%s5756_s21 + $0x200] sm:$0xff]  ;;  %v6159_v44 = vpack.c.bf16 %v564_v32, %v561_v31  ;;  %v586_v27 = vld [vmem:[%s5756_s21 + $0x278] sm:$0xff]  ;;  %v589_v31 = vld [vmem:[%s5756_s21 + $0x290] sm:$0xff]  ;;  %v6206_v32 = vpack.c.bf16 %v582_v25, %v579_v22 }
 0x147   : > { %v594_v6 = vld [vmem:[%s5756_s21 + $0x2b8] sm:$0xff]  ;;  %v601_v9 = vld [vmem:[%s5756_s21 + $0x2f0] sm:$0xff] }
 0x148   : > { %1843 = vmatpush1.bf16.msra.mxu0 %v5079_v33  ;;  %v587_v33 = vld [vmem:[%s5756_s21 + $0x280] sm:$0xff]  ;;  %v598_v7 = vld [vmem:[%s5756_s21 + $0x2d8] sm:$0xff]  ;;  %v597_v25 = vld [vmem:[%s5756_s21 + $0x2d0] sm:$0xff] }
 0x149   : > { %1666 = vmatpush2.bf16.msra.mxu1 %v5073_v39  ;;  %v568_v39 = vld [vmem:[%s5756_s21 + $0x1e8] sm:$0xff]  ;;  %v6161_v45 = vpack.c.bf16 %v590_v34, %v587_v33  ;;  %3142 = vmatprep.subr.bf16.mxu0 %v5120_v12  ;;  %v6208_v33 = vpack.c.bf16 %v589_v31, %v586_v27  ;;  %v5082_v34 = vld [vmem:[%s5773_s13 + $0xa8] ss:$12 sps:$4 sm:$0xff]   ;;  %v6238_v12 = vpack.c.bf16 %v594_v6, %v591_v1  ;;  %v5097_v31 = vld [vmem:[%s5773_s13 + $0x30] ss:$12 sps:$4 sm:$0xff]  }
 0x14a   : > { %1322 = vmatmul.mubr.bf16.gmra.mxu0 %v6076_v35  ;;  %2949 = vmatprep.subr.bf16.mxu1 %v5084_v50  ;;  %v6163_v46 = vpack.c.bf16 %v571_v40, %v568_v39  ;;  %v570_v50 = vld [vmem:[%s5756_s21 + $0x1f8] sm:$0xff]  ;;  %v588_v40 = vld [vmem:[%s5756_s21 + $0x288] sm:$0xff] }
 0x14b   : > { %1555 = vmatmul.mubr.bf16.gmra.mxu1 %v6078_v36  ;;  %1331 = vmatprep.mubr.bf16.mxu0 %v6080_v38  ;;  %v6175_v58 = vpack.c.bf16 %v570_v50, %v567_v47  ;;  %v5087_v39 = vld [vmem:[%s5773_s13 + $0x94] ss:$12 sps:$4 sm:$0xff]   ;;  %v595_v50 = vld [vmem:[%s5756_s21 + $0x2c0] sm:$0xff]  ;;  %v5141_v1 = vld [vmem:[%s5773_s13 + $0x1e4] ss:$12 sps:$4 sm:$0xff]  }
 0x14c   : > { %1564 = vmatprep.mubr.bf16.mxu1 %v5487_v3  ;;  %v592_v47 = vld [vmem:[%s5756_s21 + $0x2a8] sm:$0xff]  ;;  %v5094_v22 = vld [vmem:[%s5773_s13 + $0x48] ss:$12 sps:$4 sm:$0xff]  }
 0x14d   : > { %v600_v27 = vld [vmem:[%s5756_s21 + $0x2e8] sm:$0xff] }
 0x14e   : > { %v5115_v6 = vld [vmem:[%s5773_s13 + $0x120] ss:$12 sps:$4 sm:$0xff]  }
 0x152   : > { %1332 = vmatmul.mubr.bf16.gmra.mxu0 %v6095_v53 }
 0x153   : > { %1565 = vmatmul.mubr.bf16.gmra.mxu1 %v6097_v54  ;;  %1341 = vmatprep.mubr.bf16.mxu0 %v6099_v55 }
 0x154   : > { %1574 = vmatprep.mubr.bf16.mxu1 %v5487_v3 }
 0x15a   : > { %1342 = vmatmul.mubr.bf16.gmra.mxu0 %v6111_v2 }
 0x15b   : > { %1575 = vmatmul.mubr.bf16.gmra.mxu1 %v6113_v4  ;;  %1351 = vmatprep.mubr.bf16.mxu0 %v6115_v5 }
 0x15c   : > { %1584 = vmatprep.mubr.bf16.mxu1 %v5487_v3 }
 0x162   : > { %1352 = vmatmul.mubr.bf16.gmra.mxu0 %v6127_v13 }
 0x163   : > { %1585 = vmatmul.mubr.bf16.gmra.mxu1 %v6129_v14  ;;  %1361 = vmatprep.mubr.bf16.mxu0 %v6131_v18 }
 0x164   : > { %1594 = vmatprep.mubr.bf16.mxu1 %v5487_v3 }
 0x16a   : > { %1362 = vmatmul.mubr.bf16.gmra.mxu0 %v6143_v28 }
 0x16b   : > { %1595 = vmatmul.mubr.bf16.gmra.mxu1 %v6145_v29  ;;  %1371 = vmatprep.mubr.bf16.mxu0 %v6147_v30 }
 0x16c   : > { %1604 = vmatprep.mubr.bf16.mxu1 %v5487_v3 }
 0x172   : > { %1372 = vmatmul.mubr.bf16.gmra.mxu0 %v6159_v44 }
 0x173   : > { %1605 = vmatmul.mubr.bf16.gmra.mxu1 %v6161_v45  ;;  %1381 = vmatprep.mubr.bf16.mxu0 %v6163_v46 }
 0x174   : > { %1614 = vmatprep.mubr.bf16.mxu1 %v5487_v3 }
 0x17a   : > { %1382 = vmatmul.mubr.bf16.gmra.mxu0 %v6175_v58 }
 0x17b   : > { %1615 = vmatmul.mubr.bf16.gmra.mxu1 %v6177_v59  ;;  %1391 = vmatprep.mubr.bf16.mxu0 %v6179_v0 }
 0x17c   : > { %1624 = vmatprep.mubr.bf16.mxu1 %v5487_v3 }
 0x182   : > { %1392 = vmatmul.mubr.bf16.gmra.mxu0 %v6192_v19 }
 0x183   : > { %1625 = vmatmul.mubr.bf16.gmra.mxu1 %v6194_v20  ;;  %1401 = vmatprep.mubr.bf16.mxu0 %v6196_v21 }
 0x184   : > { %1667 = vmatprep.mubr.bf16.mxu1 %v5932_v48  ;;  %v585_v48 = vld [vmem:[%s5756_s21 + $0x270] sm:$0xff] }
 0x185   : > { %v6222_v56 = vpack.c.bf16 %v588_v40, %v585_v48  ;;  %v5100_v48 = vld [vmem:[%s5773_s13 + $0x18] ss:$12 sps:$4 sm:$0xff]  }
 0x186   : > { %v5108_v40 = vld [vmem:[%s5773_s13 + $0x16c] ss:$12 sps:$4 sm:$0xff]  }
 0x18a   : > { %1402 = vmatmul.mubr.bf16.gmra.mxu0 %v6206_v32 }
 0x18b   : > { %1668 = vmatmul.mubr.bf16.vlgmr.msra.gmra.mxu1 %v5981_v23  ;;  %1411 = vmatprep.mubr.bf16.mxu0 %v6208_v33  ;;  %v6224_v23 = vpack.c.bf16 %v595_v50, %v592_v47  ;;  %v5106_v47 = vld [vmem:[%s5773_s13 + $0x168] ss:$12 sps:$4 sm:$0xff]  }
 0x18c   : > { %1677 = vmatprep.mubr.bf16.mxu1 %v5986_v26  ;;  %2950 = vmatpush1.bf16.msra.mxu1 %v5082_v34  ;;  %v5088_v26 = vld [vmem:[%s5773_s13 + $0x78] ss:$12 sps:$4 sm:$0xff]   ;;  %v5102_v34 = vld [vmem:[%s5773_s13 + $0x1c] ss:$12 sps:$4 sm:$0xff]  }
 0x18d   : > { %2951 = vmatprep.subr.bf16.mxu1 %v5087_v39  ;;  %v6252_v39 = vpack.c.bf16 %v600_v27, %v597_v25  ;;  %v5118_v50 = vld [vmem:[%s5773_s13 + $0x228] ss:$12 sps:$4 sm:$0xff]  }
 0x18e   : > { %v5132_v25 = vld [vmem:[%s5773_s13 + $0xdc] ss:$12 sps:$4 sm:$0xff]  }
 0x18f   : > { %v5150_v27 = vld [vmem:[%s5773_s13 + $0x19c] ss:$12 sps:$4 sm:$0xff]  }
 0x190   : > { %2952 = vmatpush1.bf16.msra.mxu1 %v5085_v51  ;;  %v5111_v51 = vld [vmem:[%s5773_s13 + $0x154] ss:$12 sps:$4 sm:$0xff]  }
 0x191   : > { %2953 = vmatprep.subr.bf16.mxu1 %v5090_v52  ;;  %v5129_v52 = vld [vmem:[%s5773_s13 + $0x214] ss:$12 sps:$4 sm:$0xff]  }
 0x192   : > { %1412 = vmatmul.mubr.bf16.gmra.mxu0 %v6222_v56 }
 0x193   : > { %1678 = vmatmul.mubr.bf16.gmra.mxu1 %v6005_v41  ;;  %1421 = vmatprep.mubr.bf16.mxu0 %v6224_v23  ;;  %v6240_v41 = vpack.c.bf16 %v601_v9, %v598_v7  ;;  %v5139_v7 = vld [vmem:[%s5773_s13 + $0x1e0] ss:$12 sps:$4 sm:$0xff]  }
 0x194   : > { %1687 = vmatprep.mubr.bf16.mxu1 %v6009_v43  ;;  %2954 = vmatpush1.bf16.msra.mxu1 %v5088_v26  ;;  %v5099_v43 = vld [vmem:[%s5773_s13 + $0x34] ss:$12 sps:$4 sm:$0xff]   ;;  %v5114_v26 = vld [vmem:[%s5773_s13 + $0x13c] ss:$12 sps:$4 sm:$0xff]   ;;  %v5123_v9 = vld [vmem:[%s5773_s13 + $0x10c] ss:$12 sps:$4 sm:$0xff]  }
 0x195   : > { %2955 = vmatprep.subr.bf16.mxu1 %v5093_v57  ;;  %v5138_v57 = vld [vmem:[%s5773_s13 + $0x1fc] ss:$12 sps:$4 sm:$0xff]  }
 0x198   : > { %2956 = vmatpush1.bf16.msra.mxu1 %v5091_v10  ;;  %v5144_v10 = vld [vmem:[%s5773_s13 + $0x1cc] ss:$12 sps:$4 sm:$0xff]  }
 0x199   : > { %2957 = vmatprep.subr.bf16.mxu1 %v5096_v11  ;;  %v5147_v11 = vld [vmem:[%s5773_s13 + $0x1b4] ss:$12 sps:$4 sm:$0xff]  }
 0x19a   : > { %1422 = vmatmul.mubr.bf16.gmra.mxu0 %v6238_v12 }
 0x19b   : > { %1688 = vmatmul.mubr.bf16.gmra.mxu1 %v6029_v61  ;;  %1431 = vmatprep.mubr.bf16.mxu0 %v6240_v41  ;;  %v5105_v61 = vld [vmem:[%s5773_s13 + $0x4] ss:$12 sps:$4 sm:$0xff]  }
 0x19c   : > { %1697 = vmatprep.mubr.bf16.mxu1 %v6033_v63  ;;  %2958 = vmatpush1.bf16.msra.mxu1 %v5094_v22  ;;  %v5103_v63 = vld [vmem:[%s5773_s13] ss:$12 sps:$4 sm:$0xff]   ;;  %v5124_v22 = vld [vmem:[%s5773_s13 + $0xf0] ss:$12 sps:$4 sm:$0xff]  }
 0x19d   : > { %2959 = vmatprep.subr.bf16.mxu1 %v5099_v43  ;;  %v5145_v43 = vld [vmem:[%s5773_s13 + $0x1b0] ss:$12 sps:$4 sm:$0xff]  }
 0x1a0   : > { %2960 = vmatpush1.bf16.msra.mxu1 %v5097_v31  ;;  %v5153_v31 = vld [vmem:[%s5773_s13 + $0x184] ss:$12 sps:$4 sm:$0xff]  }
 0x1a1   : > { %2961 = vmatprep.subr.bf16.mxu1 %v5102_v34  ;;  %v5133_v34 = vld [vmem:[%s5773_s13 + $0xc0] ss:$12 sps:$4 sm:$0xff]  }
 0x1a2   : > { %1432 = vmatmul.mubr.bf16.gmra.mxu0 %v6252_v39 }
 0x1a3   : > { %1698 = vmatmul.mubr.bf16.gmra.mxu1 %v6052_v15  ;;  %1860 = vmatprep.mubr.bf16.mxu0 %v5487_v3  ;;  %v5109_v15 = vld [vmem:[%s5773_s13 + $0x150] ss:$12 sps:$4 sm:$0xff]  }
 0x1a4   : > { %1707 = vmatprep.mubr.bf16.mxu1 %v6056_v17  ;;  %2962 = vmatpush1.bf16.msra.mxu1 %v5100_v48  ;;  %v5127_v17 = vld [vmem:[%s5773_s13 + $0x210] ss:$12 sps:$4 sm:$0xff]   ;;  %v5151_v48 = vld [vmem:[%s5773_s13 + $0x180] ss:$12 sps:$4 sm:$0xff]  }
 0x1a5   : > { %2963 = vmatprep.subr.bf16.mxu1 %v5105_v61  ;;  %v5156_v61 = vld [vmem:[%s5773_s13 + $0x2ec] ss:$12 sps:$4 sm:$0xff]  }
 0x1a8   : > { %2964 = vmatpush1.bf16.msra.mxu1 %v5103_v63  ;;  %v5154_v63 = vld [vmem:[%s5773_s13 + $0x2e8] ss:$12 sps:$4 sm:$0xff]  }
 0x1a9   : > { %2965 = vmatprep.subr.bf16.mxu1 %v5108_v40  ;;  %v5157_v40 = vld [vmem:[%s5773_s13 + $0x2d0] ss:$12 sps:$4 sm:$0xff]  }
 0x1aa   : > { %1861 = vmatmul.mubr.bf16.vlgmr.msra.gmra.mxu0 %v5918_v37  ;;  %v5136_v37 = vld [vmem:[%s5773_s13 + $0x1f8] ss:$12 sps:$4 sm:$0xff]  }
 0x1ab   : > { %1708 = vmatmul.mubr.bf16.gmra.mxu1 %v6076_v35  ;;  %1870 = vmatprep.mubr.bf16.mxu0 %v5487_v3  ;;  %v5112_v35 = vld [vmem:[%s5773_s13 + $0x138] ss:$12 sps:$4 sm:$0xff]  }
 0x1ac   : > { %1717 = vmatprep.mubr.bf16.mxu1 %v6080_v38  ;;  %2966 = vmatpush2.bf16.msra.mxu1 %v5106_v47  ;;  %v5117_v38 = vld [vmem:[%s5773_s13 + $0x124] ss:$12 sps:$4 sm:$0xff]   ;;  %v5162_v47 = vld [vmem:[%s5773_s13 + $0x2bc] ss:$12 sps:$4 sm:$0xff]  }
 0x1ad   : > { %3143 = vmatpush1.bf16.msra.mxu0 %v5118_v50  ;;  %2967 = vmatprep.subr.bf16.mxu1 %v5111_v51 }
 0x1ae   : > { %3144 = vmatprep.subr.bf16.mxu0 %v5129_v52  ;;  %v5163_v52 = vld [vmem:[%s5773_s13 + $0x2a0] ss:$12 sps:$4 sm:$0xff]  }
 0x1b0   : > { %2968 = vmatpush2.bf16.msra.mxu1 %v5109_v15  ;;  %v5165_v15 = vld [vmem:[%s5773_s13 + $0x2a4] ss:$12 sps:$4 sm:$0xff]  }
 0x1b1   : > { %3145 = vmatpush1.bf16.msra.mxu0 %v5127_v17  ;;  %2969 = vmatprep.subr.bf16.mxu1 %v5114_v26 }
 0x1b2   : > { %3146 = vmatprep.subr.bf16.mxu0 %v5138_v57  ;;  %1871 = vmatmul.mubr.bf16.gmra.mxu0 %v5934_v49  ;;  %v5142_v49 = vld [vmem:[%s5773_s13 + $0x1c8] ss:$12 sps:$4 sm:$0xff]   ;;  %v5168_v57 = vld [vmem:[%s5773_s13 + $0x28c] ss:$12 sps:$4 sm:$0xff]  }
 0x1b3   : > { %1718 = vmatmul.mubr.bf16.gmra.mxu1 %v6095_v53  ;;  %1880 = vmatprep.mubr.bf16.mxu0 %v5487_v3  ;;  %v5121_v53 = vld [vmem:[%s5773_s13 + $0x108] ss:$12 sps:$4 sm:$0xff]  }
 0x1b4   : > { %1727 = vmatprep.mubr.bf16.mxu1 %v6099_v55  ;;  %2970 = vmatpush2.bf16.msra.mxu1 %v5112_v35  ;;  %v5126_v55 = vld [vmem:[%s5773_s13 + $0xf4] ss:$12 sps:$4 sm:$0xff]   ;;  %v5169_v35 = vld [vmem:[%s5773_s13 + $0x170] ss:$12 sps:$4 sm:$0xff]  }
 0x1b5   : > { %3147 = vmatpush1.bf16.msra.mxu0 %v5136_v37  ;;  %2971 = vmatprep.subr.bf16.mxu1 %v5117_v38 }
 0x1b6   : > { %3148 = vmatprep.subr.bf16.mxu0 %v5141_v1  ;;  %v5173_v1 = vld [vmem:[%s5773_s13 + $0x274] ss:$12 sps:$4 sm:$0xff]  }
 0x1b8   : > { %2972 = vmatpush2.bf16.msra.mxu1 %v5115_v6 }
 0x1b9   : > { %3149 = vmatpush1.bf16.msra.mxu0 %v5139_v7  ;;  %2973 = vmatprep.subr.bf16.mxu1 %v5123_v9  ;;  %v749_v9 = vlaneseq }
 0x1ba   : > { %3150 = vmatprep.subr.bf16.mxu0 %v5144_v10  ;;  %1881 = vmatmul.mubr.bf16.gmra.mxu0 %v5949_v60  ;;  %v5148_v60 = vld [vmem:[%s5773_s13 + $0x198] ss:$12 sps:$4 sm:$0xff]  }
 0x1bb   : > { %1728 = vmatmul.mubr.bf16.gmra.mxu1 %v6111_v2  ;;  %1890 = vmatprep.mubr.bf16.mxu0 %v5487_v3  ;;  %v5130_v2 = vld [vmem:[%s5773_s13 + $0xd8] ss:$12 sps:$4 sm:$0xff]  }
 0x1bc   : > { %1737 = vmatprep.mubr.bf16.mxu1 %v6115_v5  ;;  %2974 = vmatpush2.bf16.msra.mxu1 %v5121_v53  ;;  %v5135_v5 = vld [vmem:[%s5773_s13 + $0xc4] ss:$12 sps:$4 sm:$0xff]   ;;  %v6377_v53 = vshrl.u32 %v749_v9, 7 }
 0x1bd   : > { %3151 = vmatpush1.bf16.msra.mxu0 %v5142_v49  ;;  %2975 = vmatprep.subr.bf16.mxu1 %v5126_v55  ;;  %v5174_v49 = vld [vmem:[%s5773_s13 + $0x258] ss:$12 sps:$4 sm:$0xff]   ;;  %v5176_v55 = vld [vmem:[%s5773_s13 + $0x25c] ss:$12 sps:$4 sm:$0xff]  }
 0x1be   : > { %3152 = vmatprep.subr.bf16.mxu0 %v5147_v11  ;;  %7907 = vst [vmem:[#allocation29_spill] sm:$0xff] %v6377_v53 }
 0x1c0   : > { %2976 = vmatpush2.bf16.msra.mxu1 %v5124_v22 }
 0x1c1   : > { %3153 = vmatpush1.bf16.msra.mxu0 %v5145_v43  ;;  %2977 = vmatprep.subr.bf16.mxu1 %v5132_v25 }
 0x1c2   : > { %3154 = vmatprep.subr.bf16.mxu0 %v5150_v27  ;;  %1891 = vmatmul.mubr.bf16.gmra.mxu0 %v5963_v8 }
 0x1c3   : > { %1738 = vmatmul.mubr.bf16.gmra.mxu1 %v6127_v13  ;;  %1900 = vmatprep.mubr.bf16.mxu0 %v5487_v3  ;;  %v5159_v13 = vld [vmem:[%s5773_s13 + $0x2d4] ss:$12 sps:$4 sm:$0xff]  }
 0x1c4   : > { %1747 = vmatprep.mubr.bf16.mxu1 %v6131_v18  ;;  %2978 = vmatpush2.bf16.msra.mxu1 %v5130_v2 }
 0x1c5   : > { %3155 = vmatpush1.bf16.msra.mxu0 %v5148_v60  ;;  %2979 = vmatprep.subr.bf16.mxu1 %v5135_v5  ;;  %v5179_v60 = vld [vmem:[%s5773_s13 + $0x240] ss:$12 sps:$4 sm:$0xff]   ;;  %v5181_v5 = vld [vmem:[%s5773_s13 + $0x244] ss:$12 sps:$4 sm:$0xff]  }
 0x1c6   : > { %3156 = vmatprep.subr.bf16.mxu0 %v5153_v31 }
 0x1c8   : > { %2980 = vmatpush2.bf16.msra.mxu1 %v5133_v34 }
 0x1c9   : > { %3157 = vmatpush1.bf16.msra.mxu0 %v5151_v48  ;;  %4567 = vmatprep.subr.bf16.mxu1 %v5169_v35 }
 0x1ca   : > { %3158 = vmatprep.subr.bf16.mxu0 %v5156_v61  ;;  %1901 = vmatmul.mubr.bf16.gmra.mxu0 %v5983_v24 }
 0x1cb   : > { %v6311_v8 = vpop.f32.mrf.mxu1  ;;  %1748 = vmatmul.mubr.bf16.gmra.mxu1 %v6143_v28  ;;  %1910 = vmatprep.mubr.bf16.mxu0 %v5487_v3  ;;  %v5160_v28 = vld [vmem:[%s5773_s13 + $0x2b8] ss:$12 sps:$4 sm:$0xff]  }
 0x1cc   : > { %1757 = vmatprep.mubr.bf16.mxu1 %v6147_v30 }
 0x1cd   : > { %v6317_v18 = vpop.f32.mrf.mxu1  ;;  %3159 = vmatpush2.bf16.msra.mxu0 %v5154_v63 }
 0x1ce   : > { %3160 = vmatprep.subr.bf16.mxu0 %v5159_v13 }
 0x1cf   : > { %v6321_v50 = vpop.f32.mrf.mxu1 }
 0x1d1   : > { %v6323_v51 = vpop.f32.mrf.mxu1  ;;  %3161 = vmatpush2.bf16.msra.mxu0 %v5157_v40 }
 0x1d2   : > { %3162 = vmatprep.subr.bf16.mxu0 %v5162_v47  ;;  %1911 = vmatmul.mubr.bf16.gmra.mxu0 %v6007_v42 }
 0x1d3   : > { %v6326_v24 = vpop.f32.mrf.mxu1  ;;  %1758 = vmatmul.mubr.bf16.gmra.mxu1 %v6159_v44  ;;  %1920 = vmatprep.mubr.bf16.mxu0 %v5487_v3 }
 0x1d4   : > { %1767 = vmatprep.mubr.bf16.mxu1 %v6163_v46  ;;  %v5166_v46 = vld [vmem:[%s5773_s13 + $0x288] ss:$12 sps:$4 sm:$0xff]  }
 0x1d5   : > { %v6332_v30 = vpop.f32.mrf.mxu1  ;;  %3163 = vmatpush2.bf16.msra.mxu0 %v5160_v28 }
 0x1d6   : > { %3164 = vmatprep.subr.bf16.mxu0 %v5165_v15 }
 0x1d7   : > { %v6336_v17 = vpop.f32.mrf.mxu1 }
 0x1d9   : > { %v6338_v26 = vpop.f32.mrf.mxu1  ;;  %3165 = vmatpush2.bf16.msra.mxu0 %v5163_v52 }
 0x1da   : > { %1921 = vmatmul.mubr.bf16.gmra.mxu0 %v6031_v62  ;;  %3166 = vmatprep.subr.bf16.mxu0 %v5168_v57 }
 0x1db   : > { %v6340_v44 = vpop.f32.mrf.mxu1  ;;  %1768 = vmatmul.mubr.bf16.gmra.mxu1 %v6175_v58  ;;  %1930 = vmatprep.mubr.bf16.mxu0 %v5487_v3 }
 0x1dc   : > { %1777 = vmatprep.mubr.bf16.mxu1 %v6179_v0  ;;  %v5171_v0 = vld [vmem:[%s5773_s13 + $0x270] ss:$12 sps:$4 sm:$0xff]  }
 0x1dd   : > { %v6346_v42 = vpop.f32.mrf.mxu1  ;;  %3167 = vmatpush2.bf16.msra.mxu0 %v5166_v46 }
 0x1de   : > { %3168 = vmatprep.subr.bf16.mxu0 %v5173_v1 }
 0x1df   : > { %v6351_v37 = vpop.f32.mrf.mxu1 }
 0x1e1   : > { %v6353_v38 = vpop.f32.mrf.mxu1  ;;  %3169 = vmatpush2.bf16.msra.mxu0 %v5171_v0 }
 0x1e2   : > { %1931 = vmatmul.mubr.bf16.gmra.mxu0 %v6054_v16  ;;  %3170 = vmatprep.subr.bf16.mxu0 %v5176_v55 }
 0x1e3   : > { %v6355_v58 = vpop.f32.mrf.mxu1  ;;  %1778 = vmatmul.mubr.bf16.gmra.mxu1 %v6192_v19  ;;  %1940 = vmatprep.mubr.bf16.mxu0 %v5487_v3 }
 0x1e4   : > { %1787 = vmatprep.mubr.bf16.mxu1 %v6196_v21 }
 0x1e5   : > { %v6361_v62 = vpop.f32.mrf.mxu1  ;;  %3171 = vmatpush2.bf16.msra.mxu0 %v5174_v49 }
 0x1e6   : > { %3172 = vmatprep.subr.bf16.mxu0 %v5181_v5 }
 0x1e7   : > { %v6365_v6 = vpop.f32.mrf.mxu1 }
 0x1e9   : > { %v6367_v7 = vpop.f32.mrf.mxu1  ;;  %3173 = vmatpush2.bf16.msra.mxu0 %v5179_v60 }
 0x1ea   : > { %v1283_v19 = vpop.f32.mrf.mxu0  ;;  %1941 = vmatmul.mubr.bf16.gmra.mxu0 %v6078_v36 }
 0x1eb   : > { %v6369_v10 = vpop.f32.mrf.mxu1  ;;  %1788 = vmatmul.mubr.bf16.gmra.mxu1 %v6206_v32  ;;  %1950 = vmatprep.mubr.bf16.mxu0 %v5487_v3  ;;  %v7844_v32 = vsub.s32 1, %v6377_v53 }
 0x1ec   : > { %1797 = vmatprep.mubr.bf16.mxu1 %v6208_v33  ;;  %v1285_v16 = vpop.f32.mrf.mxu0  ;;  %v6388_v33 = vld [vmem:[%s336_s12] sm:$0xf] }
 0x1ed   : > { %v6375_v21 = vpop.f32.mrf.mxu1  ;;  %v6397_v2 = vrot.slane %v6388_v33, %v7844_v32 }
 0x1ee   : > { %v1287_v11 = vpop.f32.mrf.mxu0 }
 0x1ef   : > { %v6381_v22 = vpop.f32.mrf.mxu1  ;;  %v1286_v63 = vadd.f32 %v1285_v16, %v6397_v2 }
 0x1f0   : > { %v1289_v36 = vpop.f32.mrf.mxu0 }
 0x1f1   : > { %v6384_v43 = vpop.f32.mrf.mxu1  ;;  %v1290_v48 = vadd.f32 %v1289_v36, %v6397_v2  ;;  %v1479_v15 = vadd.f32 %v6317_v18, %v1286_v63 }
 0x1f2   : > { %v1293_v25 = vpop.f32.mrf.mxu0  ;;  %1951 = vmatmul.mubr.bf16.gmra.mxu0 %v6097_v54 }
 0x1f3   : > { %v6390_v27 = vpop.f32.mrf.mxu1  ;;  %1798 = vmatmul.mubr.bf16.gmra.mxu1 %v6222_v56  ;;  %1960 = vmatprep.mubr.bf16.mxu0 %v5487_v3  ;;  %v7845_v56 = vsub.s32 0, %v6377_v53  ;;  %v1483_v40 = vadd.f32 %v6323_v51, %v1290_v48  ;;  %v6428_v51 = vld [vmem:[%s5773_s13 + $0x2f0] ss:$12 sps:$4 sm:$0xff]  }
 0x1f4   : > { %1807 = vmatprep.mubr.bf16.mxu1 %v6224_v23  ;;  %v1295_v31 = vpop.f32.mrf.mxu0  ;;  %4679 = vmatprep.subr.bf16.mxu0 %v6428_v51 }
 0x1f5   : > { %v6403_v34 = vpop.f32.mrf.mxu1  ;;  %v6416_v47 = vrot.slane %v6388_v33, %v7845_v56  ;;  %v2026_v0 = vmax.f32 %v1483_v40, 0.0  ;;  %v1296_v9 = vadd.f32 %v1295_v31, %v6397_v2 }
 0x1f6   : > { %v1297_v54 = vpop.f32.mrf.mxu0 }
 0x1f7   : > { %v6407_v61 = vpop.f32.mrf.mxu1  ;;  %v1288_v46 = vadd.f32 %v1287_v11, %v6416_v47  ;;  %v1489_v31 = vadd.f32 %v6332_v30, %v1296_v9 }
 0x1f8   : > { %v1299_v23 = vpop.f32.mrf.mxu0 }
 0x1f9   : > { %v6410_v13 = vpop.f32.mrf.mxu1  ;;  %v1300_v1 = vadd.f32 %v1299_v23, %v6397_v2  ;;  %v1481_v16 = vadd.f32 %v6321_v50, %v1288_v46 }
 0x1fa   : > { %v6418_v28 = vpop.f32.mrf.mxu0  ;;  %1961 = vmatmul.mubr.bf16.gmra.mxu0 %v6113_v4  ;;  %v1284_v4 = vadd.f32 %v1283_v19, %v6416_v47 }
 0x1fb   : > { %v6420_v52 = vpop.f32.mrf.mxu1  ;;  %1808 = vmatmul.mubr.bf16.gmra.mxu1 %v6238_v12  ;;  %1970 = vmatprep.mubr.bf16.mxu0 %v5487_v3  ;;  %v1493_v11 = vadd.f32 %v6338_v26, %v1300_v1  ;;  %v2025_v50 = vmax.f32 %v1481_v16, 0.0  ;;  %v1298_v26 = vadd.f32 %v1297_v54, %v6416_v47 }
 0x1fc   : > { %1817 = vmatprep.mubr.bf16.mxu1 %v6240_v41  ;;  %v1305_v57 = vpop.f32.mrf.mxu0  ;;  %v2022_v41 = vmax.f32 %v1479_v15, 0.0  ;;  %v1477_v60 = vadd.f32 %v6311_v8, %v1284_v4  ;;  %v2030_v15 = vmax.f32 %v1489_v31, 0.0 }
 0x1fd   : > { %v6431_v35 = vpop.f32.mrf.mxu1  ;;  %v2034_v63 = vmax.f32 %v1493_v11, 0.0  ;;  %v1306_v46 = vadd.f32 %v1305_v57, %v6397_v2  ;;  %v1491_v54 = vadd.f32 %v6336_v17, %v1298_v26 }
 0x1fe   : > { %v1307_v12 = vpop.f32.mrf.mxu0  ;;  %v6443_v36 = vpack.c.bf16 %v2026_v0, %v2022_v41  ;;  %v5170_v41 = vld [vmem:[%s5773_s13 + $0xb0] ss:$12 sps:$4 sm:$0xff]  }
 0x1ff   : > { %v6436_v18 = vpop.f32.mrf.mxu1  ;;  %v6470_v16 = vpack.c.bf16 %v2034_v63, %v2030_v15  ;;  %v1499_v17 = vadd.f32 %v6346_v42, %v1306_v46  ;;  %v5182_v63 = vld [vmem:[%s5773_s13 + $0x140] ss:$12 sps:$4 sm:$0xff]  }
 0x200   : > { %v1309_v49 = vpop.f32.mrf.mxu0 }
 0x201   : > { %v6440_v55 = vpop.f32.mrf.mxu1  ;;  %v1310_v23 = vadd.f32 %v1309_v49, %v6397_v2 }
 0x202   : > { %v6446_v5 = vpop.f32.mrf.mxu0  ;;  %1971 = vmatmul.mubr.bf16.gmra.mxu0 %v6129_v14  ;;  %v1294_v14 = vadd.f32 %v1293_v25, %v6416_v47  ;;  %v5177_v25 = vld [vmem:[%s5773_s13 + $0x158] ss:$12 sps:$4 sm:$0xff]  }
 0x203   : > { %v6448_v19 = vpop.f32.mrf.mxu1  ;;  %1818 = vmatmul.mubr.bf16.gmra.mxu1 %v6252_v39  ;;  %1980 = vmatprep.mubr.bf16.mxu0 %v5487_v3  ;;  %v2021_v39 = vmax.f32 %v1477_v60, 0.0  ;;  %v1503_v9 = vadd.f32 %v6353_v38, %v1310_v23  ;;  %v2033_v38 = vmax.f32 %v1491_v54, 0.0  ;;  %v1308_v60 = vadd.f32 %v1307_v12, %v6416_v47 }
 0x204   : > { %2981 = vmatprep.mubr.bf16.mxu1 %v6443_v36  ;;  %v1315_v48 = vpop.f32.mrf.mxu0  ;;  %v1487_v49 = vadd.f32 %v6326_v24, %v1294_v14  ;;  %v1304_v23 = vadd.f32 %v6418_v28, %v6416_v47  ;;  %v2038_v12 = vmax.f32 %v1499_v17, 0.0  ;;  %v5184_v28 = vld [vmem:[%s5773_s13 + $0x128] ss:$12 sps:$4 sm:$0xff]  }
 0x205   : > { %v6456_v8 = vpop.f32.mrf.mxu1  ;;  %v6463_v0 = vpack.c.bf16 %v2025_v50, %v2021_v39  ;;  %v5178_v50 = vld [vmem:[%s5773_s13 + $0x98] ss:$12 sps:$4 sm:$0xff]   ;;  %v2042_v26 = vmax.f32 %v1503_v9, 0.0  ;;  %v1316_v15 = vadd.f32 %v1315_v48, %v6397_v2  ;;  %v1501_v54 = vadd.f32 %v6351_v37, %v1308_v60 }
 0x206   : > { %v1317_v40 = vpop.f32.mrf.mxu0  ;;  %v2029_v42 = vmax.f32 %v1487_v49, 0.0  ;;  %v1497_v17 = vadd.f32 %v6340_v44, %v1304_v23 }
 0x207   : > { %v6460_v30 = vpop.f32.mrf.mxu1  ;;  %v6501_v49 = vpack.c.bf16 %v2042_v26, %v2038_v12  ;;  %v1509_v37 = vadd.f32 %v6361_v62, %v1316_v15 }
 0x208   : > { %v1319_v1 = vpop.f32.mrf.mxu0  ;;  %v6494_v46 = vpack.c.bf16 %v2033_v38, %v2029_v42  ;;  %v1318_v38 = vadd.f32 %v1317_v40, %v6416_v47  ;;  %v2037_v62 = vmax.f32 %v1497_v17, 0.0 }
 0x209   : > { %v6466_v4 = vpop.f32.mrf.mxu1  ;;  %v2046_v40 = vmax.f32 %v1509_v37, 0.0 }
 0x20a   : > { %v6474_v11 = vpop.f32.mrf.mxu0  ;;  %1981 = vmatmul.mubr.bf16.gmra.mxu0 %v6145_v29  ;;  %v1320_v29 = vadd.f32 %v1319_v1, %v6397_v2  ;;  %v5183_v1 = vld [vmem:[%s5773_s13 + $0x80] ss:$12 sps:$4 sm:$0xff]  }
 0x20b   : > { %v6476_v57 = vpop.f32.mrf.mxu1  ;;  %2982 = vmatmul.mubr.bf16.vlgmr.msra.gmra.mxu1 %v6463_v0  ;;  %1990 = vmatprep.mubr.bf16.mxu0 %v5487_v3 }
 0x20c   : > { %2991 = vmatprep.mubr.bf16.mxu1 %v6470_v16  ;;  %v1325_v31 = vpop.f32.mrf.mxu0  ;;  %4568 = vmatpush3.bf16.msra.mxu1 %v5170_v41 }
 0x20d   : > { %v6484_v24 = vpop.f32.mrf.mxu1  ;;  %4569 = vmatprep.subr.bf16.mxu1 %v5177_v25  ;;  %v1513_v25 = vadd.f32 %v6367_v7, %v1320_v29  ;;  %v2041_v7 = vmax.f32 %v1501_v54, 0.0  ;;  %v5188_v29 = vld [vmem:[%s5773_s13 + $0x110] ss:$12 sps:$4 sm:$0xff]   ;;  %v1326_v12 = vadd.f32 %v1325_v31, %v6397_v2  ;;  %v1511_v54 = vadd.f32 %v6365_v6, %v1318_v38 }
 0x20e   : > { %v1327_v39 = vpop.f32.mrf.mxu0 }
 0x20f   : > { %v6491_v14 = vpop.f32.mrf.mxu1  ;;  %v2050_v26 = vmax.f32 %v1513_v25, 0.0  ;;  %v6525_v15 = vpack.c.bf16 %v2041_v7, %v2037_v62  ;;  %v1519_v6 = vadd.f32 %v6375_v21, %v1326_v12  ;;  %v1328_v7 = vadd.f32 %v1327_v39, %v6416_v47 }
 0x210   : > { %v1329_v41 = vpop.f32.mrf.mxu0  ;;  %4570 = vmatpush3.bf16.msra.mxu1 %v5178_v50  ;;  %v5185_v50 = vld [vmem:[%s5773_s13 + $0x68] ss:$12 sps:$4 sm:$0xff]  }
 0x211   : > { %v6497_v9 = vpop.f32.mrf.mxu1  ;;  %4571 = vmatprep.subr.bf16.mxu1 %v5182_v63  ;;  %v1314_v63 = vadd.f32 %v6446_v5, %v6416_v47  ;;  %v6532_v17 = vpack.c.bf16 %v2050_v26, %v2046_v40  ;;  %v5190_v5 = vld [vmem:[%s5773_s13 + $0xf8] ss:$12 sps:$4 sm:$0xff]   ;;  %v2054_v39 = vmax.f32 %v1519_v6, 0.0  ;;  %v1521_v12 = vadd.f32 %v6381_v22, %v1328_v7 }
 0x212   : > { %v6505_v32 = vpop.f32.mrf.mxu0  ;;  %1991 = vmatmul.mubr.bf16.gmra.mxu0 %v6161_v45  ;;  %v1330_v45 = vadd.f32 %v1329_v41, %v6397_v2  ;;  %v5189_v41 = vld [vmem:[%s5773_s13 + $0x50] ss:$12 sps:$4 sm:$0xff]  }
 0x213   : > { %v6507_v48 = vpop.f32.mrf.mxu1  ;;  %2992 = vmatmul.mubr.bf16.gmra.mxu1 %v6494_v46  ;;  %2000 = vmatprep.mubr.bf16.mxu0 %v5487_v3  ;;  %v1507_v37 = vadd.f32 %v6355_v58, %v1314_v63 }
 0x214   : > { %3001 = vmatprep.mubr.bf16.mxu1 %v6501_v49  ;;  %v1335_v60 = vpop.f32.mrf.mxu0  ;;  %4572 = vmatpush3.bf16.msra.mxu1 %v5183_v1 }
 0x215   : > { %v6515_v44 = vpop.f32.mrf.mxu1  ;;  %4573 = vmatprep.subr.bf16.mxu1 %v5184_v28  ;;  %v1523_v28 = vadd.f32 %v6384_v43, %v1330_v45  ;;  %v2049_v43 = vmax.f32 %v1511_v54, 0.0  ;;  %v5192_v45 = vld [vmem:[%s5773_s13 + $0xe0] ss:$12 sps:$4 sm:$0xff]   ;;  %v2045_v21 = vmax.f32 %v1507_v37, 0.0  ;;  %v1336_v63 = vadd.f32 %v1335_v60, %v6397_v2 }
 0x216   : > { %v1337_v42 = vpop.f32.mrf.mxu0 }
 0x217   : > { %v6522_v23 = vpop.f32.mrf.mxu1  ;;  %v2058_v26 = vmax.f32 %v1523_v28, 0.0  ;;  %v6556_v40 = vpack.c.bf16 %v2049_v43, %v2045_v21  ;;  %v1529_v22 = vadd.f32 %v6403_v34, %v1336_v63  ;;  %v1338_v43 = vadd.f32 %v1337_v42, %v6416_v47 }
 0x218   : > { %v1339_v1 = vpop.f32.mrf.mxu0  ;;  %4574 = vmatpush3.bf16.msra.mxu1 %v5185_v50  ;;  %v5191_v50 = vld [vmem:[%s5773_s13 + $0x38] ss:$12 sps:$4 sm:$0xff]  }
 0x219   : > { %v6528_v25 = vpop.f32.mrf.mxu1  ;;  %4575 = vmatprep.subr.bf16.mxu1 %v5188_v29  ;;  %v1324_v29 = vadd.f32 %v6474_v11, %v6416_v47  ;;  %v5194_v11 = vld [vmem:[%s5773_s13 + $0xc8] ss:$12 sps:$4 sm:$0xff]   ;;  %v1531_v63 = vadd.f32 %v6407_v61, %v1338_v43 }
 0x21a   : > { %v6536_v56 = vpop.f32.mrf.mxu0  ;;  %2001 = vmatmul.mubr.bf16.gmra.mxu0 %v6177_v59  ;;  %v1340_v59 = vadd.f32 %v1339_v1, %v6397_v2  ;;  %v5193_v1 = vld [vmem:[%s5773_s13 + $0x20] ss:$12 sps:$4 sm:$0xff]  }
 0x21b   : > { %v6538_v31 = vpop.f32.mrf.mxu1  ;;  %3002 = vmatmul.mubr.bf16.gmra.mxu1 %v6525_v15  ;;  %2010 = vmatprep.mubr.bf16.mxu0 %v5487_v3  ;;  %v1517_v37 = vadd.f32 %v6369_v10, %v1324_v29  ;;  %v5195_v10 = vld [vmem:[%s5773_s13 + $0x8] ss:$12 sps:$4 sm:$0xff]   ;;  %v2062_v29 = vmax.f32 %v1529_v22, 0.0  ;;  %v2065_v61 = vmax.f32 %v1531_v63, 0.0 }
 0x21c   : > { %3011 = vmatprep.mubr.bf16.mxu1 %v6532_v17  ;;  %v1345_v38 = vpop.f32.mrf.mxu0  ;;  %4576 = vmatpush3.bf16.msra.mxu1 %v5189_v41  ;;  %v1533_v28 = vadd.f32 %v6410_v13, %v1340_v59  ;;  %v2057_v13 = vmax.f32 %v1521_v12, 0.0 }
 0x21d   : > { %v6546_v58 = vpop.f32.mrf.mxu1  ;;  %4577 = vmatprep.subr.bf16.mxu1 %v5190_v5  ;;  %v6563_v5 = vpack.c.bf16 %v2058_v26, %v2054_v39  ;;  %v1346_v39 = vadd.f32 %v1345_v38, %v6397_v2 }
 0x21e   : > { %v1347_v3 = vpop.f32.mrf.mxu0  ;;  %v2066_v26 = vmax.f32 %v1533_v28, 0.0 }
 0x21f   : > { %v6553_v62 = vpop.f32.mrf.mxu1  ;;  %7908 = vst [vmem:[#allocation30_spill] sm:$0xff] %v6563_v5  ;;  %v1539_v38 = vadd.f32 %v6431_v35, %v1346_v39  ;;  %v1348_v22 = vadd.f32 %v1347_v3, %v6416_v47 }
 0x220   : > { %v1349_v54 = vpop.f32.mrf.mxu0  ;;  %4578 = vmatpush3.bf16.msra.mxu1 %v5191_v50  ;;  %v6591_v28 = vpack.c.bf16 %v2066_v26, %v2062_v29 }
 0x221   : > { %v6559_v41 = vpop.f32.mrf.mxu1  ;;  %4579 = vmatprep.subr.bf16.mxu1 %v5192_v45  ;;  %v1350_v59 = vadd.f32 %v1349_v54, %v6397_v2  ;;  %v2053_v45 = vmax.f32 %v1517_v37, 0.0  ;;  %v1541_v3 = vadd.f32 %v6436_v18, %v1348_v22 }
 0x222   : > { %v6567_v6 = vpop.f32.mrf.mxu0  ;;  %2011 = vmatmul.mubr.bf16.gmra.mxu0 %v6194_v20  ;;  %v1334_v20 = vadd.f32 %v6505_v32, %v6416_v47  ;;  %7910 = vst [vmem:[#allocation32_spill] sm:$0xff] %v6591_v28 }
 0x223   : > { %v6569_v60 = vpop.f32.mrf.mxu1  ;;  %3012 = vmatmul.mubr.bf16.gmra.mxu1 %v6556_v40  ;;  %v6585_v42 = vpack.c.bf16 %v2057_v13, %v2053_v45  ;;  %v1543_v54 = vadd.f32 %v6440_v55, %v1350_v59  ;;  %v2070_v45 = vmax.f32 %v1539_v38, 0.0  ;;  %v2073_v38 = vmax.f32 %v1541_v3, 0.0 }
 0x224   : > { %3021 = vmatprep.mubr.bf16.mxu1 %v6563_v5  ;;  %v1355_v7 = vpop.f32.mrf.mxu0  ;;  %4580 = vmatpush3.bf16.msra.mxu1 %v5193_v1  ;;  %v1527_v32 = vadd.f32 %v6390_v27, %v1334_v20  ;;  %v1344_v27 = vadd.f32 %v6536_v56, %v6416_v47 }
 0x225   : > { %v6576_v50 = vpop.f32.mrf.mxu1  ;;  %4581 = vmatprep.subr.bf16.mxu1 %v5194_v11  ;;  %7909 = vst [vmem:[#allocation31_spill] sm:$0xff] %v6585_v42  ;;  %v2074_v43 = vmax.f32 %v1543_v54, 0.0  ;;  %v1356_v35 = vadd.f32 %v1355_v7, %v6397_v2 }
 0x226   : > { %v1357_v21 = vpop.f32.mrf.mxu0  ;;  %v1537_v54 = vadd.f32 %v6420_v52, %v1344_v27  ;;  %v1354_v52 = vadd.f32 %v6567_v6, %v6416_v47 }
 0x227   : > { %v6582_v34 = vpop.f32.mrf.mxu1  ;;  %v1549_v7 = vadd.f32 %v6456_v8, %v1356_v35  ;;  %v1358_v18 = vadd.f32 %v1357_v21, %v6416_v47 }
 0x228   : > { %v1359_v12 = vpop.f32.mrf.mxu0  ;;  %4582 = vmatpush3.bf16.msra.mxu1 %v5195_v10  ;;  %v2061_v10 = vmax.f32 %v1527_v32, 0.0 }
 0x229   : > { %v6588_v1 = vpop.f32.mrf.mxu1  ;;  %4791 = vmatprep.subr.bf16.mxu1 %v6428_v51  ;;  %v1360_v51 = vadd.f32 %v1359_v12, %v6397_v2  ;;  %v6615_v12 = vpack.c.bf16 %v2074_v43, %v2070_v45  ;;  %v2078_v45 = vmax.f32 %v1549_v7, 0.0  ;;  %v1551_v21 = vadd.f32 %v6460_v30, %v1358_v18 }
 0x22a   : > { %v1363_v11 = vpop.f32.mrf.mxu0  ;;  %v6609_v20 = vpack.c.bf16 %v2065_v61, %v2061_v10 }
 0x22b   : > { %v6595_v37 = vpop.f32.mrf.mxu1  ;;  %3022 = vmatmul.mubr.bf16.gmra.mxu1 %v6585_v42  ;;  %v1553_v63 = vadd.f32 %v6466_v4, %v1360_v51  ;;  %7912 = vst [vmem:[#allocation34_spill] sm:$0xff] %v6615_v12  ;;  %v2069_v51 = vmax.f32 %v1537_v54, 0.0  ;;  %v1547_v54 = vadd.f32 %v6448_v19, %v1354_v52  ;;  %v2081_v7 = vmax.f32 %v1551_v21, 0.0 }
 0x22c   : > { %3031 = vmatprep.mubr.bf16.mxu1 %v6591_v28  ;;  %v1365_v13 = vpop.f32.mrf.mxu0  ;;  %7911 = vst [vmem:[#allocation33_spill] sm:$0xff] %v6609_v20  ;;  %v1364_v19 = vadd.f32 %v1363_v11, %v6416_v47 }
 0x22d   : > { %v6601_v55 = vpop.f32.mrf.mxu1  ;;  %v2082_v4 = vmax.f32 %v1553_v63, 0.0  ;;  %v1366_v8 = vadd.f32 %v1365_v13, %v6397_v2  ;;  %v6632_v35 = vpack.c.bf16 %v2073_v38, %v2069_v51 }
 0x22e   : > { %v1367_v26 = vpop.f32.mrf.mxu0 }
 0x22f   : > { %v6606_v59 = vpop.f32.mrf.mxu1  ;;  %7913 = vst [vmem:[#allocation35_spill] sm:$0xff] %v6632_v35  ;;  %v1559_v13 = vadd.f32 %v6484_v24, %v1366_v8  ;;  %v1368_v30 = vadd.f32 %v1367_v26, %v6416_v47 }
 0x230   : > { %v1369_v29 = vpop.f32.mrf.mxu0 }
 0x231   : > { %v6612_v39 = vpop.f32.mrf.mxu1  ;;  %v1370_v43 = vadd.f32 %v1369_v29, %v6397_v2  ;;  %v6638_v29 = vpack.c.bf16 %v2082_v4, %v2078_v45  ;;  %v2086_v45 = vmax.f32 %v1559_v13, 0.0  ;;  %v1561_v21 = vadd.f32 %v6491_v14, %v1368_v30 }
 0x232   : > { %v1373_v56 = vpop.f32.mrf.mxu0 }
 0x233   : > { %v6618_v32 = vpop.f32.mrf.mxu1  ;;  %3032 = vmatmul.mubr.bf16.gmra.mxu1 %v6609_v20  ;;  %v1563_v63 = vadd.f32 %v6497_v9, %v1370_v43  ;;  %7914 = vst [vmem:[#allocation36_spill] sm:$0xff] %v6638_v29  ;;  %v2077_v43 = vmax.f32 %v1547_v54, 0.0  ;;  %v2089_v13 = vmax.f32 %v1561_v21, 0.0 }
 0x234   : > { %3041 = vmatprep.mubr.bf16.mxu1 %v6615_v12  ;;  %v1375_v61 = vpop.f32.mrf.mxu0 }
 0x235   : > { %v6624_v22 = vpop.f32.mrf.mxu1  ;;  %v2090_v9 = vmax.f32 %v1563_v63, 0.0  ;;  %v1376_v24 = vadd.f32 %v1375_v61, %v6397_v2  ;;  %v6654_v8 = vpack.c.bf16 %v2081_v7, %v2077_v43 }
 0x236   : > { %v1377_v10 = vpop.f32.mrf.mxu0 }
 0x237   : > { %v6629_v27 = vpop.f32.mrf.mxu1  ;;  %7915 = vst [vmem:[#allocation37_spill] sm:$0xff] %v6654_v8  ;;  %v1569_v61 = vadd.f32 %v6515_v44, %v1376_v24  ;;  %v1378_v14 = vadd.f32 %v1377_v10, %v6416_v47 }
 0x238   : > { %v1379_v3 = vpop.f32.mrf.mxu0 }
 0x239   : > { %v6635_v12 = vpop.f32.mrf.mxu1  ;;  %v1380_v4 = vadd.f32 %v1379_v3, %v6397_v2  ;;  %v1557_v3 = vadd.f32 %v6476_v57, %v1364_v19  ;;  %v1374_v57 = vadd.f32 %v1373_v56, %v6416_v47  ;;  %v1571_v21 = vadd.f32 %v6522_v23, %v1378_v14 }
 0x23a   : > { %v1383_v6 = vpop.f32.mrf.mxu0 }
 0x23b   : > { %v6641_v20 = vpop.f32.mrf.mxu1  ;;  %3042 = vmatmul.mubr.bf16.gmra.mxu1 %v6632_v35  ;;  %v1573_v63 = vadd.f32 %v6528_v25, %v1380_v4  ;;  %v6660_v35 = vpack.c.bf16 %v2090_v9, %v2086_v45  ;;  %v2085_v4 = vmax.f32 %v1557_v3, 0.0  ;;  %v2094_v45 = vmax.f32 %v1569_v61, 0.0 }
 0x23c   : > { %3051 = vmatprep.mubr.bf16.mxu1 %v6638_v29  ;;  %v1385_v38 = vpop.f32.mrf.mxu0  ;;  %v2097_v61 = vmax.f32 %v1571_v21, 0.0 }
 0x23d   : > { %v6647_v18 = vpop.f32.mrf.mxu1  ;;  %7916 = vst [vmem:[#allocation38_spill] sm:$0xff] %v6660_v35  ;;  %v2098_v25 = vmax.f32 %v1573_v63, 0.0  ;;  %v1386_v44 = vadd.f32 %v1385_v38, %v6397_v2  ;;  %v6676_v24 = vpack.c.bf16 %v2089_v13, %v2085_v4 }
 0x23e   : > { %v1387_v51 = vpop.f32.mrf.mxu0 }
 0x23f   : > { %v6651_v52 = vpop.f32.mrf.mxu1  ;;  %7917 = vst [vmem:[#allocation39_spill] sm:$0xff] %v6676_v24  ;;  %v1579_v38 = vadd.f32 %v6546_v58, %v1386_v44  ;;  %v1388_v23 = vadd.f32 %v1387_v51, %v6416_v47 }
 0x240   : > { %v1389_v26 = vpop.f32.mrf.mxu0 }
 0x241   : > { %v6657_v29 = vpop.f32.mrf.mxu1  ;;  %v1390_v9 = vadd.f32 %v1389_v26, %v6397_v2  ;;  %v1567_v26 = vadd.f32 %v6507_v48, %v1374_v57  ;;  %v1384_v48 = vadd.f32 %v1383_v6, %v6416_v47  ;;  %v1581_v21 = vadd.f32 %v6553_v62, %v1388_v23 }
 0x242   : > { %v1393_v11 = vpop.f32.mrf.mxu0 }
 0x243   : > { %v6663_v54 = vpop.f32.mrf.mxu1  ;;  %3052 = vmatmul.mubr.bf16.gmra.mxu1 %v6654_v8  ;;  %v1583_v63 = vadd.f32 %v6559_v41, %v1390_v9  ;;  %v6682_v8 = vpack.c.bf16 %v2098_v25, %v2094_v45  ;;  %v2093_v9 = vmax.f32 %v1567_v26, 0.0  ;;  %v2102_v45 = vmax.f32 %v1579_v38, 0.0 }
 0x244   : > { %3061 = vmatprep.mubr.bf16.mxu1 %v6660_v35  ;;  %v1395_v7 = vpop.f32.mrf.mxu0  ;;  %v2105_v38 = vmax.f32 %v1581_v21, 0.0 }
 0x245   : > { %v6669_v30 = vpop.f32.mrf.mxu1  ;;  %7918 = vst [vmem:[#allocation40_spill] sm:$0xff] %v6682_v8  ;;  %v2106_v41 = vmax.f32 %v1583_v63, 0.0  ;;  %v1396_v58 = vadd.f32 %v1395_v7, %v6397_v2  ;;  %v6698_v44 = vpack.c.bf16 %v2097_v61, %v2093_v9 }
 0x246   : > { %v1397_v43 = vpop.f32.mrf.mxu0 }
 0x247   : > { %v6673_v19 = vpop.f32.mrf.mxu1  ;;  %7919 = vst [vmem:[#allocation41_spill] sm:$0xff] %v6698_v44  ;;  %v1589_v7 = vadd.f32 %v6576_v50, %v1396_v58  ;;  %v1398_v62 = vadd.f32 %v1397_v43, %v6416_v47 }
 0x248   : > { %v1399_v10 = vpop.f32.mrf.mxu0 }
 0x249   : > { %v6679_v35 = vpop.f32.mrf.mxu1  ;;  %v1400_v25 = vadd.f32 %v1399_v10, %v6397_v2  ;;  %v1577_v10 = vadd.f32 %v6538_v31, %v1384_v48  ;;  %v1394_v31 = vadd.f32 %v1393_v11, %v6416_v47  ;;  %v1591_v21 = vadd.f32 %v6582_v34, %v1398_v62 }
 0x24a   : > { %v1403_v56 = vpop.f32.mrf.mxu0 }
 0x24b   : > { %v6685_v3 = vpop.f32.mrf.mxu1  ;;  %3062 = vmatmul.mubr.bf16.gmra.mxu1 %v6676_v24  ;;  %v1593_v63 = vadd.f32 %v6588_v1, %v1400_v25  ;;  %v6704_v24 = vpack.c.bf16 %v2106_v41, %v2102_v45  ;;  %v2101_v25 = vmax.f32 %v1577_v10, 0.0  ;;  %v2110_v45 = vmax.f32 %v1589_v7, 0.0 }
 0x24c   : > { %3071 = vmatprep.mubr.bf16.mxu1 %v6682_v8  ;;  %v1405_v13 = vpop.f32.mrf.mxu0  ;;  %v2113_v34 = vmax.f32 %v1591_v21, 0.0 }
 0x24d   : > { %v6691_v14 = vpop.f32.mrf.mxu1  ;;  %7920 = vst [vmem:[#allocation42_spill] sm:$0xff] %v6704_v24  ;;  %v2114_v1 = vmax.f32 %v1593_v63, 0.0  ;;  %v1406_v50 = vadd.f32 %v1405_v13, %v6397_v2  ;;  %v6720_v58 = vpack.c.bf16 %v2105_v38, %v2101_v25 }
 0x24e   : > { %v1407_v4 = vpop.f32.mrf.mxu0 }
 0x24f   : > { %v6695_v57 = vpop.f32.mrf.mxu1  ;;  %7921 = vst [vmem:[#allocation43_spill] sm:$0xff] %v6720_v58  ;;  %v1599_v13 = vadd.f32 %v6601_v55, %v1406_v50  ;;  %v1408_v7 = vadd.f32 %v1407_v4, %v6416_v47 }
 0x250   : > { %v1409_v51 = vpop.f32.mrf.mxu0 }
 0x251   : > { %v6701_v8 = vpop.f32.mrf.mxu1  ;;  %v1410_v41 = vadd.f32 %v1409_v51, %v6397_v2  ;;  %v1587_v51 = vadd.f32 %v6569_v60, %v1394_v31  ;;  %v1601_v21 = vadd.f32 %v6606_v59, %v1408_v7 }
 0x252   : > { %v1413_v6 = vpop.f32.mrf.mxu0 }
 0x253   : > { %v6707_v26 = vpop.f32.mrf.mxu1  ;;  %3072 = vmatmul.mubr.bf16.gmra.mxu1 %v6698_v44  ;;  %v1603_v63 = vadd.f32 %v6612_v39, %v1410_v41  ;;  %v6726_v44 = vpack.c.bf16 %v2114_v1, %v2110_v45  ;;  %v2109_v60 = vmax.f32 %v1587_v51, 0.0  ;;  %v1404_v41 = vadd.f32 %v1403_v56, %v6416_v47 }
 0x254   : > { %3081 = vmatprep.mubr.bf16.mxu1 %v6704_v24  ;;  %v1415_v61 = vpop.f32.mrf.mxu0  ;;  %v2118_v45 = vmax.f32 %v1599_v13, 0.0  ;;  %v2121_v13 = vmax.f32 %v1601_v21, 0.0  ;;  %v7925_v21 = vsub.s32 2, %v6377_v53 }
 0x255   : > { %v6713_v23 = vpop.f32.mrf.mxu1  ;;  %7922 = vst [vmem:[#allocation44_spill] sm:$0xff] %v6726_v44  ;;  %v2122_v39 = vmax.f32 %v1603_v63, 0.0  ;;  %v1416_v55 = vadd.f32 %v1415_v61, %v6397_v2  ;;  %v6744_v50 = vpack.c.bf16 %v2113_v34, %v2109_v60 }
 0x256   : > { %v1417_v9 = vpop.f32.mrf.mxu0 }
 0x257   : > { %v6717_v48 = vpop.f32.mrf.mxu1  ;;  %7923 = vst [vmem:[#allocation45_spill] sm:$0xff] %v6744_v50  ;;  %v1609_v61 = vadd.f32 %v6624_v22, %v1416_v55  ;;  %v1418_v34 = vadd.f32 %v1417_v9, %v6416_v47  ;;  %v6773_v9 = vrot.slane %v6388_v33, %v7925_v21 }
 0x258   : > { %v1419_v43 = vpop.f32.mrf.mxu0 }
 0x259   : > { %v6723_v24 = vpop.f32.mrf.mxu1  ;;  %v1420_v1 = vadd.f32 %v1419_v43, %v6397_v2  ;;  %v1597_v43 = vadd.f32 %v6595_v37, %v1404_v41  ;;  %v763_v37 = vsub.s32 3, %v6377_v53  ;;  %v1414_v41 = vadd.f32 %v1413_v6, %v6416_v47 }
 0x25a   : > { %v6729_v11 = vpop.f32.mrf.mxu0  ;;  %v2126_v55 = vmax.f32 %v1609_v61, 0.0 }
 0x25b   : > { %v6731_v10 = vpop.f32.mrf.mxu1  ;;  %3082 = vmatmul.mubr.bf16.gmra.mxu1 %v6720_v58  ;;  %v1613_v63 = vadd.f32 %v6635_v12, %v1420_v1  ;;  %v6750_v58 = vpack.c.bf16 %v2122_v39, %v2118_v45  ;;  %v2117_v60 = vmax.f32 %v1597_v43, 0.0  ;;  %v6781_v6 = vrot.slane %v6388_v33, %v763_v37 }
 0x25c   : > { %3091 = vmatprep.mubr.bf16.mxu1 %v6726_v44  ;;  %v1425_v38 = vpop.f32.mrf.mxu0 }
 0x25d   : > { %v6737_v62 = vpop.f32.mrf.mxu1  ;;  %7924 = vst [vmem:[#allocation46_spill] sm:$0xff] %v6750_v58  ;;  %v2130_v39 = vmax.f32 %v1613_v63, 0.0  ;;  %v1426_v59 = vadd.f32 %v1425_v38, %v6397_v2  ;;  %v1611_v63 = vadd.f32 %v6629_v27, %v1418_v34  ;;  %v1607_v38 = vadd.f32 %v6618_v32, %v1414_v41 }
 0x25e   : > { %v1427_v25 = vpop.f32.mrf.mxu0  ;;  %v1670_v27 = vadd.f32 %v6685_v3, %v6773_v9  ;;  %v1672_v32 = vadd.f32 %v6691_v14, %v6781_v6  ;;  %v1424_v3 = vadd.f32 %v6729_v11, %v6416_v47 }
 0x25f   : > { %v6741_v31 = vpop.f32.mrf.mxu1  ;;  %v6784_v61 = vpack.c.bf16 %v2130_v39, %v2126_v55  ;;  %v2129_v33 = vmax.f32 %v1611_v63, 0.0  ;;  %v1428_v34 = vadd.f32 %v1427_v25, %v6416_v47  ;;  %v1674_v39 = vadd.f32 %v6695_v57, %v6773_v9 }
 0x260   : > { %v1429_v4 = vpop.f32.mrf.mxu0  ;;  %v1617_v42 = vadd.f32 %v6641_v20, %v1424_v3 }
 0x261   : > { %v6747_v44 = vpop.f32.mrf.mxu1  ;;  %v1430_v1 = vadd.f32 %v1429_v4, %v6397_v2  ;;  %7927 = vst [vmem:[#allocation48_spill] sm:$0xff] %v6784_v61  ;;  %v1621_v57 = vadd.f32 %v6651_v52, %v1428_v34 }
 0x262   : > { %v6753_v56 = vpop.f32.mrf.mxu0 }
 0x263   : > { %v6755_v51 = vpop.f32.mrf.mxu1  ;;  %3092 = vmatmul.mubr.bf16.gmra.mxu1 %v6744_v50  ;;  %v1623_v43 = vadd.f32 %v6657_v29, %v1430_v1 }
 0x264   : > { %3101 = vmatprep.mubr.bf16.mxu1 %v6750_v58  ;;  %v1435_v12 = vpop.f32.mrf.mxu0  ;;  %v6775_v58 = vpack.c.bf16 %v2121_v13, %v2117_v60  ;;  %v1619_v13 = vadd.f32 %v6647_v18, %v1426_v59  ;;  %v1676_v59 = vadd.f32 %v6701_v8, %v6781_v6  ;;  %v2125_v60 = vmax.f32 %v1607_v38, 0.0 }
 0x265   : > { %v6762_v7 = vpop.f32.mrf.mxu1  ;;  %v2138_v1 = vmax.f32 %v1623_v43, 0.0  ;;  %v1436_v63 = vadd.f32 %v1435_v12, %v6397_v2 }
 0x266   : > { %v1437_v45 = vpop.f32.mrf.mxu0  ;;  %7926 = vst [vmem:[#allocation47_spill] sm:$0xff] %v6775_v58  ;;  %v2134_v55 = vmax.f32 %v1619_v13, 0.0 }
 0x267   : > { %v6767_v22 = vpop.f32.mrf.mxu1  ;;  %v1629_v52 = vadd.f32 %v6669_v30, %v1436_v63  ;;  %v1438_v20 = vadd.f32 %v1437_v45, %v6416_v47  ;;  %v1684_v30 = vadd.f32 %v6717_v48, %v6773_v9 }
 0x268   : > { %v1439_v50 = vpop.f32.mrf.mxu0  ;;  %v6815_v11 = vpack.c.bf16 %v2138_v1, %v2134_v55  ;;  %v1434_v1 = vadd.f32 %v6753_v56, %v6416_v47 }
 0x269   : > { %v6778_v4 = vpop.f32.mrf.mxu1  ;;  %v1440_v18 = vadd.f32 %v1439_v50, %v6397_v2  ;;  %v2142_v48 = vmax.f32 %v1629_v52, 0.0  ;;  %v1631_v47 = vadd.f32 %v6673_v19, %v1438_v20  ;;  %v6867_v19 = vld [vmem:[%s5773_s13 + $0x2c0] ss:$12 sps:$4 sm:$0xff]   ;;  %v1692_v20 = vadd.f32 %v6737_v62, %v6781_v6 }
 0x26a   : > { %v1862_v21 = vpop.f32.mrf.mxu0  ;;  %v1696_v62 = vadd.f32 %v6747_v44, %v6781_v6 }
 0x26b   : > { %v6787_v53 = vpop.f32.mrf.mxu1  ;;  %3102 = vmatmul.mubr.bf16.gmra.mxu1 %v6775_v58  ;;  %v6809_v58 = vpack.c.bf16 %v2129_v33, %v2125_v60  ;;  %v1863_v50 = vadd.f32 %v1862_v21, %v1670_v27  ;;  %v1633_v38 = vadd.f32 %v6679_v35, %v1440_v18  ;;  %v1680_v35 = vadd.f32 %v6707_v26, %v6773_v9  ;;  %v6844_v60 = vld [vmem:[%s5773_s13 + $0x2d8] ss:$12 sps:$4 sm:$0xff]  }
 0x26c   : > { %3111 = vmatprep.mubr.bf16.mxu1 %v6784_v61  ;;  %v1864_v37 = vpop.f32.mrf.mxu0  ;;  %v2137_v27 = vmax.f32 %v1621_v57, 0.0  ;;  %v2133_v26 = vmax.f32 %v1617_v42, 0.0  ;;  %v6859_v57 = vld [vmem:[%s5773_s13 + $0x218] ss:$12 sps:$4 sm:$0xff]  }
 0x26d   : > { %v6795_v29 = vpop.f32.mrf.mxu1  ;;  %v1865_v14 = vadd.f32 %v1864_v37, %v1672_v32  ;;  %v1682_v37 = vadd.f32 %v6713_v23, %v6781_v6  ;;  %v1686_v23 = vadd.f32 %v6723_v24, %v6781_v6 }
 0x26e   : > { %v1866_v41 = vpop.f32.mrf.mxu0  ;;  %v6849_v42 = vpack.c.bf16 %v2137_v27, %v2133_v26 }
 0x26f   : > { %v6806_v25 = vpop.f32.mrf.mxu1  ;;  %v1867_v61 = vadd.f32 %v1866_v41, %v1674_v39  ;;  %v2024_v12 = vmax.f32 %v1865_v14, 0.0  ;;  %v6835_v39 = vld [vmem:[%s5773_s13 + $0x230] ss:$12 sps:$4 sm:$0xff]  }
 0x270   : > { %v1868_v8 = vpop.f32.mrf.mxu0 }
 0x271   : > { %v6812_v43 = vpop.f32.mrf.mxu1  ;;  %v1869_v28 = vadd.f32 %v1868_v8, %v1676_v59  ;;  %v2027_v13 = vmax.f32 %v1867_v61, 0.0  ;;  %v2023_v61 = vmax.f32 %v1863_v50, 0.0  ;;  %v1627_v50 = vadd.f32 %v6663_v54, %v1434_v1  ;;  %v6890_v1 = vld [vmem:[%s5773_s13 + $0x2a8] ss:$12 sps:$4 sm:$0xff]  }
 0x272   : > { %v1872_v2 = vpop.f32.mrf.mxu0  ;;  %v2145_v54 = vmax.f32 %v1631_v47, 0.0 }
 0x273   : > { %v6818_v5 = vpop.f32.mrf.mxu1  ;;  %3112 = vmatmul.mubr.bf16.gmra.mxu1 %v6809_v58  ;;  %v2028_v21 = vmax.f32 %v1869_v28, 0.0  ;;  %v2146_v28 = vmax.f32 %v1633_v38, 0.0  ;;  %v6839_v45 = vpack.c.bf16 %v2027_v13, %v2023_v61  ;;  %v1873_v56 = vadd.f32 %v1872_v2, %v1680_v35 }
 0x274   : > { %3121 = vmatprep.mubr.bf16.mxu1 %v6815_v11  ;;  %v1874_v34 = vpop.f32.mrf.mxu0  ;;  %v1694_v61 = vadd.f32 %v6741_v31, %v6773_v9 }
 0x275   : > { %v6826_v33 = vpop.f32.mrf.mxu1  ;;  %v6832_v32 = vpack.c.bf16 %v2028_v21, %v2024_v12  ;;  %v1875_v3 = vadd.f32 %v1874_v34, %v1682_v37  ;;  %v6856_v24 = vpack.c.bf16 %v2146_v28, %v2142_v48  ;;  %v1690_v12 = vadd.f32 %v6731_v10, %v6773_v9  ;;  %v6882_v37 = vld [vmem:[%s5773_s13 + $0x200] ss:$12 sps:$4 sm:$0xff]  }
 0x276   : > { %v1876_v59 = vpop.f32.mrf.mxu0  ;;  %v2031_v21 = vmax.f32 %v1873_v56, 0.0  ;;  %v6902_v56 = vld [vmem:[%s5773_s13 + $0x1e8] ss:$12 sps:$4 sm:$0xff]  }
 0x277   : > { %v6841_v18 = vpop.f32.mrf.mxu1  ;;  %v1877_v41 = vadd.f32 %v1876_v59, %v1684_v30  ;;  %3174 = vmatprep.mubr.bf16.mxu0 %v6832_v32  ;;  %v2032_v2 = vmax.f32 %v1875_v3, 0.0  ;;  %v2141_v30 = vmax.f32 %v1627_v50, 0.0  ;;  %v6909_v50 = vld [vmem:[%s5773_s13 + $0x290] ss:$12 sps:$4 sm:$0xff]  }
 0x278   : > { %v1878_v63 = vpop.f32.mrf.mxu0  ;;  %3175 = vmatmul.mubr.bf16.vlgmr.msra.gmra.mxu0 %v6839_v45 }
 0x279   : > { %v6852_v55 = vpop.f32.mrf.mxu1  ;;  %v1879_v14 = vadd.f32 %v1878_v63, %v1686_v23  ;;  %4680 = vmatpush3.bf16.msra.mxu0 %v6835_v39  ;;  %v2035_v8 = vmax.f32 %v1877_v41, 0.0  ;;  %v6895_v23 = vpack.c.bf16 %v2145_v54, %v2141_v30 }
 0x27a   : > { %v1882_v13 = vpop.f32.mrf.mxu0  ;;  %4681 = vmatprep.subr.bf16.mxu0 %v6844_v60 }
 0x27b   : > { %v6862_v38 = vpop.f32.mrf.mxu1  ;;  %3122 = vmatmul.mubr.bf16.gmra.mxu1 %v6849_v42  ;;  %v2036_v52 = vmax.f32 %v1879_v14, 0.0  ;;  %v6884_v28 = vpack.c.bf16 %v2035_v8, %v2031_v21  ;;  %v1883_v48 = vadd.f32 %v1882_v13, %v1690_v12  ;;  %v1702_v21 = vadd.f32 %v6762_v7, %v6781_v6 }
 0x27c   : > { %3131 = vmatprep.mubr.bf16.mxu1 %v6856_v24  ;;  %v1884_v27 = vpop.f32.mrf.mxu0  ;;  %v1706_v7 = vadd.f32 %v6778_v4, %v6781_v6 }
 0x27d   : > { %v6872_v35 = vpop.f32.mrf.mxu1  ;;  %v6878_v34 = vpack.c.bf16 %v2036_v52, %v2032_v2  ;;  %4682 = vmatpush3.bf16.msra.mxu0 %v6859_v57  ;;  %v1885_v31 = vadd.f32 %v1884_v27, %v1692_v20  ;;  %v1700_v2 = vadd.f32 %v6755_v51, %v6773_v9  ;;  %v2039_v52 = vmax.f32 %v1883_v48, 0.0 }
 0x27e   : > { %v1886_v26 = vpop.f32.mrf.mxu0  ;;  %4683 = vmatprep.subr.bf16.mxu0 %v6867_v19  ;;  %v1704_v27 = vadd.f32 %v6767_v22, %v6773_v9 }
 0x27f   : > { %v6886_v10 = vpop.f32.mrf.mxu1  ;;  %v1887_v59 = vadd.f32 %v1886_v26, %v1694_v61  ;;  %3184 = vmatprep.mubr.bf16.mxu0 %v6878_v34  ;;  %v2040_v8 = vmax.f32 %v1885_v31, 0.0  ;;  %v6924_v61 = vld [vmem:[%s5773_s13 + $0x1d0] ss:$12 sps:$4 sm:$0xff]   ;;  %v6932_v26 = vld [vmem:[%s5773_s13 + $0x278] ss:$12 sps:$4 sm:$0xff]  }
 0x280   : > { %v1888_v41 = vpop.f32.mrf.mxu0  ;;  %3185 = vmatmul.mubr.bf16.gmra.mxu0 %v6884_v28 }
 0x281   : > { %v6897_v3 = vpop.f32.mrf.mxu1  ;;  %v1889_v47 = vadd.f32 %v1888_v41, %v1696_v62  ;;  %4684 = vmatpush3.bf16.msra.mxu0 %v6882_v37  ;;  %v2043_v63 = vmax.f32 %v1887_v59, 0.0 }
 0x282   : > { %v1892_v14 = vpop.f32.mrf.mxu0  ;;  %4685 = vmatprep.subr.bf16.mxu0 %v6890_v1 }
 0x283   : > { %v6904_v44 = vpop.f32.mrf.mxu1  ;;  %3132 = vmatmul.mubr.bf16.gmra.mxu1 %v6895_v23  ;;  %v2044_v13 = vmax.f32 %v1889_v47, 0.0  ;;  %v1893_v31 = vadd.f32 %v1892_v14, %v1700_v2  ;;  %v6942_v47 = vld [vmem:[%s5773_s13 + $0x1b8] ss:$12 sps:$4 sm:$0xff]   ;;  %v6949_v14 = vld [vmem:[%s5773_s13 + $0x260] ss:$12 sps:$4 sm:$0xff]  }
 0x284   : > { %3367 = vmatprep.mubr.bf16.mxu1 %v6443_v36  ;;  %v1894_v54 = vpop.f32.mrf.mxu0  ;;  %v6926_v36 = vpack.c.bf16 %v2043_v63, %v2039_v52  ;;  %v1710_v52 = vadd.f32 %v6787_v53, %v6773_v9 }
 0x285   : > { %v6914_v12 = vpop.f32.mrf.mxu1  ;;  %v6920_v20 = vpack.c.bf16 %v2044_v13, %v2040_v8  ;;  %4686 = vmatpush3.bf16.msra.mxu0 %v6902_v56  ;;  %v1895_v22 = vadd.f32 %v1894_v54, %v1702_v21  ;;  %v2047_v54 = vmax.f32 %v1893_v31, 0.0 }
 0x286   : > { %v1896_v30 = vpop.f32.mrf.mxu0  ;;  %4687 = vmatprep.subr.bf16.mxu0 %v6909_v50 }
 0x287   : > { %v6928_v51 = vpop.f32.mrf.mxu1  ;;  %v1897_v62 = vadd.f32 %v1896_v30, %v1704_v27  ;;  %3194 = vmatprep.mubr.bf16.mxu0 %v6920_v20  ;;  %v2048_v13 = vmax.f32 %v1895_v22, 0.0  ;;  %v1714_v30 = vadd.f32 %v6806_v25, %v6773_v9 }
 0x288   : > { %v1898_v48 = vpop.f32.mrf.mxu0  ;;  %3195 = vmatmul.mubr.bf16.gmra.mxu0 %v6926_v36 }
 0x289   : > { %v6937_v59 = vpop.f32.mrf.mxu1  ;;  %v1899_v41 = vadd.f32 %v1898_v48, %v1706_v7  ;;  %4688 = vmatpush3.bf16.msra.mxu0 %v6924_v61  ;;  %v2051_v63 = vmax.f32 %v1897_v62, 0.0 }
 0x28a   : > { %v1902_v4 = vpop.f32.mrf.mxu0  ;;  %4689 = vmatprep.subr.bf16.mxu0 %v6932_v26 }
 0x28b   : > { %v6944_v8 = vpop.f32.mrf.mxu1  ;;  %3368 = vmatmul.mubr.bf16.vlgmr.msra.gmra.mxu1 %v6463_v0  ;;  %v2052_v2 = vmax.f32 %v1899_v41, 0.0  ;;  %v1712_v0 = vadd.f32 %v6795_v29, %v6781_v6  ;;  %v1716_v29 = vadd.f32 %v6812_v43, %v6781_v6  ;;  %v1903_v31 = vadd.f32 %v1902_v4, %v1710_v52 }
 0x28c   : > { %3375 = vmatprep.mubr.bf16.mxu1 %v6470_v16  ;;  %4799 = vmatpush3.bf16.msra.mxu1 %v6835_v39  ;;  %v1904_v27 = vpop.f32.mrf.mxu0  ;;  %v6966_v16 = vld [vmem:[%s5773_s13 + $0x1a0] ss:$12 sps:$4 sm:$0xff]   ;;  %v6968_v39 = vpack.c.bf16 %v2051_v63, %v2047_v54 }
 0x28d   : > { %v6955_v21 = vpop.f32.mrf.mxu1  ;;  %4792 = vmatprep.subr.bf16.mxu1 %v6844_v60  ;;  %v6962_v7 = vpack.c.bf16 %v2052_v2, %v2048_v13  ;;  %4690 = vmatpush3.bf16.msra.mxu0 %v6942_v47  ;;  %v6974_v60 = vld [vmem:[%s5773_s13 + $0x248] ss:$12 sps:$4 sm:$0xff]   ;;  %v1905_v25 = vadd.f32 %v1904_v27, %v1712_v0  ;;  %v2055_v52 = vmax.f32 %v1903_v31, 0.0 }
 0x28e   : > { %v1906_v22 = vpop.f32.mrf.mxu0  ;;  %4691 = vmatprep.subr.bf16.mxu0 %v6949_v14  ;;  %v6986_v13 = vld [vmem:[%s5773_s13 + $0x188] ss:$12 sps:$4 sm:$0xff]  }
 0x28f   : > { %v6970_v53 = vpop.f32.mrf.mxu1  ;;  %v1907_v62 = vadd.f32 %v1906_v22, %v1714_v30  ;;  %3204 = vmatprep.mubr.bf16.mxu0 %v6962_v7  ;;  %v1724_v30 = vadd.f32 %v6841_v18, %v6773_v9 }
 0x290   : > { %4800 = vmatpush3.bf16.msra.mxu1 %v6859_v57  ;;  %v1908_v41 = vpop.f32.mrf.mxu0  ;;  %3205 = vmatmul.mubr.bf16.gmra.mxu0 %v6968_v39  ;;  %v2056_v57 = vmax.f32 %v1905_v25, 0.0 }
 0x291   : > { %v6980_v48 = vpop.f32.mrf.mxu1  ;;  %4793 = vmatprep.subr.bf16.mxu1 %v6867_v19  ;;  %v1909_v63 = vadd.f32 %v1908_v41, %v1716_v29  ;;  %4692 = vmatpush3.bf16.msra.mxu0 %v6966_v16  ;;  %v2059_v43 = vmax.f32 %v1907_v62, 0.0  ;;  %v1720_v19 = vadd.f32 %v6818_v5, %v6773_v9  ;;  %v1726_v29 = vadd.f32 %v6852_v55, %v6781_v6 }
 0x292   : > { %v1912_v54 = vpop.f32.mrf.mxu0  ;;  %4693 = vmatprep.subr.bf16.mxu0 %v6974_v60 }
 0x293   : > { %v6988_v2 = vpop.f32.mrf.mxu1  ;;  %3376 = vmatmul.mubr.bf16.gmra.mxu1 %v6494_v46  ;;  %v2060_v4 = vmax.f32 %v1909_v63, 0.0  ;;  %v1722_v46 = vadd.f32 %v6826_v33, %v6781_v6  ;;  %v1913_v33 = vadd.f32 %v1912_v54, %v1720_v19  ;;  %v1732_v19 = vadd.f32 %v6872_v35, %v6781_v6 }
 0x294   : > { %3383 = vmatprep.mubr.bf16.mxu1 %v6501_v49  ;;  %4801 = vmatpush3.bf16.msra.mxu1 %v6882_v37  ;;  %v1914_v0 = vpop.f32.mrf.mxu0  ;;  %v7006_v49 = vpack.c.bf16 %v2059_v43, %v2055_v52 }
 0x295   : > { %v6996_v27 = vpop.f32.mrf.mxu1  ;;  %4794 = vmatprep.subr.bf16.mxu1 %v6890_v1  ;;  %v7003_v22 = vpack.c.bf16 %v2060_v4, %v2056_v57  ;;  %4694 = vmatpush3.bf16.msra.mxu0 %v6986_v13  ;;  %v1915_v25 = vadd.f32 %v1914_v0, %v1722_v46  ;;  %v2063_v54 = vmax.f32 %v1913_v33, 0.0 }
 0x296   : > { %v1916_v5 = vpop.f32.mrf.mxu0 }
 0x297   : > { %v7008_v37 = vpop.f32.mrf.mxu1  ;;  %v1917_v1 = vadd.f32 %v1916_v5, %v1724_v30  ;;  %3214 = vmatprep.mubr.bf16.mxu0 %v7003_v22  ;;  %v2064_v55 = vmax.f32 %v1915_v25, 0.0 }
 0x298   : > { %4802 = vmatpush3.bf16.msra.mxu1 %v6902_v56  ;;  %v1918_v62 = vpop.f32.mrf.mxu0  ;;  %3215 = vmatmul.mubr.bf16.gmra.mxu0 %v7006_v49  ;;  %v1730_v56 = vadd.f32 %v6862_v38, %v6773_v9  ;;  %v1736_v38 = vadd.f32 %v6897_v3, %v6781_v6 }
 0x299   : > { %v7014_v18 = vpop.f32.mrf.mxu1  ;;  %4795 = vmatprep.subr.bf16.mxu1 %v6909_v50  ;;  %v1919_v31 = vadd.f32 %v1918_v62, %v1726_v29  ;;  %v2067_v41 = vmax.f32 %v1917_v1, 0.0  ;;  %v7928_v62 = vld [vmem:[#allocation30_spill] sm:$0xff] }
 0x29a   : > { %v1922_v43 = vpop.f32.mrf.mxu0 }
 0x29b   : > { %v7018_v63 = vpop.f32.mrf.mxu1  ;;  %3384 = vmatmul.mubr.bf16.gmra.mxu1 %v6525_v15  ;;  %v2068_v57 = vmax.f32 %v1919_v31, 0.0  ;;  %v1734_v15 = vadd.f32 %v6886_v10, %v6773_v9  ;;  %v1923_v35 = vadd.f32 %v1922_v43, %v1730_v56  ;;  %v1742_v43 = vadd.f32 %v6914_v12, %v6781_v6 }
 0x29c   : > { %3391 = vmatprep.mubr.bf16.mxu1 %v6532_v17  ;;  %4803 = vmatpush3.bf16.msra.mxu1 %v6924_v61  ;;  %v1924_v50 = vpop.f32.mrf.mxu0  ;;  %v7034_v17 = vpack.c.bf16 %v2067_v41, %v2063_v54 }
 0x29d   : > { %v7025_v4 = vpop.f32.mrf.mxu1  ;;  %4796 = vmatprep.subr.bf16.mxu1 %v6932_v26  ;;  %v7032_v52 = vpack.c.bf16 %v2068_v57, %v2064_v55  ;;  %v1925_v46 = vadd.f32 %v1924_v50, %v1732_v19  ;;  %v2071_v31 = vmax.f32 %v1923_v35, 0.0  ;;  %v7930_v35 = vld [vmem:[#allocation32_spill] sm:$0xff] }
 0x29e   : > { %v1926_v0 = vpop.f32.mrf.mxu0 }
 0x29f   : > { %v7036_v61 = vpop.f32.mrf.mxu1  ;;  %v1927_v30 = vadd.f32 %v1926_v0, %v1734_v15  ;;  %3224 = vmatprep.mubr.bf16.mxu0 %v7032_v52  ;;  %v2072_v3 = vmax.f32 %v1925_v46, 0.0  ;;  %v7929_v46 = vld [vmem:[#allocation31_spill] sm:$0xff] }
 0x2a0   : > { %4804 = vmatpush3.bf16.msra.mxu1 %v6942_v47  ;;  %v1928_v10 = vpop.f32.mrf.mxu0  ;;  %3225 = vmatmul.mubr.bf16.gmra.mxu0 %v7034_v17  ;;  %v1740_v47 = vadd.f32 %v6904_v44, %v6773_v9  ;;  %v1746_v44 = vadd.f32 %v6937_v59, %v6781_v6 }
 0x2a1   : > { %v7042_v26 = vpop.f32.mrf.mxu1  ;;  %4797 = vmatprep.subr.bf16.mxu1 %v6949_v14  ;;  %v1929_v5 = vadd.f32 %v1928_v10, %v1736_v38  ;;  %v2075_v29 = vmax.f32 %v1927_v30, 0.0 }
 0x2a2   : > { %v1932_v1 = vpop.f32.mrf.mxu0 }
 0x2a3   : > { %v7046_v25 = vpop.f32.mrf.mxu1  ;;  %3392 = vmatmul.mubr.bf16.gmra.mxu1 %v6556_v40  ;;  %v2076_v33 = vmax.f32 %v1929_v5, 0.0  ;;  %v1744_v40 = vadd.f32 %v6928_v51, %v6773_v9  ;;  %v7062_v57 = vpack.c.bf16 %v2075_v29, %v2071_v31  ;;  %v1933_v12 = vadd.f32 %v1932_v1, %v1740_v47 }
 0x2a4   : > { %3399 = vmatprep.mubr.bf16.mxu1 %v7928_v62  ;;  %4805 = vmatpush3.bf16.msra.mxu1 %v6966_v16  ;;  %v1934_v14 = vpop.f32.mrf.mxu0  ;;  %v1752_v1 = vadd.f32 %v6955_v21, %v6781_v6 }
 0x2a5   : > { %v7053_v41 = vpop.f32.mrf.mxu1  ;;  %4798 = vmatprep.subr.bf16.mxu1 %v6974_v60  ;;  %v7060_v55 = vpack.c.bf16 %v2076_v33, %v2072_v3  ;;  %v1935_v54 = vadd.f32 %v1934_v14, %v1742_v43  ;;  %v2079_v10 = vmax.f32 %v1933_v12, 0.0  ;;  %v1754_v3 = vadd.f32 %v6970_v53, %v6773_v9  ;;  %v7931_v12 = vld [vmem:[#allocation33_spill] sm:$0xff] }
 0x2a6   : > { %v1936_v56 = vpop.f32.mrf.mxu0 }
 0x2a7   : > { %v7064_v16 = vpop.f32.mrf.mxu1  ;;  %v1937_v50 = vadd.f32 %v1936_v56, %v1744_v40  ;;  %3234 = vmatprep.mubr.bf16.mxu0 %v7060_v55  ;;  %v2080_v59 = vmax.f32 %v1935_v54, 0.0 }
 0x2a8   : > { %4806 = vmatpush3.bf16.msra.mxu1 %v6986_v13  ;;  %v1938_v51 = vpop.f32.mrf.mxu0  ;;  %3235 = vmatmul.mubr.bf16.gmra.mxu0 %v7062_v57  ;;  %v1750_v13 = vadd.f32 %v6944_v8, %v6773_v9  ;;  %v1756_v8 = vadd.f32 %v6980_v48, %v6781_v6  ;;  %v7932_v48 = vld [vmem:[#allocation34_spill] sm:$0xff] }
 0x2a9   : > { %v7070_v60 = vpop.f32.mrf.mxu1  ;;  %v1939_v19 = vadd.f32 %v1938_v51, %v1746_v44  ;;  %v2083_v15 = vmax.f32 %v1937_v50, 0.0 }
 0x2aa   : > { %v1942_v38 = vpop.f32.mrf.mxu0 }
 0x2ab   : > { %v7073_v0 = vpop.f32.mrf.mxu1  ;;  %3400 = vmatmul.mubr.bf16.gmra.mxu1 %v7929_v46  ;;  %v2084_v30 = vmax.f32 %v1939_v19, 0.0  ;;  %v7087_v62 = vpack.c.bf16 %v2083_v15, %v2079_v10  ;;  %v1943_v40 = vadd.f32 %v1942_v38, %v1750_v13  ;;  %v1760_v15 = vadd.f32 %v6988_v2, %v6773_v9 }
 0x2ac   : > { %3407 = vmatprep.mubr.bf16.mxu1 %v7930_v35  ;;  %v1944_v29 = vpop.f32.mrf.mxu0  ;;  %v1764_v35 = vadd.f32 %v7008_v37, %v6773_v9  ;;  %v1766_v2 = vadd.f32 %v7014_v18, %v6781_v6  ;;  %v7934_v18 = vld [vmem:[#allocation36_spill] sm:$0xff] }
 0x2ad   : > { %v7079_v5 = vpop.f32.mrf.mxu1  ;;  %v7085_v33 = vpack.c.bf16 %v2084_v30, %v2080_v59  ;;  %v1945_v14 = vadd.f32 %v1944_v29, %v1752_v1  ;;  %v2087_v38 = vmax.f32 %v1943_v40, 0.0  ;;  %v1762_v30 = vadd.f32 %v6996_v27, %v6781_v6 }
 0x2ae   : > { %v1946_v31 = vpop.f32.mrf.mxu0 }
 0x2af   : > { %v7089_v47 = vpop.f32.mrf.mxu1  ;;  %v1947_v43 = vadd.f32 %v1946_v31, %v1754_v3  ;;  %3244 = vmatprep.mubr.bf16.mxu0 %v7085_v33  ;;  %v2088_v51 = vmax.f32 %v1945_v14, 0.0 }
 0x2b0   : > { %v1948_v21 = vpop.f32.mrf.mxu0  ;;  %3245 = vmatmul.mubr.bf16.gmra.mxu0 %v7087_v62 }
 0x2b1   : > { %v7094_v56 = vpop.f32.mrf.mxu1  ;;  %v1949_v53 = vadd.f32 %v1948_v21, %v1756_v8  ;;  %v2091_v44 = vmax.f32 %v1947_v43, 0.0 }
 0x2b2   : > { %v1952_v50 = vpop.f32.mrf.mxu0 }
 0x2b3   : > { %v7097_v54 = vpop.f32.mrf.mxu1  ;;  %3408 = vmatmul.mubr.bf16.gmra.mxu1 %v7931_v12  ;;  %v2092_v19 = vmax.f32 %v1949_v53, 0.0  ;;  %v7111_v10 = vpack.c.bf16 %v2091_v44, %v2087_v38  ;;  %v1953_v8 = vadd.f32 %v1952_v50, %v1760_v15  ;;  %v7933_v53 = vld [vmem:[#allocation35_spill] sm:$0xff]  ;;  %v1772_v15 = vadd.f32 %v7025_v4, %v6781_v6 }
 0x2b4   : > { %3415 = vmatprep.mubr.bf16.mxu1 %v7932_v48  ;;  %v1954_v59 = vpop.f32.mrf.mxu0  ;;  %v1774_v38 = vadd.f32 %v7036_v61, %v6773_v9 }
 0x2b5   : > { %v7103_v46 = vpop.f32.mrf.mxu1  ;;  %v7109_v13 = vpack.c.bf16 %v2092_v19, %v2088_v51  ;;  %v1955_v3 = vadd.f32 %v1954_v59, %v1762_v30  ;;  %v1770_v51 = vadd.f32 %v7018_v63, %v6773_v9  ;;  %v2095_v50 = vmax.f32 %v1953_v8, 0.0 }
 0x2b6   : > { %v1956_v1 = vpop.f32.mrf.mxu0  ;;  %v1776_v63 = vadd.f32 %v7042_v26, %v6781_v6  ;;  %v7936_v26 = vld [vmem:[#allocation38_spill] sm:$0xff] }
 0x2b7   : > { %v7113_v29 = vpop.f32.mrf.mxu1  ;;  %v1957_v31 = vadd.f32 %v1956_v1, %v1764_v35  ;;  %3254 = vmatprep.mubr.bf16.mxu0 %v7109_v13  ;;  %v2096_v44 = vmax.f32 %v1955_v3, 0.0 }
 0x2b8   : > { %v1958_v27 = vpop.f32.mrf.mxu0  ;;  %3255 = vmatmul.mubr.bf16.gmra.mxu0 %v7111_v10 }
 0x2b9   : > { %v7118_v14 = vpop.f32.mrf.mxu1  ;;  %v1959_v37 = vadd.f32 %v1958_v27, %v1766_v2  ;;  %v2099_v43 = vmax.f32 %v1957_v31, 0.0 }
 0x2ba   : > { %v1962_v21 = vpop.f32.mrf.mxu0 }
 0x2bb   : > { %v7121_v40 = vpop.f32.mrf.mxu1  ;;  %3416 = vmatmul.mubr.bf16.gmra.mxu1 %v7933_v53  ;;  %v2100_v12 = vmax.f32 %v1959_v37, 0.0  ;;  %v7135_v30 = vpack.c.bf16 %v2099_v43, %v2095_v50  ;;  %v1963_v31 = vadd.f32 %v1962_v21, %v1770_v51  ;;  %v7935_v53 = vld [vmem:[#allocation37_spill] sm:$0xff] }
 0x2bc   : > { %3423 = vmatprep.mubr.bf16.mxu1 %v7934_v18  ;;  %v1964_v48 = vpop.f32.mrf.mxu0  ;;  %v1780_v18 = vadd.f32 %v7046_v25, %v6773_v9  ;;  %v1786_v25 = vadd.f32 %v7070_v60, %v6781_v6  ;;  %v7940_v60 = vld [vmem:[#allocation40_spill] sm:$0xff] }
 0x2bd   : > { %v7127_v19 = vpop.f32.mrf.mxu1  ;;  %v7133_v59 = vpack.c.bf16 %v2100_v12, %v2096_v44  ;;  %v1965_v2 = vadd.f32 %v1964_v48, %v1772_v15  ;;  %v2103_v21 = vmax.f32 %v1963_v31, 0.0  ;;  %v1782_v48 = vadd.f32 %v7053_v41, %v6781_v6 }
 0x2be   : > { %v1966_v1 = vpop.f32.mrf.mxu0  ;;  %v1784_v15 = vadd.f32 %v7064_v16, %v6773_v9 }
 0x2bf   : > { %v7137_v35 = vpop.f32.mrf.mxu1  ;;  %v1967_v3 = vadd.f32 %v1966_v1, %v1774_v38  ;;  %3264 = vmatprep.mubr.bf16.mxu0 %v7133_v59  ;;  %v2104_v44 = vmax.f32 %v1965_v2, 0.0 }
 0x2c0   : > { %v1968_v4 = vpop.f32.mrf.mxu0  ;;  %3265 = vmatmul.mubr.bf16.gmra.mxu0 %v7135_v30 }
 0x2c1   : > { %v7142_v8 = vpop.f32.mrf.mxu1  ;;  %v1969_v61 = vadd.f32 %v1968_v4, %v1776_v63  ;;  %v2107_v27 = vmax.f32 %v1967_v3, 0.0 }
 0x2c2   : > { %v1972_v43 = vpop.f32.mrf.mxu0 }
 0x2c3   : > { %v7145_v37 = vpop.f32.mrf.mxu1  ;;  %3424 = vmatmul.mubr.bf16.gmra.mxu1 %v7935_v53  ;;  %v2108_v12 = vmax.f32 %v1969_v61, 0.0  ;;  %v7159_v1 = vpack.c.bf16 %v2107_v27, %v2103_v21  ;;  %v1973_v4 = vadd.f32 %v1972_v43, %v1780_v18 }
 0x2c4   : > { %3431 = vmatprep.mubr.bf16.mxu1 %v7936_v26  ;;  %v1974_v50 = vpop.f32.mrf.mxu0 }
 0x2c5   : > { %v7151_v51 = vpop.f32.mrf.mxu1  ;;  %v7157_v38 = vpack.c.bf16 %v2108_v12, %v2104_v44  ;;  %7938 = vst [vmem:[#allocation31_spill] sm:$0xff] %v7159_v1  ;;  %v1975_v3 = vadd.f32 %v1974_v50, %v1782_v48  ;;  %v7939_v12 = vld [vmem:[#allocation39_spill] sm:$0xff]  ;;  %v1790_v50 = vadd.f32 %v7073_v0, %v6773_v9  ;;  %v2111_v43 = vmax.f32 %v1973_v4, 0.0 }
 0x2c6   : > { %v1976_v2 = vpop.f32.mrf.mxu0  ;;  %v1796_v0 = vadd.f32 %v7094_v56, %v6781_v6  ;;  %v7944_v56 = vld [vmem:[#allocation42_spill] sm:$0xff] }
 0x2c7   : > { %7937 = vst [vmem:[#allocation30_spill] sm:$0xff] %v7157_v38  ;;  %v7161_v63 = vpop.f32.mrf.mxu1  ;;  %v1977_v31 = vadd.f32 %v1976_v2, %v1784_v15  ;;  %3274 = vmatprep.mubr.bf16.mxu0 %v7157_v38  ;;  %v2112_v26 = vmax.f32 %v1975_v3, 0.0  ;;  %v1792_v15 = vadd.f32 %v7079_v5, %v6781_v6  ;;  %v1794_v2 = vadd.f32 %v7089_v47, %v6773_v9 }
 0x2c8   : > { %v1978_v41 = vpop.f32.mrf.mxu0  ;;  %3275 = vmatmul.mubr.bf16.gmra.mxu0 %v7159_v1 }
 0x2c9   : > { %v7166_v61 = vpop.f32.mrf.mxu1  ;;  %v1979_v16 = vadd.f32 %v1978_v41, %v1786_v25  ;;  %v2115_v53 = vmax.f32 %v1977_v31, 0.0 }
 0x2ca   : > { %v1982_v27 = vpop.f32.mrf.mxu0 }
 0x2cb   : > { %v7169_v44 = vpop.f32.mrf.mxu1  ;;  %3432 = vmatmul.mubr.bf16.gmra.mxu1 %v7939_v12  ;;  %v2116_v21 = vmax.f32 %v1979_v16, 0.0  ;;  %v7183_v31 = vpack.c.bf16 %v2115_v53, %v2111_v43  ;;  %v1983_v12 = vadd.f32 %v1982_v27, %v1790_v50  ;;  %v7943_v43 = vld [vmem:[#allocation41_spill] sm:$0xff] }
 0x2cc   : > { %3439 = vmatprep.mubr.bf16.mxu1 %v7940_v60  ;;  %v1984_v18 = vpop.f32.mrf.mxu0 }
 0x2cd   : > { %v7175_v48 = vpop.f32.mrf.mxu1  ;;  %v7181_v25 = vpack.c.bf16 %v2116_v21, %v2112_v26  ;;  %7942 = vst [vmem:[#allocation33_spill] sm:$0xff] %v7183_v31  ;;  %v1985_v4 = vadd.f32 %v1984_v18, %v1792_v15  ;;  %v1800_v18 = vadd.f32 %v7097_v54, %v6773_v9  ;;  %v2119_v27 = vmax.f32 %v1983_v12, 0.0 }
 0x2ce   : > { %v1986_v3 = vpop.f32.mrf.mxu0  ;;  %v1806_v54 = vadd.f32 %v7118_v14, %v6781_v6  ;;  %v7948_v14 = vld [vmem:[#allocation44_spill] sm:$0xff] }
 0x2cf   : > { %7941 = vst [vmem:[#allocation32_spill] sm:$0xff] %v7181_v25  ;;  %v7185_v41 = vpop.f32.mrf.mxu1  ;;  %v1987_v16 = vadd.f32 %v1986_v3, %v1794_v2  ;;  %3284 = vmatprep.mubr.bf16.mxu0 %v7181_v25  ;;  %v2120_v1 = vmax.f32 %v1985_v4, 0.0  ;;  %v1802_v2 = vadd.f32 %v7103_v46, %v6781_v6  ;;  %v1804_v3 = vadd.f32 %v7113_v29, %v6773_v9 }
 0x2d0   : > { %v1988_v60 = vpop.f32.mrf.mxu0  ;;  %3285 = vmatmul.mubr.bf16.gmra.mxu0 %v7183_v31 }
 0x2d1   : > { %v7190_v5 = vpop.f32.mrf.mxu1  ;;  %v1989_v47 = vadd.f32 %v1988_v60, %v1796_v0  ;;  %v2123_v26 = vmax.f32 %v1987_v16, 0.0 }
 0x2d2   : > { %v1992_v53 = vpop.f32.mrf.mxu0 }
 0x2d3   : > { %v7193_v21 = vpop.f32.mrf.mxu1  ;;  %3440 = vmatmul.mubr.bf16.gmra.mxu1 %v7943_v43  ;;  %v2124_v38 = vmax.f32 %v1989_v47, 0.0  ;;  %v7207_v16 = vpack.c.bf16 %v2123_v26, %v2119_v27  ;;  %v1993_v43 = vadd.f32 %v1992_v53, %v1800_v18  ;;  %v7947_v27 = vld [vmem:[#allocation43_spill] sm:$0xff] }
 0x2d4   : > { %3447 = vmatprep.mubr.bf16.mxu1 %v7944_v56  ;;  %v1994_v50 = vpop.f32.mrf.mxu0 }
 0x2d5   : > { %v7199_v15 = vpop.f32.mrf.mxu1  ;;  %v7205_v0 = vpack.c.bf16 %v2124_v38, %v2120_v1  ;;  %7946 = vst [vmem:[#allocation35_spill] sm:$0xff] %v7207_v16  ;;  %v1995_v12 = vadd.f32 %v1994_v50, %v1802_v2  ;;  %v1810_v50 = vadd.f32 %v7121_v40, %v6773_v9  ;;  %v2127_v53 = vmax.f32 %v1993_v43, 0.0 }
 0x2d6   : > { %v1996_v4 = vpop.f32.mrf.mxu0  ;;  %v1816_v40 = vadd.f32 %v7142_v8, %v6781_v6  ;;  %v7952_v8 = vld [vmem:[#allocation46_spill] sm:$0xff] }
 0x2d7   : > { %7945 = vst [vmem:[#allocation34_spill] sm:$0xff] %v7205_v0  ;;  %v7209_v60 = vpop.f32.mrf.mxu1  ;;  %v1997_v47 = vadd.f32 %v1996_v4, %v1804_v3  ;;  %3294 = vmatprep.mubr.bf16.mxu0 %v7205_v0  ;;  %v2128_v31 = vmax.f32 %v1995_v12, 0.0  ;;  %v1812_v3 = vadd.f32 %v7127_v19, %v6781_v6  ;;  %v1814_v4 = vadd.f32 %v7137_v35, %v6773_v9 }
 0x2d8   : > { %v1998_v56 = vpop.f32.mrf.mxu0  ;;  %3295 = vmatmul.mubr.bf16.gmra.mxu0 %v7207_v16 }
 0x2d9   : > { %v7214_v46 = vpop.f32.mrf.mxu1  ;;  %v1999_v29 = vadd.f32 %v1998_v56, %v1806_v54  ;;  %v2131_v38 = vmax.f32 %v1997_v47, 0.0 }
 0x2da   : > { %v2002_v1 = vpop.f32.mrf.mxu0 }
 0x2db   : > { %v7217_v26 = vpop.f32.mrf.mxu1  ;;  %3448 = vmatmul.mubr.bf16.gmra.mxu1 %v7947_v27  ;;  %v2132_v25 = vmax.f32 %v1999_v29, 0.0  ;;  %v7231_v47 = vpack.c.bf16 %v2131_v38, %v2127_v53  ;;  %v2003_v27 = vadd.f32 %v2002_v1, %v1810_v50  ;;  %v7951_v53 = vld [vmem:[#allocation45_spill] sm:$0xff] }
 0x2dc   : > { %3455 = vmatprep.mubr.bf16.mxu1 %v7948_v14  ;;  %v2004_v18 = vpop.f32.mrf.mxu0 }
 0x2dd   : > { %v7223_v2 = vpop.f32.mrf.mxu1  ;;  %v7229_v54 = vpack.c.bf16 %v2132_v25, %v2128_v31  ;;  %7950 = vst [vmem:[#allocation37_spill] sm:$0xff] %v7231_v47  ;;  %v2005_v43 = vadd.f32 %v2004_v18, %v1812_v3  ;;  %v1820_v18 = vadd.f32 %v7145_v37, %v6773_v9  ;;  %v2135_v1 = vmax.f32 %v2003_v27, 0.0 }
 0x2de   : > { %v2006_v12 = vpop.f32.mrf.mxu0 }
 0x2df   : > { %7949 = vst [vmem:[#allocation36_spill] sm:$0xff] %v7229_v54  ;;  %v7233_v56 = vpop.f32.mrf.mxu1  ;;  %v2007_v29 = vadd.f32 %v2006_v12, %v1814_v4  ;;  %3304 = vmatprep.mubr.bf16.mxu0 %v7229_v54  ;;  %v2136_v16 = vmax.f32 %v2005_v43, 0.0  ;;  %v1822_v4 = vadd.f32 %v7151_v51, %v6781_v6  ;;  %v1824_v12 = vadd.f32 %v7161_v63, %v6773_v9  ;;  %v7954_v9 = vld [vmem:[#allocation47_spill] sm:$0xff] }
 0x2e0   : > { %v2008_v14 = vpop.f32.mrf.mxu0  ;;  %3305 = vmatmul.mubr.bf16.gmra.mxu0 %v7231_v47 }
 0x2e1   : > { %v7238_v19 = vpop.f32.mrf.mxu1  ;;  %v2009_v35 = vadd.f32 %v2008_v14, %v1816_v40  ;;  %v2139_v25 = vmax.f32 %v2007_v29, 0.0 }
 0x2e2   : > { %v2012_v31 = vpop.f32.mrf.mxu0 }
 0x2e3   : > { %v7241_v38 = vpop.f32.mrf.mxu1  ;;  %3456 = vmatmul.mubr.bf16.gmra.mxu1 %v7951_v53  ;;  %v2140_v0 = vmax.f32 %v2009_v35, 0.0  ;;  %v2303_v29 = vpack.c.bf16 %v2139_v25, %v2135_v1  ;;  %v1826_v35 = vadd.f32 %v7166_v61, %v6781_v6  ;;  %v2013_v27 = vadd.f32 %v2012_v31, %v1820_v18 }
 0x2e4   : > { %3463 = vmatprep.mubr.bf16.mxu1 %v7952_v8  ;;  %v2014_v50 = vpop.f32.mrf.mxu0 }
 0x2e5   : > { %v7247_v3 = vpop.f32.mrf.mxu1  ;;  %v2304_v40 = vpack.c.bf16 %v2140_v0, %v2136_v16  ;;  %v2015_v53 = vadd.f32 %v2014_v50, %v1822_v4  ;;  %v7955_v16 = vld [vmem:[#allocation48_spill] sm:$0xff]  ;;  %v2143_v25 = vmax.f32 %v2013_v27, 0.0 }
 0x2e6   : > { %7953 = vst [vmem:[#allocation38_spill] sm:$0xff] %v7247_v3  ;;  %v2016_v14 = vpop.f32.mrf.mxu0 }
 0x2e7   : > { %v7253_v43 = vpop.f32.mrf.mxu1  ;;  %v2017_v37 = vadd.f32 %v2016_v14, %v1824_v12  ;;  %3314 = vmatprep.mubr.bf16.mxu0 %v2304_v40  ;;  %v2144_v63 = vmax.f32 %v2015_v53, 0.0 }
 0x2e8   : > { %v2018_v8 = vpop.f32.mrf.mxu0  ;;  %3315 = vmatmul.mubr.bf16.gmra.mxu0 %v2303_v29 }
 0x2e9   : > { %v7257_v47 = vpop.f32.mrf.mxu1  ;;  %v2019_v51 = vadd.f32 %v2018_v8, %v1826_v35  ;;  %v2147_v54 = vmax.f32 %v2017_v37, 0.0 }
 0x2eb   : > { %v7259_v3 = vpop.f32.mrf.mxu1  ;;  %3464 = vmatmul.mubr.bf16.gmra.mxu1 %v7954_v9  ;;  %v2148_v0 = vmax.f32 %v2019_v51, 0.0  ;;  %v2307_v1 = vpack.c.bf16 %v2147_v54, %v2143_v25 }
 0x2ec   : > { %3471 = vmatprep.mubr.bf16.mxu1 %v7955_v16 }
 0x2ed   : > { %v7263_v6 = vpop.f32.mrf.mxu1  ;;  %v2308_v61 = vpack.c.bf16 %v2148_v0, %v2144_v63 }
 0x2ef   : > { %v7265_v31 = vpop.f32.mrf.mxu1  ;;  %3324 = vmatprep.mubr.bf16.mxu0 %v2308_v61 }
 0x2f0   : > { %3325 = vmatmul.mubr.bf16.gmra.mxu0 %v2307_v1 }
 0x2f1   : > { %v7267_v18 = vpop.f32.mrf.mxu1  ;;  %3528 = vmatprep.mubr.bf16.mxu0 %v6832_v32 }
 0x2f3   : > { %v7270_v50 = vpop.f32.mrf.mxu1  ;;  %3472 = vmatmul.mubr.bf16.gmra.mxu1 %v6809_v58 }
 0x2f4   : > { %3479 = vmatprep.mubr.bf16.mxu1 %v6815_v11 }
 0x2f5   : > { %v7274_v4 = vpop.f32.mrf.mxu1 }
 0x2f7   : > { %v7276_v12 = vpop.f32.mrf.mxu1 }
 0x2f8   : > { %3529 = vmatmul.mubr.bf16.vlgmr.msra.gmra.mxu0 %v6839_v45 }
 0x2f9   : > { %v7278_v14 = vpop.f32.mrf.mxu1  ;;  %3536 = vmatprep.mubr.bf16.mxu0 %v6878_v34 }
 0x2fb   : > { %v7282_v54 = vpop.f32.mrf.mxu1  ;;  %3480 = vmatmul.mubr.bf16.gmra.mxu1 %v6849_v42 }
 0x2fc   : > { %3487 = vmatprep.mubr.bf16.mxu1 %v6856_v24 }
 0x2fd   : > { %v7286_v32 = vpop.f32.mrf.mxu1 }
 0x2ff   : > { %v7288_v58 = vpop.f32.mrf.mxu1 }
 0x300   : > { %3537 = vmatmul.mubr.bf16.gmra.mxu0 %v6884_v28 }
 0x301   : > { %v7290_v11 = vpop.f32.mrf.mxu1  ;;  %3544 = vmatprep.mubr.bf16.mxu0 %v6920_v20 }
 0x303   : > { %v7294_v35 = vpop.f32.mrf.mxu1  ;;  %3488 = vmatmul.mubr.bf16.gmra.mxu1 %v6895_v23 }
 0x304   : > { %3640 = vmatprep.mubr.bf16.mxu1 %v2304_v40 }
 0x305   : > { %v7297_v45 = vpop.f32.mrf.mxu1 }
 0x307   : > { %v7299_v42 = vpop.f32.mrf.mxu1 }
 0x308   : > { %3545 = vmatmul.mubr.bf16.gmra.mxu0 %v6926_v36 }
 0x309   : > { %v7301_v24 = vpop.f32.mrf.mxu1  ;;  %3552 = vmatprep.mubr.bf16.mxu0 %v6962_v7 }
 0x30b   : > { %v7305_v34 = vpop.f32.mrf.mxu1  ;;  %3641 = vmatmul.mubr.bf16.vlgmr.msra.gmra.mxu1 %v2303_v29 }
 0x30c   : > { %3648 = vmatprep.mubr.bf16.mxu1 %v2308_v61 }
 0x30d   : > { %v7307_v28 = vpop.f32.mrf.mxu1 }
 0x30f   : > { %v7309_v20 = vpop.f32.mrf.mxu1 }
 0x310   : > { %3553 = vmatmul.mubr.bf16.gmra.mxu0 %v6968_v39 }
 0x311   : > { %v7311_v23 = vpop.f32.mrf.mxu1  ;;  %3560 = vmatprep.mubr.bf16.mxu0 %v7003_v22 }
 0x313   : > { %v7315_v40 = vpop.f32.mrf.mxu1  ;;  %3649 = vmatmul.mubr.bf16.gmra.mxu1 %v2307_v1 }
 0x315   : > { %v7317_v36 = vpop.f32.mrf.mxu1 }
 0x317   : > { %v7319_v7 = vpop.f32.mrf.mxu1 }
 0x318   : > { %3561 = vmatmul.mubr.bf16.gmra.mxu0 %v7006_v49 }
 0x319   : > { %v7321_v53 = vpop.f32.mrf.mxu1  ;;  %3568 = vmatprep.mubr.bf16.mxu0 %v7032_v52 }
 0x31b   : > { %v7325_v29 = vpop.f32.mrf.mxu1 }
 0x31d   : > { %v7327_v37 = vpop.f32.mrf.mxu1 }
 0x31f   : > { %v7329_v39 = vpop.f32.mrf.mxu1 }
 0x320   : > { %3569 = vmatmul.mubr.bf16.gmra.mxu0 %v7034_v17 }
 0x321   : > { %v7331_v22 = vpop.f32.mrf.mxu1  ;;  %3576 = vmatprep.mubr.bf16.mxu0 %v7060_v55 }
 0x323   : > { %v7335_v27 = vpop.f32.mrf.mxu1 }
 0x325   : > { %v7337_v8 = vpop.f32.mrf.mxu1 }
 0x327   : > { %v7339_v51 = vpop.f32.mrf.mxu1 }
 0x328   : > { %3577 = vmatmul.mubr.bf16.gmra.mxu0 %v7062_v57 }
 0x329   : > { %v7341_v49 = vpop.f32.mrf.mxu1  ;;  %3584 = vmatprep.mubr.bf16.mxu0 %v7085_v33  ;;  %v2149_v33 = vld [vmem:[#allocation2 + $0x2b0] sm:$0xff] }
 0x32b   : > { %v7345_v52 = vpop.f32.mrf.mxu1 }
 0x32c   : > { %7956 = vst [vmem:[#allocation39_spill] sm:$0xff] %v7345_v52 }
 0x32d   : > { %v7347_v9 = vpop.f32.mrf.mxu1 }
 0x32e   : > { %7957 = vst [vmem:[#allocation40_spill] sm:$0xff] %v7347_v9 }
 0x32f   : > { %v7349_v63 = vpop.f32.mrf.mxu1 }
 0x330   : > { %7958 = vst [vmem:[#allocation41_spill] sm:$0xff] %v7349_v63  ;;  %3585 = vmatmul.mubr.bf16.gmra.mxu0 %v7087_v62  ;;  %v2150_v62 = vld [vmem:[#allocation2 + $0xd0] sm:$0xff] }
 0x331   : > { %v7351_v17 = vpop.f32.mrf.mxu1  ;;  %3592 = vmatprep.mubr.bf16.mxu0 %v7109_v13 }
 0x332   : > { %7959 = vst [vmem:[#allocation42_spill] sm:$0xff] %v7351_v17 }
 0x333   : > { %v7355_v55 = vpop.f32.mrf.mxu1 }
 0x334   : > { %7960 = vst [vmem:[#allocation43_spill] sm:$0xff] %v7355_v55 }
 0x335   : > { %v7357_v0 = vpop.f32.mrf.mxu1 }
 0x336   : > { %7961 = vst [vmem:[#allocation44_spill] sm:$0xff] %v7357_v0 }
 0x337   : > { %v7359_v16 = vpop.f32.mrf.mxu1 }
 0x338   : > { %7962 = vst [vmem:[#allocation45_spill] sm:$0xff] %v7359_v16  ;;  %v3176_v25 = vpop.f32.mrf.mxu0  ;;  %3593 = vmatmul.mubr.bf16.gmra.mxu0 %v7111_v10  ;;  %v2152_v16 = vld [vmem:[#allocation2 + $0x48] sm:$0xff] }
 0x339   : > { %v7361_v57 = vpop.f32.mrf.mxu1  ;;  %v3177_v61 = vadd.f32 %v3176_v25, %v7169_v44  ;;  %3600 = vmatprep.mubr.bf16.mxu0 %v7133_v59  ;;  %v2153_v44 = vld [vmem:[#allocation2 + $0x30] sm:$0xff] }
 0x33a   : > { %7963 = vst [vmem:[#allocation46_spill] sm:$0xff] %v7361_v57  ;;  %v3178_v13 = vpop.f32.mrf.mxu0 }
 0x33b   : > { %v7366_v1 = vpop.f32.mrf.mxu1  ;;  %v3657_v17 = vadd.f32 %v3177_v61, %v2149_v33  ;;  %v3179_v55 = vadd.f32 %v3178_v13, %v7175_v48  ;;  %v2155_v33 = vld [vmem:[#allocation2 + $0xf8] sm:$0xff] }
 0x33c   : > { %7964 = vst [vmem:[#allocation47_spill] sm:$0xff] %v7366_v1  ;;  %v3180_v63 = vpop.f32.mrf.mxu0 }
 0x33d   : > { %v7369_v0 = vpop.f32.mrf.mxu1  ;;  %3753 = vst [vmem:[#allocation2 + $0x2b0] sm:$0xff] %v3657_v17  ;;  %v3658_v57 = vadd.f32 %v3179_v55, %v2150_v62  ;;  %v3181_v9 = vadd.f32 %v3180_v63, %v7185_v41  ;;  %v7965_v55 = vld [vmem:[#allocation30_spill] sm:$0xff] }
 0x33e   : > { %v3182_v25 = vpop.f32.mrf.mxu0  ;;  %v2156_v63 = vld [vmem:[#allocation2 + $0x78] sm:$0xff] }
 0x33f   : > { %v7372_v10 = vpop.f32.mrf.mxu1  ;;  %3754 = vst [vmem:[#allocation2 + $0xd0] sm:$0xff] %v3658_v57  ;;  %v3660_v59 = vadd.f32 %v3181_v9, %v2152_v16  ;;  %v3183_v1 = vadd.f32 %v3182_v25, %v7190_v5  ;;  %v2158_v57 = vld [vmem:[#allocation2 + $0xe0] sm:$0xff] }
 0x340   : > { %v3186_v48 = vpop.f32.mrf.mxu0  ;;  %3601 = vmatmul.mubr.bf16.gmra.mxu0 %v7135_v30 }
 0x341   : > { %v7375_v52 = vpop.f32.mrf.mxu1  ;;  %3756 = vst [vmem:[#allocation2 + $0x48] sm:$0xff] %v3660_v59  ;;  %v3661_v61 = vadd.f32 %v3183_v1, %v2153_v44  ;;  %v3187_v17 = vadd.f32 %v3186_v48, %v7193_v21  ;;  %3608 = vmatprep.mubr.bf16.mxu0 %v7965_v55  ;;  %v2159_v21 = vld [vmem:[#allocation2 + $0x2f8] sm:$0xff] }
 0x342   : > { %v3188_v62 = vpop.f32.mrf.mxu0 }
 0x343   : > { %v7380_v41 = vpop.f32.mrf.mxu1  ;;  %3757 = vst [vmem:[#allocation2 + $0x30] sm:$0xff] %v3661_v61  ;;  %v3663_v9 = vadd.f32 %v3187_v17, %v2155_v33  ;;  %v3189_v5 = vadd.f32 %v3188_v62, %v7199_v15  ;;  %v2161_v33 = vld [vmem:[#allocation2 + $0x2a0] sm:$0xff] }
 0x344   : > { %v3190_v13 = vpop.f32.mrf.mxu0  ;;  %v7966_v17 = vld [vmem:[#allocation31_spill] sm:$0xff]  ;;  %v7967_v62 = vld [vmem:[#allocation32_spill] sm:$0xff] }
 0x345   : > { %v7383_v16 = vpop.f32.mrf.mxu1  ;;  %3759 = vst [vmem:[#allocation2 + $0xf8] sm:$0xff] %v3663_v9  ;;  %v3664_v30 = vadd.f32 %v3189_v5, %v2156_v63  ;;  %v3191_v1 = vadd.f32 %v3190_v13, %v7209_v60  ;;  %v2162_v60 = vld [vmem:[#allocation2 + $0x168] sm:$0xff] }
 0x346   : > { %v3192_v25 = vpop.f32.mrf.mxu0 }
 0x347   : > { %v7386_v44 = vpop.f32.mrf.mxu1  ;;  %3760 = vst [vmem:[#allocation2 + $0x78] sm:$0xff] %v3664_v30  ;;  %v3666_v59 = vadd.f32 %v3191_v1, %v2158_v57  ;;  %v3193_v48 = vadd.f32 %v3192_v25, %v7214_v46  ;;  %v2164_v46 = vld [vmem:[#allocation2 + $0x40] sm:$0xff] }
 0x348   : > { %v3196_v15 = vpop.f32.mrf.mxu0  ;;  %3609 = vmatmul.mubr.bf16.gmra.mxu0 %v7966_v17 }
 0x349   : > { %v7389_v61 = vpop.f32.mrf.mxu1  ;;  %3762 = vst [vmem:[#allocation2 + $0xe0] sm:$0xff] %v3666_v59  ;;  %v3667_v55 = vadd.f32 %v3193_v48, %v2159_v21  ;;  %v3197_v63 = vadd.f32 %v3196_v15, %v7217_v26  ;;  %3616 = vmatprep.mubr.bf16.mxu0 %v7967_v62  ;;  %v2165_v21 = vld [vmem:[#allocation2] sm:$0xff] }
 0x34a   : > { %v3198_v9 = vpop.f32.mrf.mxu0 }
 0x34b   : > { %v4583_v5 = vpop.f32.mrf.mxu1  ;;  %3763 = vst [vmem:[#allocation2 + $0x2f8] sm:$0xff] %v3667_v55  ;;  %v3669_v13 = vadd.f32 %v3197_v63, %v2161_v33  ;;  %v3199_v57 = vadd.f32 %v3198_v9, %v7223_v2  ;;  %v2167_v55 = vld [vmem:[#allocation2 + $0xe8] sm:$0xff] }
 0x34c   : > { %v3200_v30 = vpop.f32.mrf.mxu0  ;;  %v7968_v2 = vld [vmem:[#allocation33_spill] sm:$0xff] }
 0x34d   : > { %v4584_v1 = vpop.f32.mrf.mxu1  ;;  %3765 = vst [vmem:[#allocation2 + $0x2a0] sm:$0xff] %v3669_v13  ;;  %v3670_v25 = vadd.f32 %v3199_v57, %v2162_v60  ;;  %v3201_v17 = vadd.f32 %v3200_v30, %v7233_v56  ;;  %v7969_v56 = vld [vmem:[#allocation34_spill] sm:$0xff] }
 0x34e   : > { %v7396_v59 = vadd.f32 %v4584_v1, %v4583_v5  ;;  %v3202_v26 = vpop.f32.mrf.mxu0  ;;  %v2168_v5 = vld [vmem:[#allocation2 + $0x68] sm:$0xff]  ;;  %v7970_v1 = vld [vmem:[#allocation38_spill] sm:$0xff] }
 0x34f   : > { %v4586_v48 = vpop.f32.mrf.mxu1  ;;  %3766 = vst [vmem:[#allocation2 + $0x168] sm:$0xff] %v3670_v25  ;;  %v3672_v15 = vadd.f32 %v3201_v17, %v2164_v46  ;;  %v3203_v62 = vadd.f32 %v3202_v26, %v7238_v19  ;;  %v2170_v25 = vld [vmem:[#allocation2 + $0xa8] sm:$0xff] }
 0x350   : > { %v3206_v33 = vpop.f32.mrf.mxu0  ;;  %3617 = vmatmul.mubr.bf16.gmra.mxu0 %v7968_v2 }
 0x351   : > { %v4587_v63 = vpop.f32.mrf.mxu1  ;;  %3768 = vst [vmem:[#allocation2 + $0x40] sm:$0xff] %v3672_v15  ;;  %v3673_v9 = vadd.f32 %v3203_v62, %v2165_v21  ;;  %v3207_v60 = vadd.f32 %v3206_v33, %v7241_v38  ;;  %3624 = vmatprep.mubr.bf16.mxu0 %v7969_v56  ;;  %v2171_v38 = vld [vmem:[#allocation2 + $0x20] sm:$0xff] }
 0x352   : > { %v7401_v13 = vadd.f32 %v4587_v63, %v4586_v48  ;;  %v3208_v57 = vpop.f32.mrf.mxu0  ;;  %v7971_v56 = vld [vmem:[#allocation35_spill] sm:$0xff] }
 0x353   : > { %v4589_v30 = vpop.f32.mrf.mxu1  ;;  %3769 = vst [vmem:[#allocation2] sm:$0xff] %v3673_v9  ;;  %v3675_v46 = vadd.f32 %v3207_v60, %v2167_v55  ;;  %v3209_v19 = vadd.f32 %v3208_v57, %v7970_v1  ;;  %v2173_v9 = vld [vmem:[#allocation2 + $0x220] sm:$0xff] }
 0x354   : > { %v3210_v17 = vpop.f32.mrf.mxu0 }
 0x355   : > { %v4590_v26 = vpop.f32.mrf.mxu1  ;;  %3771 = vst [vmem:[#allocation2 + $0xe8] sm:$0xff] %v3675_v46  ;;  %v3676_v2 = vadd.f32 %v3209_v19, %v2168_v5  ;;  %v3211_v21 = vadd.f32 %v3210_v17, %v7253_v43  ;;  %v7972_v43 = vld [vmem:[#allocation36_spill] sm:$0xff]  ;;  %v2176_v17 = vld [vmem:[#allocation2 + $0x130] sm:$0xff] }
 0x356   : > { %v7406_v15 = vadd.f32 %v4590_v26, %v4589_v30  ;;  %v3212_v48 = vpop.f32.mrf.mxu0  ;;  %v2174_v30 = vld [vmem:[#allocation2 + $0x258] sm:$0xff] }
 0x357   : > { %v4592_v62 = vpop.f32.mrf.mxu1  ;;  %3772 = vst [vmem:[#allocation2 + $0x68] sm:$0xff] %v3676_v2  ;;  %v3678_v33 = vadd.f32 %v3211_v21, %v2170_v25  ;;  %v3213_v63 = vadd.f32 %v3212_v48, %v7257_v47 }
 0x358   : > { %v3216_v55 = vpop.f32.mrf.mxu0  ;;  %3625 = vmatmul.mubr.bf16.gmra.mxu0 %v7971_v56 }
 0x359   : > { %v4593_v60 = vpop.f32.mrf.mxu1  ;;  %3774 = vst [vmem:[#allocation2 + $0xa8] sm:$0xff] %v3678_v33  ;;  %v3679_v57 = vadd.f32 %v3213_v63, %v2171_v38  ;;  %v3217_v5 = vadd.f32 %v3216_v55, %v7259_v3  ;;  %3632 = vmatprep.mubr.bf16.mxu0 %v7972_v43  ;;  %v2177_v3 = vld [vmem:[#allocation2 + $0x158] sm:$0xff] }
 0x35a   : > { %v7411_v46 = vadd.f32 %v4593_v60, %v4592_v62  ;;  %v3218_v1 = vpop.f32.mrf.mxu0  ;;  %v2179_v60 = vld [vmem:[#allocation2 + $0x2e0] sm:$0xff] }
 0x35b   : > { %v4595_v19 = vpop.f32.mrf.mxu1  ;;  %3775 = vst [vmem:[#allocation2 + $0x20] sm:$0xff] %v3679_v57  ;;  %v3681_v25 = vadd.f32 %v3217_v5, %v2173_v9  ;;  %v3219_v47 = vadd.f32 %v3218_v1, %v7263_v6  ;;  %v7973_v6 = vld [vmem:[#allocation37_spill] sm:$0xff] }
 0x35c   : > { %v3220_v26 = vpop.f32.mrf.mxu0 }
 0x35d   : > { %v4596_v2 = vpop.f32.mrf.mxu1  ;;  %3777 = vst [vmem:[#allocation2 + $0x220] sm:$0xff] %v3681_v25  ;;  %v3682_v21 = vadd.f32 %v3219_v47, %v2174_v30  ;;  %v3221_v38 = vadd.f32 %v3220_v26, %v7265_v31  ;;  %v2180_v31 = vld [vmem:[#allocation2 + $0x1a8] sm:$0xff]  ;;  %v2182_v47 = vld [vmem:[#allocation2 + $0x80] sm:$0xff] }
 0x35e   : > { %v7416_v48 = vadd.f32 %v4596_v2, %v4595_v19  ;;  %v3222_v62 = vpop.f32.mrf.mxu0 }
 0x35f   : > { %v4598_v33 = vpop.f32.mrf.mxu1  ;;  %3778 = vst [vmem:[#allocation2 + $0x258] sm:$0xff] %v3682_v21  ;;  %v3684_v63 = vadd.f32 %v3221_v38, %v2176_v17  ;;  %v3223_v55 = vadd.f32 %v3222_v62, %v7267_v18  ;;  %v2183_v38 = vld [vmem:[#allocation2 + $0x188] sm:$0xff] }
 0x360   : > { %v3226_v9 = vpop.f32.mrf.mxu0  ;;  %3633 = vmatmul.mubr.bf16.gmra.mxu0 %v7973_v6  ;;  %v2186_v6 = vld [vmem:[#allocation2 + $0x190] sm:$0xff] }
 0x361   : > { %v4599_v56 = vpop.f32.mrf.mxu1  ;;  %3780 = vst [vmem:[#allocation2 + $0x130] sm:$0xff] %v3684_v63  ;;  %v3685_v57 = vadd.f32 %v3223_v55, %v2177_v3  ;;  %v3227_v5 = vadd.f32 %v3226_v9, %v7270_v50  ;;  %v2185_v63 = vld [vmem:[#allocation2 + $0x38] sm:$0xff] }
 0x362   : > { %v7421_v43 = vadd.f32 %v4599_v56, %v4598_v33  ;;  %v3228_v30 = vpop.f32.mrf.mxu0 }
 0x363   : > { %v4601_v1 = vpop.f32.mrf.mxu1  ;;  %3781 = vst [vmem:[#allocation2 + $0x158] sm:$0xff] %v3685_v57  ;;  %v3687_v19 = vadd.f32 %v3227_v5, %v2179_v60  ;;  %v3229_v25 = vadd.f32 %v3228_v30, %v7274_v4  ;;  %v2188_v30 = vld [vmem:[#allocation2 + $0x250] sm:$0xff] }
 0x364   : > { %v3230_v18 = vpop.f32.mrf.mxu0 }
 0x365   : > { %v4602_v17 = vpop.f32.mrf.mxu1  ;;  %3783 = vst [vmem:[#allocation2 + $0x2e0] sm:$0xff] %v3687_v19  ;;  %v3688_v26 = vadd.f32 %v3229_v25, %v2180_v31  ;;  %v3231_v2 = vadd.f32 %v3230_v18, %v7276_v12  ;;  %v2189_v18 = vld [vmem:[#allocation2 + $0x1c8] sm:$0xff] }
 0x366   : > { %v7425_v21 = vadd.f32 %v4602_v17, %v4601_v1  ;;  %v3232_v50 = vpop.f32.mrf.mxu0 }
 0x367   : > { %v4604_v3 = vpop.f32.mrf.mxu1  ;;  %3784 = vst [vmem:[#allocation2 + $0x1a8] sm:$0xff] %v3688_v26  ;;  %v3690_v62 = vadd.f32 %v3231_v2, %v2182_v47  ;;  %v3233_v33 = vadd.f32 %v3232_v50, %v7278_v14 }
 0x368   : > { %v3236_v55 = vpop.f32.mrf.mxu0 }
 0x369   : > { %v4605_v60 = vpop.f32.mrf.mxu1  ;;  %3786 = vst [vmem:[#allocation2 + $0x80] sm:$0xff] %v3690_v62  ;;  %v3691_v4 = vadd.f32 %v3233_v33, %v2183_v38  ;;  %v3237_v9 = vadd.f32 %v3236_v55, %v7282_v54  ;;  %v2191_v38 = vld [vmem:[#allocation2 + $0x100] sm:$0xff] }
 0x36a   : > { %v7429_v56 = vadd.f32 %v4605_v60, %v4604_v3  ;;  %v3238_v12 = vpop.f32.mrf.mxu0 }
 0x36b   : > { %v4607_v57 = vpop.f32.mrf.mxu1  ;;  %3787 = vst [vmem:[#allocation2 + $0x188] sm:$0xff] %v3691_v4  ;;  %v3693_v5 = vadd.f32 %v3237_v9, %v2185_v63  ;;  %v3239_v31 = vadd.f32 %v3238_v12, %v7286_v32  ;;  %v2192_v63 = vld [vmem:[#allocation2 + $0xb8] sm:$0xff]  ;;  %v2194_v9 = vld [vmem:[#allocation2 + $0x60] sm:$0xff] }
 0x36c   : > { %v3240_v1 = vpop.f32.mrf.mxu0 }
 0x36d   : > { %v4608_v19 = vpop.f32.mrf.mxu1  ;;  %3789 = vst [vmem:[#allocation2 + $0x38] sm:$0xff] %v3693_v5  ;;  %v3694_v14 = vadd.f32 %v3239_v31, %v2186_v6  ;;  %v3241_v25 = vadd.f32 %v3240_v1, %v7288_v58  ;;  %v2195_v31 = vld [vmem:[#allocation2 + $0x210] sm:$0xff] }
 0x36e   : > { %v7433_v47 = vadd.f32 %v4608_v19, %v4607_v57  ;;  %v3242_v54 = vpop.f32.mrf.mxu0 }
 0x36f   : > { %v4610_v17 = vpop.f32.mrf.mxu1  ;;  %3790 = vst [vmem:[#allocation2 + $0x190] sm:$0xff] %v3694_v14  ;;  %v3696_v26 = vadd.f32 %v3241_v25, %v2188_v30  ;;  %v3243_v2 = vadd.f32 %v3242_v54, %v7290_v11  ;;  %v2197_v14 = vld [vmem:[#allocation2 + $0x1e8] sm:$0xff] }
 0x370   : > { %v3246_v50 = vpop.f32.mrf.mxu0 }
 0x371   : > { %v4611_v3 = vpop.f32.mrf.mxu1  ;;  %3792 = vst [vmem:[#allocation2 + $0x250] sm:$0xff] %v3696_v26  ;;  %v3697_v32 = vadd.f32 %v3243_v2, %v2189_v18  ;;  %v3247_v62 = vadd.f32 %v3246_v50, %v7294_v35  ;;  %v2198_v26 = vld [vmem:[#allocation2 + $0x2d0] sm:$0xff] }
 0x372   : > { %v7437_v33 = vadd.f32 %v4611_v3, %v4610_v17  ;;  %v3248_v58 = vpop.f32.mrf.mxu0  ;;  %v2200_v3 = vld [vmem:[#allocation2 + $0x28] sm:$0xff] }
 0x373   : > { %v4613_v55 = vpop.f32.mrf.mxu1  ;;  %3793 = vst [vmem:[#allocation2 + $0x1c8] sm:$0xff] %v3697_v32  ;;  %v3699_v60 = vadd.f32 %v3247_v62, %v2191_v38  ;;  %v3249_v4 = vadd.f32 %v3248_v58, %v7297_v45 }
 0x374   : > { %v3250_v6 = vpop.f32.mrf.mxu0 }
 0x375   : > { %v4614_v12 = vpop.f32.mrf.mxu1  ;;  %3795 = vst [vmem:[#allocation2 + $0x100] sm:$0xff] %v3699_v60  ;;  %v3700_v11 = vadd.f32 %v3249_v4, %v2192_v63  ;;  %v3251_v57 = vadd.f32 %v3250_v6, %v7299_v42  ;;  %v2203_v6 = vld [vmem:[#allocation2 + $0x58] sm:$0xff] }
 0x376   : > { %v7441_v5 = vadd.f32 %v4614_v12, %v4613_v55  ;;  %v3252_v35 = vpop.f32.mrf.mxu0  ;;  %v2201_v55 = vld [vmem:[#allocation2 + $0x138] sm:$0xff] }
 0x377   : > { %v4616_v30 = vpop.f32.mrf.mxu1  ;;  %3796 = vst [vmem:[#allocation2 + $0xb8] sm:$0xff] %v3700_v11  ;;  %v3702_v1 = vadd.f32 %v3251_v57, %v2194_v9  ;;  %v3253_v19 = vadd.f32 %v3252_v35, %v7301_v24  ;;  %v2204_v35 = vld [vmem:[#allocation2 + $0x1c0] sm:$0xff] }
 0x378   : > { %v3256_v25 = vpop.f32.mrf.mxu0 }
 0x379   : > { %v4617_v18 = vpop.f32.mrf.mxu1  ;;  %3798 = vst [vmem:[#allocation2 + $0x60] sm:$0xff] %v3702_v1  ;;  %v3703_v45 = vadd.f32 %v3253_v19, %v2195_v31  ;;  %v3257_v54 = vadd.f32 %v3256_v25, %v7305_v34 }
 0x37a   : > { %v7445_v17 = vadd.f32 %v4617_v18, %v4616_v30  ;;  %v3258_v42 = vpop.f32.mrf.mxu0 }
 0x37b   : > { %v4619_v2 = vpop.f32.mrf.mxu1  ;;  %3799 = vst [vmem:[#allocation2 + $0x210] sm:$0xff] %v3703_v45  ;;  %v3705_v38 = vadd.f32 %v3257_v54, %v2197_v14  ;;  %v3259_v50 = vadd.f32 %v3258_v42, %v7307_v28  ;;  %v2206_v14 = vld [vmem:[#allocation2 + $0x70] sm:$0xff] }
 0x37c   : > { %v3260_v32 = vpop.f32.mrf.mxu0 }
 0x37d   : > { %v4620_v62 = vpop.f32.mrf.mxu1  ;;  %3801 = vst [vmem:[#allocation2 + $0x1e8] sm:$0xff] %v3705_v38  ;;  %v3706_v24 = vadd.f32 %v3259_v50, %v2198_v26  ;;  %v3261_v63 = vadd.f32 %v3260_v32, %v7309_v20  ;;  %v2207_v26 = vld [vmem:[#allocation2 + $0x18] sm:$0xff]  ;;  %v2209_v50 = vld [vmem:[#allocation2 + $0x240] sm:$0xff] }
 0x37e   : > { %v7449_v58 = vadd.f32 %v4620_v62, %v4619_v2  ;;  %v3262_v34 = vpop.f32.mrf.mxu0 }
 0x37f   : > { %v4622_v60 = vpop.f32.mrf.mxu1  ;;  %3802 = vst [vmem:[#allocation2 + $0x2d0] sm:$0xff] %v3706_v24  ;;  %v3708_v4 = vadd.f32 %v3261_v63, %v2200_v3  ;;  %v3263_v9 = vadd.f32 %v3262_v34, %v7311_v23  ;;  %v2210_v63 = vld [vmem:[#allocation2 + $0x180] sm:$0xff] }
 0x380   : > { %v3266_v12 = vpop.f32.mrf.mxu0 }
 0x381   : > { %v4623_v11 = vpop.f32.mrf.mxu1  ;;  %3804 = vst [vmem:[#allocation2 + $0x28] sm:$0xff] %v3708_v4  ;;  %v3709_v28 = vadd.f32 %v3263_v9, %v2201_v55  ;;  %v3267_v57 = vadd.f32 %v3266_v12, %v7315_v40  ;;  %v2212_v4 = vld [vmem:[#allocation2 + $0x1a0] sm:$0xff] }
 0x382   : > { %v7453_v31 = vadd.f32 %v4623_v11, %v4622_v60  ;;  %v3268_v20 = vpop.f32.mrf.mxu0 }
 0x383   : > { %v4625_v30 = vpop.f32.mrf.mxu1  ;;  %3805 = vst [vmem:[#allocation2 + $0x138] sm:$0xff] %v3709_v28  ;;  %v3711_v1 = vadd.f32 %v3267_v57, %v2203_v6  ;;  %v3269_v19 = vadd.f32 %v3268_v20, %v7317_v36  ;;  %v2213_v28 = vld [vmem:[#allocation2 + $0xa0] sm:$0xff] }
 0x384   : > { %v3270_v25 = vpop.f32.mrf.mxu0 }
 0x385   : > { %v4626_v18 = vpop.f32.mrf.mxu1  ;;  %3807 = vst [vmem:[#allocation2 + $0x58] sm:$0xff] %v3711_v1  ;;  %v3712_v23 = vadd.f32 %v3269_v19, %v2204_v35  ;;  %v3271_v45 = vadd.f32 %v3270_v25, %v7319_v7 }
 0x386   : > { %v7457_v54 = vadd.f32 %v4626_v18, %v4625_v30  ;;  %v3272_v40 = vpop.f32.mrf.mxu0  ;;  %v2215_v30 = vld [vmem:[#allocation2 + $0x8] sm:$0xff]  ;;  %v2216_v18 = vld [vmem:[#allocation2 + $0x2c0] sm:$0xff] }
 0x387   : > { %v4628_v42 = vpop.f32.mrf.mxu1  ;;  %3808 = vst [vmem:[#allocation2 + $0x1c0] sm:$0xff] %v3712_v23  ;;  %v3714_v2 = vadd.f32 %v3271_v45, %v2206_v14  ;;  %v3273_v38 = vadd.f32 %v3272_v40, %v7321_v53  ;;  %v2218_v40 = vld [vmem:[#allocation2 + $0x290] sm:$0xff] }
 0x388   : > { %v3276_v3 = vpop.f32.mrf.mxu0 }
 0x389   : > { %v4629_v32 = vpop.f32.mrf.mxu1  ;;  %3810 = vst [vmem:[#allocation2 + $0x70] sm:$0xff] %v3714_v2  ;;  %v3715_v36 = vadd.f32 %v3273_v38, %v2207_v26  ;;  %v3277_v62 = vadd.f32 %v3276_v3, %v7325_v29  ;;  %v2219_v3 = vld [vmem:[#allocation2 + $0x2a8] sm:$0xff] }
 0x38a   : > { %v7461_v24 = vadd.f32 %v4629_v32, %v4628_v42  ;;  %v3278_v7 = vpop.f32.mrf.mxu0 }
 0x38b   : > { %v4631_v55 = vpop.f32.mrf.mxu1  ;;  %3811 = vst [vmem:[#allocation2 + $0x18] sm:$0xff] %v3715_v36  ;;  %v3717_v34 = vadd.f32 %v3277_v62, %v2209_v50  ;;  %v3279_v60 = vadd.f32 %v3278_v7, %v7327_v37 }
 0x38c   : > { %v3280_v9 = vpop.f32.mrf.mxu0 }
 0x38d   : > { %v4632_v6 = vpop.f32.mrf.mxu1  ;;  %3813 = vst [vmem:[#allocation2 + $0x240] sm:$0xff] %v3717_v34  ;;  %v3718_v53 = vadd.f32 %v3279_v60, %v2210_v63  ;;  %v3281_v12 = vadd.f32 %v3280_v9, %v7329_v39  ;;  %v2221_v63 = vld [vmem:[#allocation2 + $0x1e0] sm:$0xff]  ;;  %v2222_v9 = vld [vmem:[#allocation2 + $0x150] sm:$0xff] }
 0x38e   : > { %v7465_v11 = vadd.f32 %v4632_v6, %v4631_v55  ;;  %v3282_v29 = vpop.f32.mrf.mxu0  ;;  %v7974_v34 = vld [vmem:[#allocation39_spill] sm:$0xff] }
 0x38f   : > { %v4634_v57 = vpop.f32.mrf.mxu1  ;;  %3814 = vst [vmem:[#allocation2 + $0x180] sm:$0xff] %v3718_v53  ;;  %v3720_v35 = vadd.f32 %v3281_v12, %v2212_v4  ;;  %v3283_v20 = vadd.f32 %v3282_v29, %v7331_v22  ;;  %v7975_v12 = vld [vmem:[#allocation40_spill] sm:$0xff]  ;;  %v2224_v29 = vld [vmem:[#allocation2 + $0x1d0] sm:$0xff] }
 0x390   : > { %v3286_v1 = vpop.f32.mrf.mxu0 }
 0x391   : > { %v4635_v19 = vpop.f32.mrf.mxu1  ;;  %3816 = vst [vmem:[#allocation2 + $0x1a0] sm:$0xff] %v3720_v35  ;;  %v3721_v37 = vadd.f32 %v3283_v20, %v2213_v28  ;;  %v3287_v14 = vadd.f32 %v3286_v1, %v7335_v27  ;;  %v7976_v20 = vld [vmem:[#allocation41_spill] sm:$0xff] }
 0x392   : > { %v7469_v25 = vadd.f32 %v4635_v19, %v4634_v57  ;;  %v3288_v39 = vpop.f32.mrf.mxu0  ;;  %v2225_v19 = vld [vmem:[#allocation2 + $0x140] sm:$0xff] }
 0x393   : > { %v4637_v23 = vpop.f32.mrf.mxu1  ;;  %3817 = vst [vmem:[#allocation2 + $0xa0] sm:$0xff] %v3721_v37  ;;  %v3723_v45 = vadd.f32 %v3287_v14, %v2215_v30  ;;  %v3289_v26 = vadd.f32 %v3288_v39, %v7337_v8  ;;  %v7977_v39 = vld [vmem:[#allocation42_spill] sm:$0xff] }
 0x394   : > { %v3290_v42 = vpop.f32.mrf.mxu0 }
 0x395   : > { %v4638_v2 = vpop.f32.mrf.mxu1  ;;  %3819 = vst [vmem:[#allocation2 + $0x8] sm:$0xff] %v3723_v45  ;;  %v3724_v22 = vadd.f32 %v3289_v26, %v2216_v18  ;;  %v3291_v38 = vadd.f32 %v3290_v42, %v7339_v51  ;;  %v2227_v45 = vld [vmem:[#allocation2 + $0x160] sm:$0xff] }
 0x396   : > { %v7473_v50 = vadd.f32 %v4638_v2, %v4637_v23  ;;  %v3292_v27 = vpop.f32.mrf.mxu0  ;;  %v7978_v2 = vld [vmem:[#allocation43_spill] sm:$0xff] }
 0x397   : > { %v4640_v32 = vpop.f32.mrf.mxu1  ;;  %3820 = vst [vmem:[#allocation2 + $0x2c0] sm:$0xff] %v3724_v22  ;;  %v3726_v36 = vadd.f32 %v3291_v38, %v2218_v40  ;;  %v3293_v62 = vadd.f32 %v3292_v27, %v7341_v49 }
 0x398   : > { %v3296_v7 = vpop.f32.mrf.mxu0 }
 0x399   : > { %v4641_v55 = vpop.f32.mrf.mxu1  ;;  %3822 = vst [vmem:[#allocation2 + $0x290] sm:$0xff] %v3726_v36  ;;  %v3727_v8 = vadd.f32 %v3293_v62, %v2219_v3  ;;  %v3297_v60 = vadd.f32 %v3296_v7, %v7974_v34  ;;  %v2228_v3 = vld [vmem:[#allocation2 + $0x2d8] sm:$0xff]  ;;  %v7979_v62 = vld [vmem:[#allocation44_spill] sm:$0xff]  ;;  %v2230_v7 = vld [vmem:[#allocation2 + $0x170] sm:$0xff] }
 0x39a   : > { %v7477_v4 = vadd.f32 %v4641_v55, %v4640_v32  ;;  %v3298_v51 = vpop.f32.mrf.mxu0 }
 0x39b   : > { %v4643_v6 = vpop.f32.mrf.mxu1  ;;  %3823 = vst [vmem:[#allocation2 + $0x2a8] sm:$0xff] %v3727_v8  ;;  %v3729_v53 = vadd.f32 %v3297_v60, %v2221_v63  ;;  %v3299_v28 = vadd.f32 %v3298_v51, %v7975_v12  ;;  %v7980_v60 = vld [vmem:[#allocation45_spill] sm:$0xff] }
 0x39c   : > { %v3300_v57 = vpop.f32.mrf.mxu0 }
 0x39d   : > { %v4644_v35 = vpop.f32.mrf.mxu1  ;;  %3825 = vst [vmem:[#allocation2 + $0x1e0] sm:$0xff] %v3729_v53  ;;  %v3730_v49 = vadd.f32 %v3299_v28, %v2222_v9  ;;  %v3301_v30 = vadd.f32 %v3300_v57, %v7976_v20 }
 0x39e   : > { %v7481_v1 = vadd.f32 %v4644_v35, %v4643_v6  ;;  %v3302_v37 = vpop.f32.mrf.mxu0  ;;  %v2231_v6 = vld [vmem:[#allocation2 + $0x90] sm:$0xff]  ;;  %v2233_v35 = vld [vmem:[#allocation2 + $0x200] sm:$0xff] }
 0x39f   : > { %v4646_v14 = vpop.f32.mrf.mxu1  ;;  %3826 = vst [vmem:[#allocation2 + $0x150] sm:$0xff] %v3730_v49  ;;  %v3732_v18 = vadd.f32 %v3301_v30, %v2224_v29  ;;  %v3303_v23 = vadd.f32 %v3302_v37, %v7977_v39  ;;  %v7981_v29 = vld [vmem:[#allocation46_spill] sm:$0xff] }
 0x3a0   : > { %v3306_v26 = vpop.f32.mrf.mxu0 }
 0x3a1   : > { %v4647_v40 = vpop.f32.mrf.mxu1  ;;  %3828 = vst [vmem:[#allocation2 + $0x1d0] sm:$0xff] %v3732_v18  ;;  %v3733_v42 = vadd.f32 %v3303_v23, %v2225_v19  ;;  %v3307_v22 = vadd.f32 %v3306_v26, %v7978_v2  ;;  %v7982_v19 = vld [vmem:[#allocation47_spill] sm:$0xff] }
 0x3a2   : > { %v7485_v38 = vadd.f32 %v4647_v40, %v4646_v14  ;;  %v3308_v27 = vpop.f32.mrf.mxu0  ;;  %v2234_v18 = vld [vmem:[#allocation2 + $0xd8] sm:$0xff]  ;;  %v2236_v40 = vld [vmem:[#allocation2 + $0x2e8] sm:$0xff] }
 0x3a3   : > { %v4649_v32 = vpop.f32.mrf.mxu1  ;;  %3829 = vst [vmem:[#allocation2 + $0x140] sm:$0xff] %v3733_v42  ;;  %v3735_v36 = vadd.f32 %v3307_v22, %v2227_v45  ;;  %v3309_v63 = vadd.f32 %v3308_v27, %v7979_v62 }
 0x3a4   : > { %v3310_v55 = vpop.f32.mrf.mxu0 }
 0x3a5   : > { %v4650_v8 = vpop.f32.mrf.mxu1  ;;  %3831 = vst [vmem:[#allocation2 + $0x160] sm:$0xff] %v3735_v36  ;;  %v3736_v34 = vadd.f32 %v3309_v63, %v2228_v3  ;;  %v3311_v9 = vadd.f32 %v3310_v55, %v7980_v60  ;;  %v2239_v55 = vld [vmem:[#allocation2 + $0x88] sm:$0xff] }
 0x3a6   : > { %v7489_v51 = vadd.f32 %v4650_v8, %v4649_v32  ;;  %v3312_v53 = vpop.f32.mrf.mxu0  ;;  %v2237_v32 = vld [vmem:[#allocation2 + $0x260] sm:$0xff] }
 0x3a7   : > { %v4652_v12 = vpop.f32.mrf.mxu1  ;;  %3832 = vst [vmem:[#allocation2 + $0x2d8] sm:$0xff] %v3736_v34  ;;  %v3738_v28 = vadd.f32 %v3311_v9, %v2230_v7  ;;  %v3313_v57 = vadd.f32 %v3312_v53, %v7981_v29  ;;  %v2242_v29 = vld [vmem:[#allocation2 + $0x198] sm:$0xff] }
 0x3a8   : > { %v3316_v49 = vpop.f32.mrf.mxu0 }
 0x3a9   : > { %v4653_v20 = vpop.f32.mrf.mxu1  ;;  %3834 = vst [vmem:[#allocation2 + $0x170] sm:$0xff] %v3738_v28  ;;  %v3739_v30 = vadd.f32 %v3313_v57, %v2231_v6  ;;  %v3317_v37 = vadd.f32 %v3316_v49, %v7982_v19  ;;  %v2240_v6 = vld [vmem:[#allocation2 + $0x110] sm:$0xff] }
 0x3aa   : > { %v7493_v14 = vadd.f32 %v4653_v20, %v4652_v12  ;;  %v3318_v39 = vpop.f32.mrf.mxu0 }
 0x3ab   : > { %v4655_v23 = vpop.f32.mrf.mxu1  ;;  %3835 = vst [vmem:[#allocation2 + $0x90] sm:$0xff] %v3739_v30  ;;  %v3741_v45 = vadd.f32 %v3317_v37, %v2233_v35  ;;  %v3319_v26 = vadd.f32 %v3318_v39, %v7369_v0  ;;  %v2243_v30 = vld [vmem:[#allocation2 + $0x148] sm:$0xff] }
 0x3ac   : > { %v3320_v42 = vpop.f32.mrf.mxu0 }
 0x3ad   : > { %v4656_v2 = vpop.f32.mrf.mxu1  ;;  %3837 = vst [vmem:[#allocation2 + $0x200] sm:$0xff] %v3741_v45  ;;  %v3742_v22 = vadd.f32 %v3319_v26, %v2234_v18  ;;  %v3321_v3 = vadd.f32 %v3320_v42, %v7372_v10 }
 0x3ae   : > { %v7497_v27 = vadd.f32 %v4656_v2, %v4655_v23  ;;  %v3322_v36 = vpop.f32.mrf.mxu0 }
 0x3af   : > { %v4658_v62 = vpop.f32.mrf.mxu1  ;;  %3838 = vst [vmem:[#allocation2 + $0xd8] sm:$0xff] %v3742_v22  ;;  %v3744_v63 = vadd.f32 %v3321_v3, %v2236_v40  ;;  %v3323_v7 = vadd.f32 %v3322_v36, %v7375_v52 }
 0x3b0   : > { %v3326_v8 = vpop.f32.mrf.mxu0 }
 0x3b1   : > { %v4659_v34 = vpop.f32.mrf.mxu1  ;;  %3840 = vst [vmem:[#allocation2 + $0x2e8] sm:$0xff] %v3744_v63  ;;  %v3745_v0 = vadd.f32 %v3323_v7, %v2237_v32  ;;  %v3327_v60 = vadd.f32 %v3326_v8, %v7380_v41 }
 0x3b2   : > { %v7501_v9 = vadd.f32 %v4659_v34, %v4658_v62  ;;  %v3328_v10 = vpop.f32.mrf.mxu0 }
 0x3b3   : > { %v4661_v53 = vpop.f32.mrf.mxu1  ;;  %3841 = vst [vmem:[#allocation2 + $0x260] sm:$0xff] %v3745_v0  ;;  %v3747_v12 = vadd.f32 %v3327_v60, %v2239_v55  ;;  %v3329_v28 = vadd.f32 %v3328_v10, %v7383_v16  ;;  %v2157_v10 = vld [vmem:[#allocation2 + $0x128] sm:$0xff] }
 0x3b4   : > { %v3330_v57 = vpop.f32.mrf.mxu0 }
 0x3b5   : > { %v4662_v35 = vpop.f32.mrf.mxu1  ;;  %3843 = vst [vmem:[#allocation2 + $0x88] sm:$0xff] %v3747_v12  ;;  %v3748_v52 = vadd.f32 %v3329_v28, %v2240_v6  ;;  %v3331_v49 = vadd.f32 %v3330_v57, %v7386_v44  ;;  %v2151_v44 = vld [vmem:[#allocation2 + $0x10] sm:$0xff] }
 0x3b6   : > { %v7505_v20 = vadd.f32 %v4662_v35, %v4661_v53  ;;  %v3332_v41 = vpop.f32.mrf.mxu0 }
 0x3b7   : > { %v4664_v19 = vpop.f32.mrf.mxu1  ;;  %3844 = vst [vmem:[#allocation2 + $0x110] sm:$0xff] %v3748_v52  ;;  %v3750_v37 = vadd.f32 %v3331_v49, %v2242_v29  ;;  %v3333_v18 = vadd.f32 %v3332_v41, %v7389_v61  ;;  %v2154_v61 = vld [vmem:[#allocation2 + $0xf0] sm:$0xff]  ;;  %v2160_v52 = vld [vmem:[#allocation2 + $0x2b8] sm:$0xff] }
 0x3b8   : > { %v4695_v23 = vpop.f32.mrf.mxu0 }
 0x3b9   : > { %v4665_v39 = vpop.f32.mrf.mxu1  ;;  %3846 = vst [vmem:[#allocation2 + $0x198] sm:$0xff] %v3750_v37  ;;  %v3751_v16 = vadd.f32 %v3333_v18, %v2243_v30 }
 0x3ba   : > { %v7508_v45 = vadd.f32 %v4665_v39, %v4664_v19  ;;  %v4696_v40 = vpop.f32.mrf.mxu0  ;;  %v2163_v39 = vld [vmem:[#allocation2 + $0x178] sm:$0xff] }
 0x3bb   : > { %v4667_v26 = vpop.f32.mrf.mxu1  ;;  %3847 = vst [vmem:[#allocation2 + $0x148] sm:$0xff] %v3751_v16  ;;  %v4697_v42 = vadd.f32 %v4696_v40, %v4695_v23 }
 0x3bc   : > { %v4698_v22 = vpop.f32.mrf.mxu0 }
 0x3bd   : > { %v4668_v2 = vpop.f32.mrf.mxu1  ;;  %v3531_v3 = vadd.f32 %v4697_v42, %v7396_v59 }
 0x3be   : > { %v4699_v36 = vpop.f32.mrf.mxu0  ;;  %v4669_v40 = vadd.f32 %v4668_v2, %v4667_v26  ;;  %v2238_v26 = vld [vmem:[#allocation2 + $0x268] sm:$0xff] }
 0x3bf   : > { %v4670_v32 = vpop.f32.mrf.mxu1  ;;  %v3659_v62 = vadd.f32 %v3531_v3, %v2151_v44  ;;  %v4700_v63 = vadd.f32 %v4699_v36, %v4698_v22  ;;  %v2235_v44 = vld [vmem:[#allocation2 + $0x1d8] sm:$0xff] }
 0x3c0   : > { %v4701_v55 = vpop.f32.mrf.mxu0 }
 0x3c1   : > { %v4671_v7 = vpop.f32.mrf.mxu1  ;;  %3755 = vst [vmem:[#allocation2 + $0x10] sm:$0xff] %v3659_v62  ;;  %v3534_v8 = vadd.f32 %v4700_v63, %v7401_v13 }
 0x3c2   : > { %v4702_v0 = vpop.f32.mrf.mxu0 }
 0x3c3   : > { %v4673_v34 = vpop.f32.mrf.mxu1  ;;  %v3662_v60 = vadd.f32 %v3534_v8, %v2154_v61  ;;  %v4703_v6 = vadd.f32 %v4702_v0, %v4701_v55  ;;  %v2166_v61 = vld [vmem:[#allocation2 + $0x248] sm:$0xff]  ;;  %v4672_v8 = vadd.f32 %v4671_v7, %v4670_v32 }
 0x3c4   : > { %v4704_v12 = vpop.f32.mrf.mxu0 }
 0x3c5   : > { %v4674_v53 = vpop.f32.mrf.mxu1  ;;  %3758 = vst [vmem:[#allocation2 + $0xf0] sm:$0xff] %v3662_v60  ;;  %v3539_v59 = vadd.f32 %v4703_v6, %v7406_v15 }
 0x3c6   : > { %v4705_v29 = vpop.f32.mrf.mxu0 }
 0x3c7   : > { %v4676_v28 = vpop.f32.mrf.mxu1  ;;  %v3665_v57 = vadd.f32 %v3539_v59, %v2157_v10  ;;  %v4706_v35 = vadd.f32 %v4705_v29, %v4704_v12  ;;  %v2169_v29 = vld [vmem:[#allocation2 + $0x228] sm:$0xff] }
 0x3c8   : > { %v4707_v30 = vpop.f32.mrf.mxu0 }
 0x3c9   : > { %v4677_v49 = vpop.f32.mrf.mxu1  ;;  %3761 = vst [vmem:[#allocation2 + $0x128] sm:$0xff] %v3665_v57  ;;  %v3542_v13 = vadd.f32 %v4706_v35, %v7411_v46 }
 0x3ca   : > { %v4708_v41 = vpop.f32.mrf.mxu0 }
 0x3cb   : > { %v4779_v19 = vpop.f32.mrf.mxu1  ;;  %v3668_v37 = vadd.f32 %v3542_v13, %v2160_v52  ;;  %v4709_v18 = vadd.f32 %v4708_v41, %v4707_v30  ;;  %v4675_v52 = vadd.f32 %v4674_v53, %v4673_v34  ;;  %v2241_v13 = vld [vmem:[#allocation2 + $0x108] sm:$0xff] }
 0x3cc   : > { %v4710_v23 = vpop.f32.mrf.mxu0 }
 0x3cd   : > { %v4780_v16 = vpop.f32.mrf.mxu1  ;;  %3764 = vst [vmem:[#allocation2 + $0x2b8] sm:$0xff] %v3668_v37  ;;  %v3547_v15 = vadd.f32 %v4709_v18, %v7416_v48 }
 0x3ce   : > { %v4781_v42 = vadd.f32 %v4780_v16, %v4779_v19  ;;  %v4711_v22 = vpop.f32.mrf.mxu0 }
 0x3cf   : > { %v4782_v3 = vpop.f32.mrf.mxu1  ;;  %v3671_v36 = vadd.f32 %v3547_v15, %v2163_v39  ;;  %v4712_v63 = vadd.f32 %v4711_v22, %v4710_v23  ;;  %v2172_v39 = vld [vmem:[#allocation2 + $0x1b0] sm:$0xff] }
 0x3d0   : > { %v3643_v62 = vadd.f32 %v4781_v42, %v4669_v40  ;;  %v4713_v46 = vpop.f32.mrf.mxu0  ;;  %v4678_v40 = vadd.f32 %v4677_v49, %v4676_v28  ;;  %v2244_v42 = vld [vmem:[#allocation2 + $0x118] sm:$0xff] }
 0x3d1   : > { %v4783_v55 = vpop.f32.mrf.mxu1  ;;  %3767 = vst [vmem:[#allocation2 + $0x178] sm:$0xff] %v3671_v36  ;;  %v3550_v60 = vadd.f32 %v4712_v63, %v7421_v43  ;;  %v2175_v36 = vld [vmem:[#allocation2 + $0x238] sm:$0xff] }
 0x3d2   : > { %v3743_v0 = vadd.f32 %v3643_v62, %v2235_v44  ;;  %v4784_v6 = vadd.f32 %v4783_v55, %v4782_v3  ;;  %v4714_v2 = vpop.f32.mrf.mxu0  ;;  %v2178_v55 = vld [vmem:[#allocation2 + $0x98] sm:$0xff] }
 0x3d3   : > { %v4785_v10 = vpop.f32.mrf.mxu1  ;;  %v3674_v48 = vadd.f32 %v3550_v60, %v2166_v61  ;;  %v4715_v59 = vadd.f32 %v4714_v2, %v4713_v46 }
 0x3d4   : > { %3839 = vst [vmem:[#allocation2 + $0x1d8] sm:$0xff] %v3743_v0  ;;  %v3646_v12 = vadd.f32 %v4784_v6, %v4672_v8  ;;  %v4716_v57 = vpop.f32.mrf.mxu0 }
 0x3d5   : > { %v4786_v35 = vpop.f32.mrf.mxu1  ;;  %3770 = vst [vmem:[#allocation2 + $0x248] sm:$0xff] %v3674_v48  ;;  %v3555_v32 = vadd.f32 %v4715_v59, %v7425_v21  ;;  %v2184_v59 = vld [vmem:[#allocation2 + $0x208] sm:$0xff] }
 0x3d6   : > { %v3746_v30 = vadd.f32 %v3646_v12, %v2238_v26  ;;  %v4787_v7 = vadd.f32 %v4786_v35, %v4785_v10  ;;  %v4717_v41 = vpop.f32.mrf.mxu0  ;;  %v2181_v26 = vld [vmem:[#allocation2 + $0x1b8] sm:$0xff] }
 0x3d7   : > { %v4788_v43 = vpop.f32.mrf.mxu1  ;;  %v3677_v19 = vadd.f32 %v3555_v32, %v2169_v29  ;;  %v4718_v18 = vadd.f32 %v4717_v41, %v4716_v57 }
 0x3d8   : > { %3842 = vst [vmem:[#allocation2 + $0x268] sm:$0xff] %v3746_v30  ;;  %v3651_v37 = vadd.f32 %v4787_v7, %v4675_v52  ;;  %v4719_v23 = vpop.f32.mrf.mxu0 }
 0x3d9   : > { %v4789_v16 = vpop.f32.mrf.mxu1  ;;  %3773 = vst [vmem:[#allocation2 + $0x228] sm:$0xff] %v3677_v19  ;;  %v3558_v34 = vadd.f32 %v4718_v18, %v7429_v56 }
 0x3da   : > { %v3749_v15 = vadd.f32 %v3651_v37, %v2241_v13  ;;  %v4790_v53 = vadd.f32 %v4789_v16, %v4788_v43  ;;  %v4720_v44 = vpop.f32.mrf.mxu0 }
 0x3db   : > { %v3680_v21 = vadd.f32 %v3558_v34, %v2172_v39  ;;  %v4721_v3 = vadd.f32 %v4720_v44, %v4719_v23 }
 0x3dc   : > { %3845 = vst [vmem:[#allocation2 + $0x108] sm:$0xff] %v3749_v15  ;;  %v3654_v22 = vadd.f32 %v4790_v53, %v4678_v40  ;;  %v4722_v62 = vpop.f32.mrf.mxu0 }
 0x3dd   : > { %3776 = vst [vmem:[#allocation2 + $0x1b0] sm:$0xff] %v3680_v21  ;;  %v3563_v61 = vadd.f32 %v4721_v3, %v7433_v47 }
 0x3de   : > { %v3752_v63 = vadd.f32 %v3654_v22, %v2244_v42  ;;  %v4723_v46 = vpop.f32.mrf.mxu0 }
 0x3df   : > { %v3683_v28 = vadd.f32 %v3563_v61, %v2175_v36  ;;  %v4724_v49 = vadd.f32 %v4723_v46, %v4722_v62 }
 0x3e0   : > { %3848 = vst [vmem:[#allocation2 + $0x118] sm:$0xff] %v3752_v63  ;;  %v4725_v8 = vpop.f32.mrf.mxu0 }
 0x3e1   : > { %3779 = vst [vmem:[#allocation2 + $0x238] sm:$0xff] %v3683_v28  ;;  %v3566_v56 = vadd.f32 %v4724_v49, %v7437_v33  ;;  %v2187_v33 = vld [vmem:[#allocation2 + $0x218] sm:$0xff] }
 0x3e2   : > { %v4726_v0 = vpop.f32.mrf.mxu0 }
 0x3e3   : > { %v3686_v60 = vadd.f32 %v3566_v56, %v2178_v55  ;;  %v4727_v6 = vadd.f32 %v4726_v0, %v4725_v8 }
 0x3e4   : > { %v4728_v2 = vpop.f32.mrf.mxu0 }
 0x3e5   : > { %3782 = vst [vmem:[#allocation2 + $0x98] sm:$0xff] %v3686_v60  ;;  %v3571_v10 = vadd.f32 %v4727_v6, %v7441_v5  ;;  %v2190_v5 = vld [vmem:[#allocation2 + $0x280] sm:$0xff] }
 0x3e6   : > { %v4729_v48 = vpop.f32.mrf.mxu0 }
 0x3e7   : > { %v3689_v12 = vadd.f32 %v3571_v10, %v2181_v26  ;;  %v4730_v47 = vadd.f32 %v4729_v48, %v4728_v2 }
 0x3e8   : > { %v4731_v29 = vpop.f32.mrf.mxu0 }
 0x3e9   : > { %3785 = vst [vmem:[#allocation2 + $0x1b8] sm:$0xff] %v3689_v12  ;;  %v3574_v57 = vadd.f32 %v4730_v47, %v7445_v17  ;;  %v2193_v17 = vld [vmem:[#allocation2 + $0x288] sm:$0xff] }
 0x3ea   : > { %v4732_v35 = vpop.f32.mrf.mxu0 }
 0x3eb   : > { %v3692_v52 = vadd.f32 %v3574_v57, %v2184_v59  ;;  %v4733_v30 = vadd.f32 %v4732_v35, %v4731_v29 }
 0x3ec   : > { %v4734_v32 = vpop.f32.mrf.mxu0 }
 0x3ed   : > { %3788 = vst [vmem:[#allocation2 + $0x208] sm:$0xff] %v3692_v52  ;;  %v3579_v7 = vadd.f32 %v4733_v30, %v7449_v58  ;;  %v2196_v58 = vld [vmem:[#allocation2 + $0x50] sm:$0xff] }
 0x3ee   : > { %v4735_v13 = vpop.f32.mrf.mxu0 }
 0x3ef   : > { %v3695_v41 = vadd.f32 %v3579_v7, %v2187_v33  ;;  %v4736_v43 = vadd.f32 %v4735_v13, %v4734_v32 }
 0x3f0   : > { %v4737_v19 = vpop.f32.mrf.mxu0 }
 0x3f1   : > { %3791 = vst [vmem:[#allocation2 + $0x218] sm:$0xff] %v3695_v41  ;;  %v3582_v37 = vadd.f32 %v4736_v43, %v7453_v31  ;;  %v2199_v31 = vld [vmem:[#allocation2 + $0x1f0] sm:$0xff] }
 0x3f2   : > { %v4738_v18 = vpop.f32.mrf.mxu0 }
 0x3f3   : > { %v3698_v39 = vadd.f32 %v3582_v37, %v2190_v5  ;;  %v4739_v23 = vadd.f32 %v4738_v18, %v4737_v19 }
 0x3f4   : > { %v4740_v16 = vpop.f32.mrf.mxu0 }
 0x3f5   : > { %3794 = vst [vmem:[#allocation2 + $0x280] sm:$0xff] %v3698_v39  ;;  %v3587_v40 = vadd.f32 %v4739_v23, %v7457_v54  ;;  %v2202_v54 = vld [vmem:[#allocation2 + $0xc8] sm:$0xff] }
 0x3f6   : > { %v4741_v15 = vpop.f32.mrf.mxu0 }
 0x3f7   : > { %v3701_v34 = vadd.f32 %v3587_v40, %v2193_v17  ;;  %v4742_v53 = vadd.f32 %v4741_v15, %v4740_v16 }
 0x3f8   : > { %v4743_v42 = vpop.f32.mrf.mxu0 }
 0x3f9   : > { %3797 = vst [vmem:[#allocation2 + $0x288] sm:$0xff] %v3701_v34  ;;  %v3590_v44 = vadd.f32 %v4742_v53, %v7461_v24  ;;  %v2205_v24 = vld [vmem:[#allocation2 + $0x298] sm:$0xff] }
 0x3fa   : > { %v4744_v21 = vpop.f32.mrf.mxu0 }
 0x3fb   : > { %v3704_v22 = vadd.f32 %v3590_v44, %v2196_v58  ;;  %v4745_v3 = vadd.f32 %v4744_v21, %v4743_v42 }
 0x3fc   : > { %v4746_v36 = vpop.f32.mrf.mxu0 }
 0x3fd   : > { %3800 = vst [vmem:[#allocation2 + $0x50] sm:$0xff] %v3704_v22  ;;  %v3595_v62 = vadd.f32 %v4745_v3, %v7465_v11  ;;  %v2208_v11 = vld [vmem:[#allocation2 + $0x120] sm:$0xff] }
 0x3fe   : > { %v4747_v63 = vpop.f32.mrf.mxu0 }
 0x3ff   : > { %v3707_v61 = vadd.f32 %v3595_v62, %v2199_v31  ;;  %v4748_v46 = vadd.f32 %v4747_v63, %v4746_v36 }
 0x400   : > { %v4749_v28 = vpop.f32.mrf.mxu0 }
 0x401   : > { %3803 = vst [vmem:[#allocation2 + $0x1f0] sm:$0xff] %v3707_v61  ;;  %v3598_v49 = vadd.f32 %v4748_v46, %v7469_v25  ;;  %v2211_v25 = vld [vmem:[#allocation2 + $0x1f8] sm:$0xff] }
 0x402   : > { %v4750_v55 = vpop.f32.mrf.mxu0 }
 0x403   : > { %v3710_v8 = vadd.f32 %v3598_v49, %v2202_v54  ;;  %v4751_v56 = vadd.f32 %v4750_v55, %v4749_v28 }
 0x404   : > { %v4752_v0 = vpop.f32.mrf.mxu0 }
 0x405   : > { %3806 = vst [vmem:[#allocation2 + $0xc8] sm:$0xff] %v3710_v8  ;;  %v3603_v60 = vadd.f32 %v4751_v56, %v7473_v50  ;;  %v2214_v50 = vld [vmem:[#allocation2 + $0x278] sm:$0xff] }
 0x406   : > { %v4753_v6 = vpop.f32.mrf.mxu0 }
 0x407   : > { %v3713_v26 = vadd.f32 %v3603_v60, %v2205_v24  ;;  %v4754_v2 = vadd.f32 %v4753_v6, %v4752_v0 }
 0x408   : > { %v4755_v10 = vpop.f32.mrf.mxu0 }
 0x409   : > { %3809 = vst [vmem:[#allocation2 + $0x298] sm:$0xff] %v3713_v26  ;;  %v3606_v48 = vadd.f32 %v4754_v2, %v7477_v4  ;;  %v2217_v4 = vld [vmem:[#allocation2 + $0x270] sm:$0xff] }
 0x40a   : > { %v4756_v12 = vpop.f32.mrf.mxu0 }
 0x40b   : > { %v3716_v47 = vadd.f32 %v3606_v48, %v2208_v11  ;;  %v4757_v59 = vadd.f32 %v4756_v12, %v4755_v10 }
 0x40c   : > { %v4758_v29 = vpop.f32.mrf.mxu0 }
 0x40d   : > { %3812 = vst [vmem:[#allocation2 + $0x120] sm:$0xff] %v3716_v47  ;;  %v3611_v57 = vadd.f32 %v4757_v59, %v7481_v1  ;;  %v2220_v1 = vld [vmem:[#allocation2 + $0x2f0] sm:$0xff] }
 0x40e   : > { %v4759_v35 = vpop.f32.mrf.mxu0 }
 0x40f   : > { %v3719_v52 = vadd.f32 %v3611_v57, %v2211_v25  ;;  %v4760_v30 = vadd.f32 %v4759_v35, %v4758_v29 }
 0x410   : > { %v4761_v33 = vpop.f32.mrf.mxu0 }
 0x411   : > { %3815 = vst [vmem:[#allocation2 + $0x1f8] sm:$0xff] %v3719_v52  ;;  %v3614_v32 = vadd.f32 %v4760_v30, %v7485_v38  ;;  %v2223_v38 = vld [vmem:[#allocation2 + $0x2c8] sm:$0xff] }
 0x412   : > { %v4762_v7 = vpop.f32.mrf.mxu0 }
 0x413   : > { %v3722_v13 = vadd.f32 %v3614_v32, %v2214_v50  ;;  %v4763_v41 = vadd.f32 %v4762_v7, %v4761_v33 }
 0x414   : > { %v4764_v43 = vpop.f32.mrf.mxu0 }
 0x415   : > { %3818 = vst [vmem:[#allocation2 + $0x278] sm:$0xff] %v3722_v13  ;;  %v3619_v5 = vadd.f32 %v4763_v41, %v7489_v51  ;;  %v2226_v51 = vld [vmem:[#allocation2 + $0x230] sm:$0xff] }
 0x416   : > { %v4765_v19 = vpop.f32.mrf.mxu0 }
 0x417   : > { %v3725_v37 = vadd.f32 %v3619_v5, %v2217_v4  ;;  %v4766_v18 = vadd.f32 %v4765_v19, %v4764_v43 }
 0x418   : > { %v4767_v39 = vpop.f32.mrf.mxu0 }
 0x419   : > { %3821 = vst [vmem:[#allocation2 + $0x270] sm:$0xff] %v3725_v37  ;;  %v3622_v23 = vadd.f32 %v4766_v18, %v7493_v14  ;;  %v2229_v14 = vld [vmem:[#allocation2 + $0xc0] sm:$0xff] }
 0x41a   : > { %v4768_v17 = vpop.f32.mrf.mxu0 }
 0x41b   : > { %v3728_v16 = vadd.f32 %v3622_v23, %v2220_v1  ;;  %v4769_v40 = vadd.f32 %v4768_v17, %v4767_v39 }
 0x41c   : > { %v4770_v15 = vpop.f32.mrf.mxu0 }
 0x41d   : > { %3824 = vst [vmem:[#allocation2 + $0x2f0] sm:$0xff] %v3728_v16  ;;  %v3627_v34 = vadd.f32 %v4769_v40, %v7497_v27  ;;  %v2232_v27 = vld [vmem:[#allocation2 + $0xb0] sm:$0xff] }
 0x41e   : > { %v4771_v53 = vpop.f32.mrf.mxu0 }
 0x41f   : > { %v3731_v58 = vadd.f32 %v3627_v34, %v2223_v38  ;;  %v4772_v42 = vadd.f32 %v4771_v53, %v4770_v15 }
 0x420   : > { %v4773_v44 = vpop.f32.mrf.mxu0 }
 0x421   : > { %3827 = vst [vmem:[#allocation2 + $0x2c8] sm:$0xff] %v3731_v58  ;;  %v3630_v21 = vadd.f32 %v4772_v42, %v7501_v9 }
 0x422   : > { %v4774_v22 = vpop.f32.mrf.mxu0 }
 0x423   : > { %v3734_v3 = vadd.f32 %v3630_v21, %v2226_v51  ;;  %v4775_v31 = vadd.f32 %v4774_v22, %v4773_v44 }
 0x424   : > { %v4776_v36 = vpop.f32.mrf.mxu0 }
 0x425   : > { %3830 = vst [vmem:[#allocation2 + $0x230] sm:$0xff] %v3734_v3  ;;  %v3635_v62 = vadd.f32 %v4775_v31, %v7505_v20 }
 0x426   : > { %v4777_v63 = vpop.f32.mrf.mxu0 }
 0x427   : > { %v3737_v61 = vadd.f32 %v3635_v62, %v2229_v14  ;;  %v4778_v46 = vadd.f32 %v4777_v63, %v4776_v36 }
 0x429   : > { %3833 = vst [vmem:[#allocation2 + $0xc0] sm:$0xff] %v3737_v61  ;;  %v3638_v54 = vadd.f32 %v4778_v46, %v7508_v45  ;;  %3852 = sbr.rel (%p4555_p6) target bundleno = 1127 (0x467), region = 68 }
 0x42b   : > { %v3740_v28 = vadd.f32 %v3638_v54, %v2232_v27 }
 0x42d   : > { %3836 = vst [vmem:[#allocation2 + $0xb0] sm:$0xff] %v3740_v28 }
 0x42e   : > { %v3853_v9 = vld [vmem:[#allocation2 + $0x2b0] sm:$0xff]  ;;  %v3949_v49 = vld [vmem:[#allocation11] sm:$0x7]  ;;  %v3859_v10 = vld [vmem:[#allocation2 + $0xf8] sm:$0xff] }
 0x42f   : > { %v3854_v55 = vld [vmem:[#allocation2 + $0xd0] sm:$0xff]  ;;  %v3856_v26 = vld [vmem:[#allocation2 + $0x48] sm:$0xff]  ;;  %v3860_v48 = vld [vmem:[#allocation2 + $0x78] sm:$0xff] }
 0x430   : > { %v7984_v8 = vld [vmem:[#allocation29_spill] sm:$0xff]  ;;  %v3862_v57 = vld [vmem:[#allocation2 + $0xe0] sm:$0xff]  ;;  %v3863_v35 = vld [vmem:[#allocation2 + $0x2f8] sm:$0xff] }
 0x431   : > { %v7985_v56 = vsub.s32 0, %v7984_v8  ;;  %v7986_v20 = vsub.s32 1, %v7984_v8  ;;  %v3855_v60 = vld [vmem:[#allocation2 + $0x10] sm:$0xff]  ;;  %v7987_v6 = vsub.s32 2, %v7984_v8  ;;  %v3861_v29 = vld [vmem:[#allocation2 + $0x128] sm:$0xff]  ;;  %v3864_v32 = vld [vmem:[#allocation2 + $0x2b8] sm:$0xff] }
 0x432   : > { %v3857_v2 = vld [vmem:[#allocation2 + $0x30] sm:$0xff]  ;;  %v3865_v7 = vld [vmem:[#allocation2 + $0x2a0] sm:$0xff]  ;;  %v3866_v13 = vld [vmem:[#allocation2 + $0x168] sm:$0xff] }
 0x433   : > { %v7541_v24 = vrot.slane %v3949_v49, %v7985_v56  ;;  %v7545_v0 = vrot.slane %v3949_v49, %v7986_v20  ;;  %v7549_v45 = vrot.slane %v3949_v49, %v7987_v6  ;;  %v3858_v11 = vld [vmem:[#allocation2 + $0xf0] sm:$0xff]  ;;  %v3867_v19 = vld [vmem:[#allocation2 + $0x178] sm:$0xff]  ;;  %v3868_v37 = vld [vmem:[#allocation2 + $0x40] sm:$0xff] }
 0x434   : > { %v3869_v18 = vld [vmem:[#allocation2] sm:$0xff]  ;;  %v3870_v16 = vld [vmem:[#allocation2 + $0x248] sm:$0xff]  ;;  %v3876_v31 = vld [vmem:[#allocation2 + $0x1b0] sm:$0xff] }
 0x435   : > { %v3966_v12 = vadd.f32 %v7541_v24, %v3853_v9  ;;  %v3967_v47 = vadd.f32 %v7545_v0, %v3854_v55  ;;  %v3968_v59 = vadd.f32 %v7549_v45, %v3855_v60  ;;  %v3969_v25 = vadd.f32 %v7541_v24, %v3856_v26  ;;  %v3871_v40 = vld [vmem:[#allocation2 + $0xe8] sm:$0xff]  ;;  %v3875_v44 = vld [vmem:[#allocation2 + $0x20] sm:$0xff]  ;;  %v3878_v36 = vld [vmem:[#allocation2 + $0x258] sm:$0xff] }
 0x436   : > { %v3970_v52 = vadd.f32 %v7545_v0, %v3857_v2  ;;  %v3971_v30 = vadd.f32 %v7549_v45, %v3858_v11  ;;  %v3972_v50 = vadd.f32 %v7541_v24, %v3859_v10  ;;  %v3973_v33 = vadd.f32 %v7545_v0, %v3860_v48  ;;  %v3872_v38 = vld [vmem:[#allocation2 + $0x68] sm:$0xff]  ;;  %v3877_v14 = vld [vmem:[#allocation2 + $0x220] sm:$0xff]  ;;  %v3879_v46 = vld [vmem:[#allocation2 + $0x238] sm:$0xff] }
 0x437   : > { %4062 = vst [vmem:[%s5783_s18] sm:$0xff] %v3966_v12  ;;  %4063 = vst [vmem:[%s5783_s18 + $0x8] sm:$0xff] %v3967_v47  ;;  %v3974_v41 = vadd.f32 %v7549_v45, %v3861_v29  ;;  %v3975_v4 = vadd.f32 %v7541_v24, %v3862_v57  ;;  %v3976_v43 = vadd.f32 %v7545_v0, %v3863_v35  ;;  %v3873_v42 = vld [vmem:[#allocation2 + $0x228] sm:$0xff]  ;;  %v3880_v27 = vld [vmem:[#allocation2 + $0x130] sm:$0xff] }
 0x438   : > { %4064 = vst [vmem:[%s5783_s18 + $0x10] sm:$0xff] %v3968_v59  ;;  %4065 = vst [vmem:[%s5783_s18 + $0x18] sm:$0xff] %v3969_v25  ;;  %v3977_v5 = vadd.f32 %v7549_v45, %v3864_v32  ;;  %v3978_v1 = vadd.f32 %v7541_v24, %v3865_v7  ;;  %v3979_v39 = vadd.f32 %v7545_v0, %v3866_v13  ;;  %v3874_v51 = vld [vmem:[#allocation2 + $0xa8] sm:$0xff]  ;;  %v3881_v54 = vld [vmem:[#allocation2 + $0x158] sm:$0xff] }
 0x439   : > { %4066 = vst [vmem:[%s5783_s18 + $0x20] sm:$0xff] %v3970_v52  ;;  %4067 = vst [vmem:[%s5783_s18 + $0x28] sm:$0xff] %v3971_v30  ;;  %v3980_v23 = vadd.f32 %v7549_v45, %v3867_v19  ;;  %v3981_v17 = vadd.f32 %v7541_v24, %v3868_v37  ;;  %v3982_v15 = vadd.f32 %v7545_v0, %v3869_v18  ;;  %v3882_v55 = vld [vmem:[#allocation2 + $0x98] sm:$0xff]  ;;  %v3883_v8 = vld [vmem:[#allocation2 + $0x2e0] sm:$0xff] }
 0x43a   : > { %4068 = vst [vmem:[%s5783_s18 + $0x30] sm:$0xff] %v3972_v50  ;;  %4069 = vst [vmem:[%s5783_s18 + $0x38] sm:$0xff] %v3973_v33  ;;  %v3983_v34 = vadd.f32 %v7549_v45, %v3870_v16  ;;  %v3984_v53 = vadd.f32 %v7541_v24, %v3871_v40  ;;  %v3985_v58 = vadd.f32 %v7545_v0, %v3872_v38  ;;  %v3884_v56 = vld [vmem:[#allocation2 + $0x1a8] sm:$0xff]  ;;  %v3885_v26 = vld [vmem:[#allocation2 + $0x1b8] sm:$0xff] }
 0x43b   : > { %4070 = vst [vmem:[%s5783_s18 + $0x40] sm:$0xff] %v3974_v41  ;;  %4071 = vst [vmem:[%s5783_s18 + $0x48] sm:$0xff] %v3975_v4  ;;  %v3986_v21 = vadd.f32 %v7549_v45, %v3873_v42  ;;  %v3987_v22 = vadd.f32 %v7541_v24, %v3874_v51  ;;  %v3988_v3 = vadd.f32 %v7545_v0, %v3875_v44  ;;  %v3886_v2 = vld [vmem:[#allocation2 + $0x80] sm:$0xff]  ;;  %v3887_v11 = vld [vmem:[#allocation2 + $0x188] sm:$0xff] }
 0x43c   : > { %4072 = vst [vmem:[%s5783_s18 + $0x50] sm:$0xff] %v3976_v43  ;;  %4073 = vst [vmem:[%s5783_s18 + $0x58] sm:$0xff] %v3977_v5  ;;  %v3989_v62 = vadd.f32 %v7549_v45, %v3876_v31  ;;  %v3990_v63 = vadd.f32 %v7541_v24, %v3877_v14  ;;  %v3991_v61 = vadd.f32 %v7545_v0, %v3878_v36  ;;  %v3888_v47 = vld [vmem:[#allocation2 + $0x208] sm:$0xff]  ;;  %v3889_v59 = vld [vmem:[#allocation2 + $0x38] sm:$0xff] }
 0x43d   : > { %4074 = vst [vmem:[%s5783_s18 + $0x60] sm:$0xff] %v3978_v1  ;;  %4075 = vst [vmem:[%s5783_s18 + $0x68] sm:$0xff] %v3979_v39  ;;  %v3992_v28 = vadd.f32 %v7549_v45, %v3879_v46  ;;  %v3993_v9 = vadd.f32 %v7541_v24, %v3880_v27  ;;  %v3994_v49 = vadd.f32 %v7545_v0, %v3881_v54  ;;  %v3890_v25 = vld [vmem:[#allocation2 + $0x190] sm:$0xff]  ;;  %v3891_v52 = vld [vmem:[#allocation2 + $0x218] sm:$0xff] }
 0x43e   : > { %4076 = vst [vmem:[%s5783_s18 + $0x70] sm:$0xff] %v3980_v23  ;;  %4077 = vst [vmem:[%s5783_s18 + $0x78] sm:$0xff] %v3981_v17  ;;  %v3995_v20 = vadd.f32 %v7549_v45, %v3882_v55  ;;  %v3996_v60 = vadd.f32 %v7541_v24, %v3883_v8  ;;  %v3997_v6 = vadd.f32 %v7545_v0, %v3884_v56  ;;  %v3892_v30 = vld [vmem:[#allocation2 + $0x250] sm:$0xff]  ;;  %v3893_v50 = vld [vmem:[#allocation2 + $0x1c8] sm:$0xff] }
 0x43f   : > { %4078 = vst [vmem:[%s5783_s18 + $0x80] sm:$0xff] %v3982_v15  ;;  %4079 = vst [vmem:[%s5783_s18 + $0x88] sm:$0xff] %v3983_v34  ;;  %v3998_v10 = vadd.f32 %v7549_v45, %v3885_v26  ;;  %v3999_v48 = vadd.f32 %v7541_v24, %v3886_v2  ;;  %v4000_v12 = vadd.f32 %v7545_v0, %v3887_v11  ;;  %v3894_v13 = vld [vmem:[#allocation2 + $0x280] sm:$0xff]  ;;  %v3896_v4 = vld [vmem:[#allocation2 + $0xb8] sm:$0xff] }
 0x440   : > { %4080 = vst [vmem:[%s5783_s18 + $0x90] sm:$0xff] %v3984_v53  ;;  %4081 = vst [vmem:[%s5783_s18 + $0x98] sm:$0xff] %v3985_v58  ;;  %v4001_v29 = vadd.f32 %v7549_v45, %v3888_v47  ;;  %v4002_v57 = vadd.f32 %v7541_v24, %v3889_v59  ;;  %v4003_v35 = vadd.f32 %v7545_v0, %v3890_v25  ;;  %v3895_v41 = vld [vmem:[#allocation2 + $0x100] sm:$0xff]  ;;  %v3897_v37 = vld [vmem:[#allocation2 + $0x288] sm:$0xff] }
 0x441   : > { %4082 = vst [vmem:[%s5783_s18 + $0xa0] sm:$0xff] %v3986_v21  ;;  %4083 = vst [vmem:[%s5783_s18 + $0xa8] sm:$0xff] %v3987_v22  ;;  %v4004_v33 = vadd.f32 %v7549_v45, %v3891_v52  ;;  %v4005_v32 = vadd.f32 %v7541_v24, %v3892_v30  ;;  %v4006_v7 = vadd.f32 %v7545_v0, %v3893_v50  ;;  %v3898_v18 = vld [vmem:[#allocation2 + $0x60] sm:$0xff]  ;;  %v3899_v1 = vld [vmem:[#allocation2 + $0x210] sm:$0xff] }
 0x442   : > { %4084 = vst [vmem:[%s5783_s18 + $0xb0] sm:$0xff] %v3988_v3  ;;  %4085 = vst [vmem:[%s5783_s18 + $0xb8] sm:$0xff] %v3989_v62  ;;  %v4007_v43 = vadd.f32 %v7549_v45, %v3894_v13  ;;  %v4008_v5 = vadd.f32 %v7541_v24, %v3895_v41  ;;  %v4009_v19 = vadd.f32 %v7545_v0, %v3896_v4  ;;  %v3900_v16 = vld [vmem:[#allocation2 + $0x50] sm:$0xff]  ;;  %v3901_v40 = vld [vmem:[#allocation2 + $0x1e8] sm:$0xff] }
 0x443   : > { %4086 = vst [vmem:[%s5783_s18 + $0xc0] sm:$0xff] %v3990_v63  ;;  %4087 = vst [vmem:[%s5783_s18 + $0xc8] sm:$0xff] %v3991_v61  ;;  %v4010_v39 = vadd.f32 %v7549_v45, %v3897_v37  ;;  %v4011_v23 = vadd.f32 %v7541_v24, %v3898_v18  ;;  %v4012_v17 = vadd.f32 %v7545_v0, %v3899_v1  ;;  %v3902_v38 = vld [vmem:[#allocation2 + $0x2d0] sm:$0xff]  ;;  %v3904_v42 = vld [vmem:[#allocation2 + $0x28] sm:$0xff] }
 0x444   : > { %4088 = vst [vmem:[%s5783_s18 + $0xd0] sm:$0xff] %v3992_v28  ;;  %4089 = vst [vmem:[%s5783_s18 + $0xd8] sm:$0xff] %v3993_v9  ;;  %v4013_v15 = vadd.f32 %v7549_v45, %v3900_v16  ;;  %v4014_v34 = vadd.f32 %v7541_v24, %v3901_v40  ;;  %v4015_v53 = vadd.f32 %v7545_v0, %v3902_v38  ;;  %v3903_v58 = vld [vmem:[#allocation2 + $0x1f0] sm:$0xff]  ;;  %v3905_v51 = vld [vmem:[#allocation2 + $0x138] sm:$0xff] }
 0x445   : > { %4090 = vst [vmem:[%s5783_s18 + $0xe0] sm:$0xff] %v3994_v49  ;;  %4091 = vst [vmem:[%s5783_s18 + $0xe8] sm:$0xff] %v3995_v20  ;;  %v4016_v44 = vadd.f32 %v7549_v45, %v3903_v58  ;;  %v4017_v21 = vadd.f32 %v7541_v24, %v3904_v42  ;;  %v4018_v22 = vadd.f32 %v7545_v0, %v3905_v51  ;;  %v3906_v3 = vld [vmem:[#allocation2 + $0xc8] sm:$0xff]  ;;  %v3907_v31 = vld [vmem:[#allocation2 + $0x58] sm:$0xff] }
 0x446   : > { %4092 = vst [vmem:[%s5783_s18 + $0xf0] sm:$0xff] %v3996_v60  ;;  %4093 = vst [vmem:[%s5783_s18 + $0xf8] sm:$0xff] %v3997_v6  ;;  %v3908_v14 = vld [vmem:[#allocation2 + $0x1c0] sm:$0xff]  ;;  %v4019_v36 = vadd.f32 %v7549_v45, %v3906_v3  ;;  %v4020_v62 = vadd.f32 %v7541_v24, %v3907_v31  ;;  %v3909_v61 = vld [vmem:[#allocation2 + $0x298] sm:$0xff] }
 0x447   : > { %4094 = vst [vmem:[%s5783_s18 + $0x100] sm:$0xff] %v3998_v10  ;;  %4095 = vst [vmem:[%s5783_s18 + $0x108] sm:$0xff] %v3999_v48  ;;  %v4021_v63 = vadd.f32 %v7545_v0, %v3908_v14  ;;  %v3910_v46 = vld [vmem:[#allocation2 + $0x70] sm:$0xff]  ;;  %v3911_v27 = vld [vmem:[#allocation2 + $0x18] sm:$0xff]  ;;  %v4022_v54 = vadd.f32 %v7549_v45, %v3909_v61 }
 0x448   : > { %4096 = vst [vmem:[%s5783_s18 + $0x110] sm:$0xff] %v4000_v12  ;;  %4097 = vst [vmem:[%s5783_s18 + $0x118] sm:$0xff] %v4001_v29  ;;  %v4023_v28 = vadd.f32 %v7541_v24, %v3910_v46  ;;  %v4024_v9 = vadd.f32 %v7545_v0, %v3911_v27  ;;  %v3912_v49 = vld [vmem:[#allocation2 + $0x120] sm:$0xff]  ;;  %v3915_v6 = vld [vmem:[#allocation2 + $0x1f8] sm:$0xff] }
 0x449   : > { %4098 = vst [vmem:[%s5783_s18 + $0x120] sm:$0xff] %v4002_v57  ;;  %4099 = vst [vmem:[%s5783_s18 + $0x128] sm:$0xff] %v4003_v35  ;;  %v3913_v55 = vld [vmem:[#allocation2 + $0x240] sm:$0xff]  ;;  %v4025_v56 = vadd.f32 %v7549_v45, %v3912_v49  ;;  %v4028_v11 = vadd.f32 %v7549_v45, %v3915_v6  ;;  %v3918_v12 = vld [vmem:[#allocation2 + $0x278] sm:$0xff] }
 0x44a   : > { %4100 = vst [vmem:[%s5783_s18 + $0x130] sm:$0xff] %v4004_v33  ;;  %4101 = vst [vmem:[%s5783_s18 + $0x138] sm:$0xff] %v4005_v32  ;;  %v3914_v8 = vld [vmem:[#allocation2 + $0x180] sm:$0xff]  ;;  %v4026_v20 = vadd.f32 %v7541_v24, %v3913_v55  ;;  %v3919_v47 = vld [vmem:[#allocation2 + $0x8] sm:$0xff]  ;;  %v4031_v25 = vadd.f32 %v7549_v45, %v3918_v12 }
 0x44b   : > { %4102 = vst [vmem:[%s5783_s18 + $0x140] sm:$0xff] %v4006_v7  ;;  %4103 = vst [vmem:[%s5783_s18 + $0x148] sm:$0xff] %v4007_v43  ;;  %v4027_v60 = vadd.f32 %v7545_v0, %v3914_v8  ;;  %v3916_v26 = vld [vmem:[#allocation2 + $0x1a0] sm:$0xff]  ;;  %v4032_v29 = vadd.f32 %v7541_v24, %v3919_v47  ;;  %v3921_v35 = vld [vmem:[#allocation2 + $0x270] sm:$0xff] }
 0x44c   : > { %4104 = vst [vmem:[%s5783_s18 + $0x150] sm:$0xff] %v4008_v5  ;;  %4105 = vst [vmem:[%s5783_s18 + $0x158] sm:$0xff] %v4009_v19  ;;  %v3917_v2 = vld [vmem:[#allocation2 + $0xa0] sm:$0xff]  ;;  %v4029_v10 = vadd.f32 %v7541_v24, %v3916_v26  ;;  %v3922_v52 = vld [vmem:[#allocation2 + $0x290] sm:$0xff]  ;;  %v4034_v50 = vadd.f32 %v7549_v45, %v3921_v35 }
 0x44d   : > { %4106 = vst [vmem:[%s5783_s18 + $0x160] sm:$0xff] %v4010_v39  ;;  %4107 = vst [vmem:[%s5783_s18 + $0x168] sm:$0xff] %v4011_v23  ;;  %v4030_v48 = vadd.f32 %v7545_v0, %v3917_v2  ;;  %v3920_v59 = vld [vmem:[#allocation2 + $0x2c0] sm:$0xff]  ;;  %v3923_v30 = vld [vmem:[#allocation2 + $0x2a8] sm:$0xff]  ;;  %v4035_v33 = vadd.f32 %v7541_v24, %v3922_v52 }
 0x44e   : > { %4108 = vst [vmem:[%s5783_s18 + $0x170] sm:$0xff] %v4012_v17  ;;  %4109 = vst [vmem:[%s5783_s18 + $0x178] sm:$0xff] %v4013_v15  ;;  %v4033_v57 = vadd.f32 %v7545_v0, %v3920_v59  ;;  %v4036_v32 = vadd.f32 %v7545_v0, %v3923_v30  ;;  %v3924_v7 = vld [vmem:[#allocation2 + $0x2f0] sm:$0xff]  ;;  %v3925_v13 = vld [vmem:[#allocation2 + $0x1e0] sm:$0xff] }
 0x44f   : > { %4110 = vst [vmem:[%s5783_s18 + $0x180] sm:$0xff] %v4014_v34  ;;  %4111 = vst [vmem:[%s5783_s18 + $0x188] sm:$0xff] %v4015_v53  ;;  %v3926_v41 = vld [vmem:[#allocation2 + $0x150] sm:$0xff]  ;;  %v4037_v4 = vadd.f32 %v7549_v45, %v3924_v7  ;;  %v4038_v43 = vadd.f32 %v7541_v24, %v3925_v13  ;;  %v3927_v19 = vld [vmem:[#allocation2 + $0x2c8] sm:$0xff] }
 0x450   : > { %4112 = vst [vmem:[%s5783_s18 + $0x190] sm:$0xff] %v4016_v44  ;;  %4113 = vst [vmem:[%s5783_s18 + $0x198] sm:$0xff] %v4017_v21  ;;  %v4039_v5 = vadd.f32 %v7545_v0, %v3926_v41  ;;  %v3928_v37 = vld [vmem:[#allocation2 + $0x1d0] sm:$0xff]  ;;  %v3929_v18 = vld [vmem:[#allocation2 + $0x140] sm:$0xff]  ;;  %v4040_v1 = vadd.f32 %v7549_v45, %v3927_v19 }
 0x451   : > { %4114 = vst [vmem:[%s5783_s18 + $0x1a0] sm:$0xff] %v4018_v22  ;;  %4115 = vst [vmem:[%s5783_s18 + $0x1a8] sm:$0xff] %v4019_v36  ;;  %v4041_v39 = vadd.f32 %v7541_v24, %v3928_v37  ;;  %v4042_v23 = vadd.f32 %v7545_v0, %v3929_v18  ;;  %v3930_v17 = vld [vmem:[#allocation2 + $0x230] sm:$0xff]  ;;  %v3931_v16 = vld [vmem:[#allocation2 + $0x160] sm:$0xff] }
 0x452   : > { %4116 = vst [vmem:[%s5783_s18 + $0x1b0] sm:$0xff] %v4020_v62  ;;  %4117 = vst [vmem:[%s5783_s18 + $0x1b8] sm:$0xff] %v4021_v63  ;;  %v3932_v40 = vld [vmem:[#allocation2 + $0x2d8] sm:$0xff]  ;;  %v4043_v38 = vadd.f32 %v7549_v45, %v3930_v17  ;;  %v4044_v15 = vadd.f32 %v7541_v24, %v3931_v16  ;;  %v3933_v53 = vld [vmem:[#allocation2 + $0xc0] sm:$0xff] }
 0x453   : > { %4118 = vst [vmem:[%s5783_s18 + $0x1c0] sm:$0xff] %v4022_v54  ;;  %4119 = vst [vmem:[%s5783_s18 + $0x1c8] sm:$0xff] %v4023_v28  ;;  %v4045_v34 = vadd.f32 %v7545_v0, %v3932_v40  ;;  %v3934_v58 = vld [vmem:[#allocation2 + $0x170] sm:$0xff]  ;;  %v4046_v51 = vadd.f32 %v7549_v45, %v3933_v53  ;;  %v3937_v3 = vld [vmem:[#allocation2 + $0x200] sm:$0xff] }
 0x454   : > { %4120 = vst [vmem:[%s5783_s18 + $0x1d0] sm:$0xff] %v4024_v9  ;;  %4121 = vst [vmem:[%s5783_s18 + $0x1d8] sm:$0xff] %v4025_v56  ;;  %v3935_v42 = vld [vmem:[#allocation2 + $0x90] sm:$0xff]  ;;  %v4047_v44 = vadd.f32 %v7541_v24, %v3934_v58  ;;  %v3938_v31 = vld [vmem:[#allocation2 + $0xd8] sm:$0xff]  ;;  %v4050_v36 = vadd.f32 %v7541_v24, %v3937_v3 }
 0x455   : > { %4122 = vst [vmem:[%s5783_s18 + $0x1e0] sm:$0xff] %v4026_v20  ;;  %4123 = vst [vmem:[%s5783_s18 + $0x1e8] sm:$0xff] %v4027_v60  ;;  %v4048_v21 = vadd.f32 %v7545_v0, %v3935_v42  ;;  %v3936_v22 = vld [vmem:[#allocation2 + $0xb0] sm:$0xff]  ;;  %v4051_v62 = vadd.f32 %v7545_v0, %v3938_v31  ;;  %v3939_v63 = vld [vmem:[#allocation2 + $0x1d8] sm:$0xff] }
 0x456   : > { %4124 = vst [vmem:[%s5783_s18 + $0x1f0] sm:$0xff] %v4028_v11  ;;  %4125 = vst [vmem:[%s5783_s18 + $0x1f8] sm:$0xff] %v4029_v10  ;;  %v4049_v14 = vadd.f32 %v7549_v45, %v3936_v22  ;;  %v3940_v61 = vld [vmem:[#allocation2 + $0x2e8] sm:$0xff]  ;;  %v3941_v46 = vld [vmem:[#allocation2 + $0x260] sm:$0xff]  ;;  %v4052_v27 = vadd.f32 %v7549_v45, %v3939_v63 }
 0x457   : > { %4126 = vst [vmem:[%s5783_s18 + $0x200] sm:$0xff] %v4030_v48  ;;  %4127 = vst [vmem:[%s5783_s18 + $0x208] sm:$0xff] %v4031_v25  ;;  %v4053_v54 = vadd.f32 %v7541_v24, %v3940_v61  ;;  %v4054_v28 = vadd.f32 %v7545_v0, %v3941_v46  ;;  %v3942_v9 = vld [vmem:[#allocation2 + $0x268] sm:$0xff]  ;;  %v3944_v55 = vld [vmem:[#allocation2 + $0x110] sm:$0xff] }
 0x458   : > { %4128 = vst [vmem:[%s5783_s18 + $0x210] sm:$0xff] %v4032_v29  ;;  %4129 = vst [vmem:[%s5783_s18 + $0x218] sm:$0xff] %v4033_v57  ;;  %v3943_v49 = vld [vmem:[#allocation2 + $0x88] sm:$0xff]  ;;  %v4055_v8 = vadd.f32 %v7549_v45, %v3942_v9  ;;  %v4057_v20 = vadd.f32 %v7545_v0, %v3944_v55  ;;  %v3946_v6 = vld [vmem:[#allocation2 + $0x198] sm:$0xff] }
 0x459   : > { %4130 = vst [vmem:[%s5783_s18 + $0x220] sm:$0xff] %v4034_v50  ;;  %4131 = vst [vmem:[%s5783_s18 + $0x228] sm:$0xff] %v4035_v33  ;;  %v4056_v56 = vadd.f32 %v7541_v24, %v3943_v49  ;;  %v3945_v60 = vld [vmem:[#allocation2 + $0x108] sm:$0xff]  ;;  %v4059_v11 = vadd.f32 %v7541_v24, %v3946_v6  ;;  %v3948_v48 = vld [vmem:[#allocation2 + $0x118] sm:$0xff] }
 0x45a   : > { %4132 = vst [vmem:[%s5783_s18 + $0x230] sm:$0xff] %v4036_v32  ;;  %4133 = vst [vmem:[%s5783_s18 + $0x238] sm:$0xff] %v4037_v4  ;;  %v3947_v26 = vld [vmem:[#allocation2 + $0x148] sm:$0xff]  ;;  %v4058_v2 = vadd.f32 %v7549_v45, %v3945_v60  ;;  %v4061_v12 = vadd.f32 %v7549_v45, %v3948_v48 }
 0x45b   : > { %4134 = vst [vmem:[%s5783_s18 + $0x240] sm:$0xff] %v4038_v43  ;;  %4135 = vst [vmem:[%s5783_s18 + $0x248] sm:$0xff] %v4039_v5  ;;  %v4060_v10 = vadd.f32 %v7545_v0, %v3947_v26 }
 0x45c   : > { %4136 = vst [vmem:[%s5783_s18 + $0x250] sm:$0xff] %v4040_v1  ;;  %4137 = vst [vmem:[%s5783_s18 + $0x258] sm:$0xff] %v4041_v39 }
 0x45d   : > { %4138 = vst [vmem:[%s5783_s18 + $0x260] sm:$0xff] %v4042_v23  ;;  %4139 = vst [vmem:[%s5783_s18 + $0x268] sm:$0xff] %v4043_v38 }
 0x45e   : > { %4140 = vst [vmem:[%s5783_s18 + $0x270] sm:$0xff] %v4044_v15  ;;  %4141 = vst [vmem:[%s5783_s18 + $0x278] sm:$0xff] %v4045_v34 }
 0x45f   : > { %4142 = vst [vmem:[%s5783_s18 + $0x280] sm:$0xff] %v4046_v51  ;;  %4143 = vst [vmem:[%s5783_s18 + $0x288] sm:$0xff] %v4047_v44 }
 0x460   : > { %4144 = vst [vmem:[%s5783_s18 + $0x290] sm:$0xff] %v4048_v21  ;;  %4145 = vst [vmem:[%s5783_s18 + $0x298] sm:$0xff] %v4049_v14 }
 0x461   : > { %4146 = vst [vmem:[%s5783_s18 + $0x2a0] sm:$0xff] %v4050_v36  ;;  %4147 = vst [vmem:[%s5783_s18 + $0x2a8] sm:$0xff] %v4051_v62 }
 0x462   : > { %4148 = vst [vmem:[%s5783_s18 + $0x2b0] sm:$0xff] %v4052_v27  ;;  %4149 = vst [vmem:[%s5783_s18 + $0x2b8] sm:$0xff] %v4053_v54 }
 0x463   : > { %4150 = vst [vmem:[%s5783_s18 + $0x2c0] sm:$0xff] %v4054_v28  ;;  %4151 = vst [vmem:[%s5783_s18 + $0x2c8] sm:$0xff] %v4055_v8 }
 0x464   : > { %4152 = vst [vmem:[%s5783_s18 + $0x2d0] sm:$0xff] %v4056_v56  ;;  %4153 = vst [vmem:[%s5783_s18 + $0x2d8] sm:$0xff] %v4057_v20 }
 0x465   : > { %4154 = vst [vmem:[%s5783_s18 + $0x2e0] sm:$0xff] %v4058_v2  ;;  %4155 = vst [vmem:[%s5783_s18 + $0x2e8] sm:$0xff] %v4059_v11 }
 0x466   : > { %4156 = vst [vmem:[%s5783_s18 + $0x2f0] sm:$0xff] %v4060_v10  ;;  %4157 = vst [vmem:[%s5783_s18 + $0x2f8] sm:$0xff] %v4061_v12 }
 0x467 PF: > { %s4159_s17 = scalar_lea.sflag [#allocation5], %s5752_s14  ;;  %s7988_s24 = sld [smem:[#allocation27_spill]] }
 0x46d   : > { %p7989_p13 = scmp.ne.s32.totalorder %s7988_s24, 0 }
 0x46e   : > { %s7990_s23 = sld [smem:[#allocation21_spill]] (%p7989_p13) }
 0x46f   : > { %4165 = sbr.rel (!%p7989_p13) target bundleno = 1173 (0x495), region = 72 }
 0x474   : > { %s4556_s15 = sshll.u32 %s7990_s23, 5 }
 0x475   : > { %s4167_s27 = ssub.s32 50, %s4556_s15 }
 0x476   : > { %p4168_p11 = scmp.lt.s32.totalorder %s4167_s27, 32 }
 0x478   : > { %s8017_s27 = smov (!%p4168_p11, %s4167_s27), 32 }
 0x479   : > { %s7747_s9 = smul.u32 384, %s8017_s27 }
 0x47b   : > { %s4173_s4 = ssub.s32 12288, %s7747_s9 }
 0x47c   : > { %4174 = vsyncadd %s4159_s17, %s4173_s4  ;;  %p4559_p0 = scmp.ne.s32.totalorder %s7747_s9, 0  ;;  %s4814_s7 = smul.u32 12288, %s7990_s23 }
 0x47d   : > { %s4180_s11 = sshll.u32 %s5783_s18, 4  ;;  %s7991_s16 = sld [smem:[#allocation52_spill]]  ;;  %s7760_s11 = int_to_ptr.vmem [resolvable:$true] %s4180_s11 }
 0x47e   : > { %s5340_s8 = scalar_lea.vmem %s7760_s11, %s7747_s9  ;;  %s5488_s0 = smov [#allocation12]  }
 0x47f   : > { %p5341_p5 = scmp.ne.s32.totalorder %s7760_s11, %s5340_s8  ;;  %s5344_s1 = sshll.u32 %s5488_s0, 4  ;;  %s5345_s1 = int_to_ptr.vmem [resolvable:$false] %s5344_s1 }
 0x480   : > { %s5346_s30 = scalar_lea.vmem %s5345_s1, 24576  ;;  %p5347_p4 = scmp.lt.s32.totalorder %s7760_s11, %s5345_s1 }
 0x481   : > { %p5342_p8 = pnand %p5341_p5, %p4559_p0  ;;  %p5348_p9 = scmp.lt.s32.totalorder %s5346_s30, %s5340_s8 }
 0x483   : > { %s7758_s10 = scalar_lea.hbm %s7991_s16, %s4814_s7  ;;  %p5343_p1 = pneg %p5342_p8 }
 0x484   : > { %p5349_p3 = por %p5348_p9, %p5347_p4 }
 0x486   : > { %p5350_p10 = pnand %p5349_p3, %p5343_p1 }
 0x488   : > { %5353 = shalt.err (!%p5350_p10)
}
 0x489   : > { %s5354_s12 = scalar_lea.hbm %s7758_s10, %s7747_s9  ;;  %s5358_s18 = scalar_lea.hbm %s7991_s16, 19200 }
 0x48a   : > { %p5355_p7 = scmp.ne.s32.totalorder %s7758_s10, %s5354_s12  ;;  %p5359_p6 = scmp.lt.s32.totalorder %s7758_s10, %s7991_s16 }
 0x48b   : > { %p5360_p13 = scmp.lt.s32.totalorder %s5358_s18, %s5354_s12 }
 0x48c   : > { %p5356_p12 = pnand %p5355_p7, %p4559_p0 }
 0x48d   : > { %p5361_p11 = por %p5360_p13, %p5359_p6 }
 0x48e   : > { %p5357_p2 = pneg %p5356_p12 }
 0x490   : > { %p5362_p5 = pnand %p5361_p11, %p5357_p2 }
 0x492   : > { %5365 = shalt.err (!%p5362_p5)
}
 0x493   : > { %s5489_s24 = smov 384   ;;  %s5490_s23 = smov 24  }
 0x494   : > { %4186 = dma.vmem_to_hbm [thread:$0]  (%p4559_p0), %s7760_s11, %s7747_s9, %s7758_s10, %s4159_s17, %s5489_s24, %s5489_s24, %s5490_s23  }
 0x495 PF: > { %s7992_s15 = sld [smem:[#allocation18_spill]]  ;;  %p4837_p8 = scmp.ge.s32.totalorder %s5472_s28, 2 }
 0x496   : > { %s7993_s27 = sld [smem:[#allocation28_spill]] }
 0x49b   : > { %s4195_s4 = sand.u32 1, %s7992_s15  }
 0x49c   : > { %p7994_p1 = scmp.ne.s32.totalorder %s7993_s27, 0  ;;  %s4196_s7 = scalar_lea.sflag [#allocation5], %s4195_s4 }
 0x49e   : > { %p4832_p4 = pnand %p4837_p8, %p7994_p1 }
 0x4a0   : > { %p4833_p9 = pneg %p4832_p4 }
 0x4a2   : > { %5427 = dma.done.wait (%p4833_p9), %s4196_s7, 12288  }
 0x4a3   : > { %5429 = vsyncadd (%p4833_p9), %s4196_s7, 4294955008  ;;  %s27_s28 = sadd.s32 1, %s5472_s28   ;;  %s7995_s14 = sld [smem:[#allocation25_spill]] }
 0x4a4   : > { %p24_p3 = scmp.ge.s32.totalorder %s27_s28, 8   ;;  %s7996_s17 = sld [smem:[#allocation19_spill]] }
 0x4a5   : > { %s7997_s23 = sld [smem:[#allocation26_spill]]  ;;  %s8001_s18 = smov %s5436_s19 }
 0x4a6   : > { %s7998_s25 = sld [smem:[#allocation22_spill]]  ;;  %s8002_s19 = smov %s5440_s20 }
 0x4a7   : > { %s7999_s9 = sld [smem:[#allocation23_spill]]  ;;  %s8004_s21 = smov %s5448_s22 }
 0x4a8   : > { %s8000_s27 = sld [smem:[#allocation24_spill]]  ;;  %s8006_s24 = smov %s5464_s26 }
 0x4a9   : > { %s8003_s20 = smov %s7995_s14  ;;  %26 = sbr.rel (!%p24_p3) target bundleno = 18 (0x12), region = 134 }
 0x4aa   : > { %s8005_s22 = smov %s7996_s17 }
 0x4ad   : > { %s8007_s26 = smov %s7999_s9 }
 0x4ae   :  { %4201 = vsyncpa [#allocation4], 1 }
 0x4af   :  { %4203 = vsyncpa [#allocation4 + $0x1], 1 }
 0x4b0   :  { %4204 = vsyncpa [#allocation7], 1 }
 0x4b1   :  { %4206 = vsyncpa [#allocation7 + $0x1], 1 }
 0x4b2   :  { %4207 = vsyncpa [#allocation10], 1 }
 0x4b3   :  { %4209 = vsyncpa [#allocation10 + $0x1], 1 }
 0x4b4   :  { %4210 = vsyncpa [#allocation5], 1 }
 0x4b5   :  { %4212 = vsyncpa [#allocation5 + $0x1], 1 }

</bundles_post_ra>
